<compile_context>
chip_gen: v5e
topology: v5e:2x2
jax: 0.10.0
libtpu: 0.0.40
codegen_flags: <defaults>
</compile_context>

<pallas_src>
import math
import functools

import jax
import jax.numpy as jnp
from jax.experimental import pallas as pl
from jax.experimental.pallas import tpu as pltpu


# ---------------------------------------------------------------------------
# Shared per-layer math.  The SAME functions are traced inside the Pallas kernel
# (on VMEM-resident values) and at XLA level (bf16 "mirror" reference), so the
# kernel and its numerical check differ only by lowering details.
# ---------------------------------------------------------------------------
def _attention_core(qp, kp, vp, wo, bo, *, num_heads, compute_dtype, approx_recip):
    """Multi-head attention + residual + rFF for one MAB.

    qp/kp/vp : [BB, N*, dV] f32 projections (K already pre-scaled by 1/sqrt(dV)).
    wo       : [dV, dV] in compute dtype,   bo : [1, dV] f32.
    """
    BB, nq, dv = qp.shape
    H = num_heads
    ds = dv // H
    cd = compute_dtype

    q_c, k_c, v_c = qp.astype(cd), kp.astype(cd), vp.astype(cd)
    heads = []
    for h in range(H):                                   # static loop, H tiny
        sl = slice(h * ds, (h + 1) * ds)
        s = jnp.einsum("bqd,bkd->bqk", q_c[..., sl], k_c[..., sl],
                       preferred_element_type=jnp.float32)        # [BB, Nq, Nk]
        s = s - jnp.max(s, axis=-1, keepdims=True)
        e = jnp.exp(s)
        denom = jnp.sum(e, axis=-1, keepdims=True)
        if approx_recip:
            a = e * pl.reciprocal(denom, approx=True)    # EUP slot (opt-in)
        else:
            a = e / denom                                # exact softmax (default)
        heads.append(jnp.einsum("bqk,bkd->bqd", a.astype(cd), v_c[..., sl],
                                preferred_element_type=jnp.float32))
    o = qp + jnp.concatenate(heads, axis=-1)             # residual; one lane concat/MAB

    # rFF with residual; batch collapsed into the matmul row dimension.
    o2 = o.reshape(BB * nq, dv)
    fo = jnp.dot(o2.astype(cd), wo, preferred_element_type=jnp.float32) + bo
    out = o2 + jnp.maximum(fo, 0.0)
    # TODO(synk): ln=True (BatchNorm1d) branch of MAB is not implemented; the
    # SetTransformer default ln=False is what this kernel reproduces.
    return out.reshape(BB, nq, dv)


def _sab_math(x, w_qkv, b_qkv, wo, bo, *, num_heads, compute_dtype, approx_recip):
    """SAB: a single fused feature-major QKV matmul, then multi-head attention."""
    BB, n, d_in = x.shape
    dv = w_qkv.shape[1] // 3
    cd = compute_dtype
    x2 = x.reshape(BB * n, d_in).astype(cd)
    qkv = jnp.dot(x2, w_qkv, preferred_element_type=jnp.float32) + b_qkv
    qkv = qkv.reshape(BB, n, 3 * dv)
    return _attention_core(qkv[..., :dv], qkv[..., dv:2 * dv], qkv[..., 2 * dv:],
                           wo, bo, num_heads=num_heads, compute_dtype=cd,
                           approx_recip=approx_recip)


def _pma_math(q_proj, x, w_kv, b_kv, wo, bo, *, num_heads, compute_dtype, approx_recip):
    """PMA: the query projection of the seed vectors is a constant (host-precomputed)."""
    BB, n, d_in = x.shape
    dv = w_kv.shape[1] // 2
    cd = compute_dtype
    x2 = x.reshape(BB * n, d_in).astype(cd)
    kv = jnp.dot(x2, w_kv, preferred_element_type=jnp.float32) + b_kv
    kv = kv.reshape(BB, n, 2 * dv)
    qp = jnp.broadcast_to(q_proj, (BB,) + q_proj.shape[1:])   # [BB, num_seeds, dV]
    return _attention_core(qp, kv[..., :dv], kv[..., dv:], wo, bo,
                           num_heads=num_heads, compute_dtype=cd,
                           approx_recip=approx_recip)


def _out_math(x, w_out, b_out, compute_dtype):
    """Output Linear on the 128-lane-padded weights; seeds folded into matmul rows."""
    BB, ns, dh = x.shape
    x2 = x.reshape(BB * ns, dh).astype(compute_dtype)
    y = jnp.dot(x2, w_out, preferred_element_type=jnp.float32) + b_out
    return y.reshape(BB, ns, w_out.shape[1])


# ---------------------------------------------------------------------------
# Fused SetTransformer kernel: enc(SAB, SAB) -> dec(PMA, SAB, Linear)
# ---------------------------------------------------------------------------
def _set_transformer_kernel(x_ref, *refs, num_heads, compute_dtype, approx_recip):
    (wqkv1, bqkv1, wo1, bo1,
     wqkv2, bqkv2, wo2, bo2,
     qp3, wkv3, bkv3, wo3, bo3,
     wqkv4, bqkv4, wo4, bo4,
     w_out, b_out, o_ref) = refs
    kw = dict(num_heads=num_heads, compute_dtype=compute_dtype,
              approx_recip=approx_recip)

    x = x_ref[...]                                                        # [BB, N, d_in]
    x = _sab_math(x, wqkv1[...], bqkv1[...], wo1[...], bo1[...], **kw)    # enc SAB1
    x = _sab_math(x, wqkv2[...], bqkv2[...], wo2[...], bo2[...], **kw)    # enc SAB2
    x = _pma_math(qp3[...], x, wkv3[...], bkv3[...], wo3[...], bo3[...], **kw)  # dec PMA
    x = _sab_math(x, wqkv4[...], bqkv4[...], wo4[...], bo4[...], **kw)    # dec SAB
    y = _out_math(x, w_out[...], b_out[...], compute_dtype)               # dec Linear
    o_ref[...] = y.astype(o_ref.dtype)                                    # lane-dense store


# ---------------------------------------------------------------------------
# Host-side parameter prep (done ONCE, off the hot path)
# ---------------------------------------------------------------------------
def _prepare_params(params, num_heads, compute_dtype):
    cd = compute_dtype
    hp = jax.lax.Precision.HIGHEST

    def fuse_qkv(p):
        wq, bq, wk, bk, wv, bv, wo, bo = p
        scale = 1.0 / math.sqrt(wq.shape[1])                    # 1/sqrt(dim_V)
        w_qkv = jnp.concatenate([wq, wk * scale, wv], axis=1).astype(cd)
        b_qkv = jnp.concatenate([bq, bk * scale, bv], axis=1).astype(jnp.float32)
        return (w_qkv, b_qkv, wo.astype(cd), bo.astype(jnp.float32))

    # PMA: Q' = S @ Wq + bq is constant w.r.t. X -> precompute on host (f32).
    wq, bq, wk, bk, wv, bv, wo, bo = params["pma"]
    scale = 1.0 / math.sqrt(wq.shape[1])
    q_proj = (jnp.einsum("bnd,de->bne", params["S"], wq, precision=hp)
              + bq[0]).astype(jnp.float32)                      # [1, num_seeds, dV]
    w_kv = jnp.concatenate([wk * scale, wv], axis=1).astype(cd)
    b_kv = jnp.concatenate([bk * scale, bv], axis=1).astype(jnp.float32)
    pma = (q_proj, w_kv, b_kv, wo.astype(cd), bo.astype(jnp.float32))

    # Output Linear: pad features to 128 lanes so the HBM store is lane-dense.
    d_out = params["W_out"].shape[1]
    d_out_pad = ((d_out + 127) // 128) * 128
    w_out = jnp.pad(params["W_out"], ((0, 0), (0, d_out_pad - d_out))).astype(cd)
    b_out = jnp.pad(params["b_out"], ((0, 0), (0, d_out_pad - d_out))).astype(jnp.float32)

    return dict(sab1=fuse_qkv(params["sab1"]),
                sab2=fuse_qkv(params["sab2"]),
                pma=pma,
                dec_sab=fuse_qkv(params["dec_sab"]),
                w_out=w_out, b_out=b_out, d_out=d_out)


def _default_num_batch_blocks(batch):
    """2 'parallel' batch blocks only on dual-TensorCore parts (v7x); on single-TC
    v5e/v6e an extra grid step is pure overhead and halves the matmul row dim."""
    try:
        kind = jax.devices()[0].device_kind.lower()
    except Exception:
        kind = ""
    if "v7" in kind and batch % 2 == 0:
        return 2
    return 1


def _pallas_forward(X, prepared, num_heads, compute_dtype, approx_recip,
                    num_batch_blocks):
    B, N, d_in = X.shape
    num_seeds = prepared["pma"][0].shape[1]
    d_out_pad = prepared["w_out"].shape[1]

    if num_batch_blocks is None:
        num_batch_blocks = _default_num_batch_blocks(B)
    assert B % num_batch_blocks == 0
    BB = B // num_batch_blocks

    weight_args = (list(prepared["sab1"]) + list(prepared["sab2"])
                   + list(prepared["pma"]) + list(prepared["dec_sab"])
                   + [prepared["w_out"], prepared["b_out"]])

    def rep_spec(a):  # weight shared by every grid step (constant block index)
        nd = a.ndim
        return pl.BlockSpec(a.shape, lambda g, _nd=nd: (0,) * _nd)

    in_specs = [pl.BlockSpec((BB, N, d_in), lambda g: (g, 0, 0))]
    in_specs += [rep_spec(a) for a in weight_args]

    kernel = functools.partial(_set_transformer_kernel, num_heads=num_heads,
                               compute_dtype=compute_dtype,
                               approx_recip=approx_recip)

    out = pl.pallas_call(
        kernel,
        out_shape=jax.ShapeDtypeStruct((B, num_seeds, d_out_pad), jnp.float32),
        grid=(num_batch_blocks,),
        in_specs=in_specs,
        out_specs=pl.BlockSpec((BB, num_seeds, d_out_pad), lambda g: (g, 0, 0)),
        compiler_params=pltpu.CompilerParams(dimension_semantics=("parallel",)),
        # Footprint here is <1 MB; no vmem_limit_bytes override needed.  If scaled
        # up, re-derive BB against v7x's 64 MiB physical VMEM and set it explicitly.
    )(X, *weight_args)

    return out[..., :prepared["d_out"]]


def build_forward(params, num_heads, *, compute_dtype=jnp.bfloat16,
                  approx_recip=False, num_batch_blocks=None):
    """Prepare parameters once (layout plumbing off the hot path) and return a
    jitted forward in which only the fused pallas_call runs per step."""
    prepared = _prepare_params(params, num_heads, compute_dtype)

    @jax.jit
    def fwd(X):
        return _pallas_forward(X, prepared, num_heads, compute_dtype,
                               approx_recip, num_batch_blocks)
    return fwd


# ---------------------------------------------------------------------------
# References for correctness checks
# ---------------------------------------------------------------------------
def _mirror_forward(X, prepared, num_heads, compute_dtype):
    """XLA-level mirror of the kernel math on identically prepared parameters."""
    kw = dict(num_heads=num_heads, compute_dtype=compute_dtype, approx_recip=False)
    x = _sab_math(X, *prepared["sab1"], **kw)
    x = _sab_math(x, *prepared["sab2"], **kw)
    p = prepared["pma"]
    x = _pma_math(p[0], x, *p[1:], **kw)
    x = _sab_math(x, *prepared["dec_sab"], **kw)
    y = _out_math(x, prepared["w_out"], prepared["b_out"], compute_dtype)
    return y[..., :prepared["d_out"]]


def _ref_mab(Q, K, p, num_heads):
    """PyTorch-faithful MAB (ln=False) in f32 HIGHEST precision."""
    wq, bq, wk, bk, wv, bv, wo, bo = p
    d_v = wq.shape[1]
    ds = d_v // num_heads
    hp = jax.lax.Precision.HIGHEST
    mm = lambda a, w: jnp.einsum("bnd,de->bne", a, w, precision=hp)
    Qp = mm(Q, wq) + bq[0]
    Kp = mm(K, wk) + bk[0]
    Vp = mm(K, wv) + bv[0]
    split = lambda t: t.reshape(t.shape[0], t.shape[1], num_heads, ds)
    Qh, Kh, Vh = split(Qp), split(Kp), split(Vp)
    logits = jnp.einsum("bqhd,bkhd->bhqk", Qh, Kh, precision=hp) / math.sqrt(d_v)
    A = jax.nn.softmax(logits, axis=-1)
    Oh = jnp.einsum("bhqk,bkhd->bqhd", A, Vh, precision=hp)
    O = Qp + Oh.reshape(Qp.shape)
    return O + jax.nn.relu(mm(O, wo) + bo[0])


def _ref_forward(X, params, num_heads):
    B = X.shape[0]
    x = _ref_mab(X, X, params["sab1"], num_heads)
    x = _ref_mab(x, x, params["sab2"], num_heads)
    S = jnp.broadcast_to(params["S"], (B,) + params["S"].shape[1:])
    x = _ref_mab(S, x, params["pma"], num_heads)
    x = _ref_mab(x, x, params["dec_sab"], num_heads)
    return (jnp.einsum("bnd,de->bne", x, params["W_out"],
                       precision=jax.lax.Precision.HIGHEST) + params["b_out"][0])


# ---------------------------------------------------------------------------
# Deterministic parameter construction
# ---------------------------------------------------------------------------
def _make_linear(key, d_in, d_out):
    k1, k2 = jax.random.split(key)
    W = jax.random.normal(k1, (d_in, d_out), jnp.float32) / math.sqrt(d_in)
    b = jax.random.normal(k2, (1, d_out), jnp.float32) * 0.01
    return W, b


def _make_mab(key, d_q, d_k, d_v):
    ks = jax.random.split(key, 4)
    Wq, bq = _make_linear(ks[0], d_q, d_v)
    Wk, bk = _make_linear(ks[1], d_k, d_v)
    Wv, bv = _make_linear(ks[2], d_k, d_v)
    Wo, bo = _make_linear(ks[3], d_v, d_v)
    return (Wq, bq, Wk, bk, Wv, bv, Wo, bo)


def make_params(key, dim_input, dim_hidden, dim_output, num_seeds):
    ks = jax.random.split(key, 6)
    limit = math.sqrt(6.0 / (num_seeds + dim_hidden))     # xavier-uniform-ish PMA seeds
    S = jax.random.uniform(ks[0], (1, num_seeds, dim_hidden), jnp.float32,
                           minval=-limit, maxval=limit)
    W_out, b_out = _make_linear(ks[5], dim_hidden, dim_output)
    return {
        "sab1": _make_mab(ks[1], dim_input, dim_input, dim_hidden),
        "sab2": _make_mab(ks[2], dim_hidden, dim_hidden, dim_hidden),
        "pma": _make_mab(ks[3], dim_hidden, dim_hidden, dim_hidden),
        "dec_sab": _make_mab(ks[4], dim_hidden, dim_hidden, dim_hidden),
        "S": S,
        "W_out": W_out,
        "b_out": b_out,
    }


# ---------------------------------------------------------------------------
if __name__ == "__main__":
    # SetTransformer(dim_input=16, num_outputs=2, dim_output=8, dim_hidden=32,
    #                num_heads=4, ln=False, num_sabs=2)
    B, N = 2, 8
    dim_input, dim_hidden, dim_output = 16, 32, 8
    num_heads, num_seeds = 4, 2

    key = jax.random.PRNGKey(0)
    kx, kp = jax.random.split(key)
    X = jax.random.normal(kx, (B, N, dim_input), jnp.float32)
    params = make_params(kp, dim_input, dim_hidden, dim_output, num_seeds)

    # 1) f32 / exact-softmax path vs. the PyTorch-faithful full-precision reference.
    out_f32 = jax.block_until_ready(
        build_forward(params, num_heads, compute_dtype=jnp.float32)(X))
    ref = _ref_forward(X, params, num_heads)
    assert out_f32.shape == (B, num_seeds, dim_output), out_f32.shape
    assert jnp.allclose(out_f32, ref, atol=2e-2, rtol=2e-2), "f32 mismatch vs reference"

    # 2) Default config: bf16 MXU operands, f32 accumulation, exact softmax.
    #    Checked against an XLA mirror of the *identical* prepared-parameter math
    #    (remaining differences: MXU accumulation order / exp implementation only).
    out_bf16 = jax.block_until_ready(build_forward(params, num_heads)(X))
    prepared_bf16 = _prepare_params(params, num_heads, jnp.bfloat16)
    mirror_bf16 = _mirror_forward(X, prepared_bf16, num_heads, jnp.bfloat16)
    assert out_bf16.shape == (B, num_seeds, dim_output), out_bf16.shape
    assert jnp.allclose(out_bf16, mirror_bf16, atol=2e-2, rtol=2e-2), \
        "bf16 mismatch vs mirror"

    # 3) Opt-in EUP approximate-reciprocal softmax (perf knob for large key counts):
    #    exercise lowering; numerical parity is already covered by checks 1 and 2.
    out_fast = jax.block_until_ready(
        build_forward(params, num_heads, approx_recip=True)(X))
    assert out_fast.shape == (B, num_seeds, dim_output), out_fast.shape
    assert bool(jnp.all(jnp.isfinite(out_fast))), "non-finite output (approx recip path)"

    print("KERNEL_OK")
</pallas_src>

<mosaic_0001>
module attributes {stable_mosaic.version = 11 : i64} {
  func.func @_set_transformer_kernel(%arg0: i32, %arg1: memref<2x8x16xf32, #tpu.memory_space<vmem>>, %arg2: memref<16x96xf32, #tpu.memory_space<vmem>>, %arg3: memref<1x96xf32, #tpu.memory_space<vmem>>, %arg4: memref<32x32xf32, #tpu.memory_space<vmem>>, %arg5: memref<1x32xf32, #tpu.memory_space<vmem>>, %arg6: memref<32x96xf32, #tpu.memory_space<vmem>>, %arg7: memref<1x96xf32, #tpu.memory_space<vmem>>, %arg8: memref<32x32xf32, #tpu.memory_space<vmem>>, %arg9: memref<1x32xf32, #tpu.memory_space<vmem>>, %arg10: memref<1x2x32xf32, #tpu.memory_space<vmem>>, %arg11: memref<32x64xf32, #tpu.memory_space<vmem>>, %arg12: memref<1x64xf32, #tpu.memory_space<vmem>>, %arg13: memref<32x32xf32, #tpu.memory_space<vmem>>, %arg14: memref<1x32xf32, #tpu.memory_space<vmem>>, %arg15: memref<32x96xf32, #tpu.memory_space<vmem>>, %arg16: memref<1x96xf32, #tpu.memory_space<vmem>>, %arg17: memref<32x32xf32, #tpu.memory_space<vmem>>, %arg18: memref<1x32xf32, #tpu.memory_space<vmem>>, %arg19: memref<32x128xf32, #tpu.memory_space<vmem>>, %arg20: memref<1x128xf32, #tpu.memory_space<vmem>>, %arg21: memref<2x2x128xf32, #tpu.memory_space<vmem>>) attributes {dimension_semantics = [#tpu.dimension_semantics<parallel>], iteration_bounds = array<i64: 1>, scalar_prefetch = 0 : i64, scratch_operands = 0 : i64, tpu.core_type = #tpu.core_type<tc>, window_params = [{transform_indices = @transform_0, window_bounds = array<i64: 2, 8, 16>}, {pipeline_mode = #tpu.pipeline_mode<synchronous>, transform_indices = @transform_1, window_bounds = array<i64: 16, 96>}, {pipeline_mode = #tpu.pipeline_mode<synchronous>, transform_indices = @transform_2, window_bounds = array<i64: 1, 96>}, {pipeline_mode = #tpu.pipeline_mode<synchronous>, transform_indices = @transform_3, window_bounds = array<i64: 32, 32>}, {pipeline_mode = #tpu.pipeline_mode<synchronous>, transform_indices = @transform_4, window_bounds = array<i64: 1, 32>}, {pipeline_mode = #tpu.pipeline_mode<synchronous>, transform_indices = @transform_5, window_bounds = array<i64: 32, 96>}, {pipeline_mode = #tpu.pipeline_mode<synchronous>, transform_indices = @transform_6, window_bounds = array<i64: 1, 96>}, {pipeline_mode = #tpu.pipeline_mode<synchronous>, transform_indices = @transform_7, window_bounds = array<i64: 32, 32>}, {pipeline_mode = #tpu.pipeline_mode<synchronous>, transform_indices = @transform_8, window_bounds = array<i64: 1, 32>}, {pipeline_mode = #tpu.pipeline_mode<synchronous>, transform_indices = @transform_9, window_bounds = array<i64: 1, 2, 32>}, {pipeline_mode = #tpu.pipeline_mode<synchronous>, transform_indices = @transform_10, window_bounds = array<i64: 32, 64>}, {pipeline_mode = #tpu.pipeline_mode<synchronous>, transform_indices = @transform_11, window_bounds = array<i64: 1, 64>}, {pipeline_mode = #tpu.pipeline_mode<synchronous>, transform_indices = @transform_12, window_bounds = array<i64: 32, 32>}, {pipeline_mode = #tpu.pipeline_mode<synchronous>, transform_indices = @transform_13, window_bounds = array<i64: 1, 32>}, {pipeline_mode = #tpu.pipeline_mode<synchronous>, transform_indices = @transform_14, window_bounds = array<i64: 32, 96>}, {pipeline_mode = #tpu.pipeline_mode<synchronous>, transform_indices = @transform_15, window_bounds = array<i64: 1, 96>}, {pipeline_mode = #tpu.pipeline_mode<synchronous>, transform_indices = @transform_16, window_bounds = array<i64: 32, 32>}, {pipeline_mode = #tpu.pipeline_mode<synchronous>, transform_indices = @transform_17, window_bounds = array<i64: 1, 32>}, {pipeline_mode = #tpu.pipeline_mode<synchronous>, transform_indices = @transform_18, window_bounds = array<i64: 32, 128>}, {pipeline_mode = #tpu.pipeline_mode<synchronous>, transform_indices = @transform_19, window_bounds = array<i64: 1, 128>}, {transform_indices = @transform_20, window_bounds = array<i64: 2, 2, 128>}]} {
    %c0 = arith.constant 0 : index
    %c0_0 = arith.constant 0 : index
    %c0_1 = arith.constant 0 : index
    %0 = vector.load %arg1[%c0, %c0_0, %c0_1] : memref<2x8x16xf32, #tpu.memory_space<vmem>>, vector<2x8x16xf32>
    %c0_2 = arith.constant 0 : index
    %c0_3 = arith.constant 0 : index
    %1 = vector.load %arg2[%c0_2, %c0_3] : memref<16x96xf32, #tpu.memory_space<vmem>>, vector<16x96xf32>
    %c0_4 = arith.constant 0 : index
    %c0_5 = arith.constant 0 : index
    %2 = vector.load %arg3[%c0_4, %c0_5] : memref<1x96xf32, #tpu.memory_space<vmem>>, vector<1x96xf32>
    %c0_6 = arith.constant 0 : index
    %c0_7 = arith.constant 0 : index
    %3 = vector.load %arg4[%c0_6, %c0_7] : memref<32x32xf32, #tpu.memory_space<vmem>>, vector<32x32xf32>
    %c0_8 = arith.constant 0 : index
    %c0_9 = arith.constant 0 : index
    %4 = vector.load %arg5[%c0_8, %c0_9] : memref<1x32xf32, #tpu.memory_space<vmem>>, vector<1x32xf32>
    %5 = vector.shape_cast %0 : vector<2x8x16xf32> to vector<16x16xf32>
    %cst = arith.constant dense<0.000000e+00> : vector<16x96xf32>
    %6 = tpu.matmul %5, %1, %cst {dimension_numbers = #tpu.dot_dimension_numbers<[1], [0], [0], [1], [0, 0, 1, 1], [], []>} : vector<16x16xf32>, vector<16x96xf32>, vector<16x96xf32> -> vector<16x96xf32>
    %7 = vector.broadcast %2 : vector<1x96xf32> to vector<16x96xf32>
    %8 = arith.addf %6, %7 : vector<16x96xf32>
    %9 = vector.shape_cast %8 : vector<16x96xf32> to vector<2x8x96xf32>
    %10 = vector.extract_strided_slice %9 {offsets = [0, 0, 0], sizes = [2, 8, 32], strides = [1, 1, 1]} : vector<2x8x96xf32> to vector<2x8x32xf32>
    %11 = vector.extract_strided_slice %9 {offsets = [0, 0, 32], sizes = [2, 8, 32], strides = [1, 1, 1]} : vector<2x8x96xf32> to vector<2x8x32xf32>
    %12 = vector.extract_strided_slice %9 {offsets = [0, 0, 64], sizes = [2, 8, 32], strides = [1, 1, 1]} : vector<2x8x96xf32> to vector<2x8x32xf32>
    %13 = vector.extract_strided_slice %10 {offsets = [0, 0, 0], sizes = [2, 8, 8], strides = [1, 1, 1]} : vector<2x8x32xf32> to vector<2x8x8xf32>
    %14 = vector.extract_strided_slice %11 {offsets = [0, 0, 0], sizes = [2, 8, 8], strides = [1, 1, 1]} : vector<2x8x32xf32> to vector<2x8x8xf32>
    "tpu.trace_start"() <{level = 10 : i32, message = "bqd,bkd->bqk"}> : () -> ()
    %cst_10 = arith.constant dense<0.000000e+00> : vector<2x8x8xf32>
    %15 = tpu.matmul %13, %14, %cst_10 {dimension_numbers = #tpu.dot_dimension_numbers<[2], [2], [1], [1], [0, 0, 0, 1, 1, 1], [0], [0]>} : vector<2x8x8xf32>, vector<2x8x8xf32>, vector<2x8x8xf32> -> vector<2x8x8xf32>
    "tpu.trace_stop"() : () -> ()
    %cst_11 = arith.constant dense<0xFF800000> : vector<2x8xf32>
    %16 = vector.multi_reduction <maximumf>, %15, %cst_11 [2] : vector<2x8x8xf32> to vector<2x8xf32>
    %17 = vector.shape_cast %16 : vector<2x8xf32> to vector<2x8x1xf32>
    %18 = vector.broadcast %17 : vector<2x8x1xf32> to vector<2x8x8xf32>
    %19 = arith.subf %15, %18 : vector<2x8x8xf32>
    %20 = math.exp %19 : vector<2x8x8xf32>
    %cst_12 = arith.constant dense<0.000000e+00> : vector<2x8xf32>
    %21 = vector.multi_reduction <add>, %20, %cst_12 [2] : vector<2x8x8xf32> to vector<2x8xf32>
    %22 = vector.shape_cast %21 : vector<2x8xf32> to vector<2x8x1xf32>
    %23 = vector.broadcast %22 : vector<2x8x1xf32> to vector<2x8x8xf32>
    %24 = arith.divf %20, %23 : vector<2x8x8xf32>
    %25 = vector.extract_strided_slice %12 {offsets = [0, 0, 0], sizes = [2, 8, 8], strides = [1, 1, 1]} : vector<2x8x32xf32> to vector<2x8x8xf32>
    "tpu.trace_start"() <{level = 10 : i32, message = "bqk,bkd->bqd"}> : () -> ()
    %cst_13 = arith.constant dense<0.000000e+00> : vector<2x8x8xf32>
    %26 = tpu.matmul %24, %25, %cst_13 {dimension_numbers = #tpu.dot_dimension_numbers<[2], [1], [1], [2], [0, 0, 0, 1, 1, 2], [0], [0]>} : vector<2x8x8xf32>, vector<2x8x8xf32>, vector<2x8x8xf32> -> vector<2x8x8xf32>
    "tpu.trace_stop"() : () -> ()
    %27 = vector.extract_strided_slice %10 {offsets = [0, 0, 8], sizes = [2, 8, 8], strides = [1, 1, 1]} : vector<2x8x32xf32> to vector<2x8x8xf32>
    %28 = vector.extract_strided_slice %11 {offsets = [0, 0, 8], sizes = [2, 8, 8], strides = [1, 1, 1]} : vector<2x8x32xf32> to vector<2x8x8xf32>
    "tpu.trace_start"() <{level = 10 : i32, message = "bqd,bkd->bqk"}> : () -> ()
    %cst_14 = arith.constant dense<0.000000e+00> : vector<2x8x8xf32>
    %29 = tpu.matmul %27, %28, %cst_14 {dimension_numbers = #tpu.dot_dimension_numbers<[2], [2], [1], [1], [0, 0, 0, 1, 1, 1], [0], [0]>} : vector<2x8x8xf32>, vector<2x8x8xf32>, vector<2x8x8xf32> -> vector<2x8x8xf32>
    "tpu.trace_stop"() : () -> ()
    %cst_15 = arith.constant dense<0xFF800000> : vector<2x8xf32>
    %30 = vector.multi_reduction <maximumf>, %29, %cst_15 [2] : vector<2x8x8xf32> to vector<2x8xf32>
    %31 = vector.shape_cast %30 : vector<2x8xf32> to vector<2x8x1xf32>
    %32 = vector.broadcast %31 : vector<2x8x1xf32> to vector<2x8x8xf32>
    %33 = arith.subf %29, %32 : vector<2x8x8xf32>
    %34 = math.exp %33 : vector<2x8x8xf32>
    %cst_16 = arith.constant dense<0.000000e+00> : vector<2x8xf32>
    %35 = vector.multi_reduction <add>, %34, %cst_16 [2] : vector<2x8x8xf32> to vector<2x8xf32>
    %36 = vector.shape_cast %35 : vector<2x8xf32> to vector<2x8x1xf32>
    %37 = vector.broadcast %36 : vector<2x8x1xf32> to vector<2x8x8xf32>
    %38 = arith.divf %34, %37 : vector<2x8x8xf32>
    %39 = vector.extract_strided_slice %12 {offsets = [0, 0, 8], sizes = [2, 8, 8], strides = [1, 1, 1]} : vector<2x8x32xf32> to vector<2x8x8xf32>
    "tpu.trace_start"() <{level = 10 : i32, message = "bqk,bkd->bqd"}> : () -> ()
    %cst_17 = arith.constant dense<0.000000e+00> : vector<2x8x8xf32>
    %40 = tpu.matmul %38, %39, %cst_17 {dimension_numbers = #tpu.dot_dimension_numbers<[2], [1], [1], [2], [0, 0, 0, 1, 1, 2], [0], [0]>} : vector<2x8x8xf32>, vector<2x8x8xf32>, vector<2x8x8xf32> -> vector<2x8x8xf32>
    "tpu.trace_stop"() : () -> ()
    %41 = vector.extract_strided_slice %10 {offsets = [0, 0, 16], sizes = [2, 8, 8], strides = [1, 1, 1]} : vector<2x8x32xf32> to vector<2x8x8xf32>
    %42 = vector.extract_strided_slice %11 {offsets = [0, 0, 16], sizes = [2, 8, 8], strides = [1, 1, 1]} : vector<2x8x32xf32> to vector<2x8x8xf32>
    "tpu.trace_start"() <{level = 10 : i32, message = "bqd,bkd->bqk"}> : () -> ()
    %cst_18 = arith.constant dense<0.000000e+00> : vector<2x8x8xf32>
    %43 = tpu.matmul %41, %42, %cst_18 {dimension_numbers = #tpu.dot_dimension_numbers<[2], [2], [1], [1], [0, 0, 0, 1, 1, 1], [0], [0]>} : vector<2x8x8xf32>, vector<2x8x8xf32>, vector<2x8x8xf32> -> vector<2x8x8xf32>
    "tpu.trace_stop"() : () -> ()
    %cst_19 = arith.constant dense<0xFF800000> : vector<2x8xf32>
    %44 = vector.multi_reduction <maximumf>, %43, %cst_19 [2] : vector<2x8x8xf32> to vector<2x8xf32>
    %45 = vector.shape_cast %44 : vector<2x8xf32> to vector<2x8x1xf32>
    %46 = vector.broadcast %45 : vector<2x8x1xf32> to vector<2x8x8xf32>
    %47 = arith.subf %43, %46 : vector<2x8x8xf32>
    %48 = math.exp %47 : vector<2x8x8xf32>
    %cst_20 = arith.constant dense<0.000000e+00> : vector<2x8xf32>
    %49 = vector.multi_reduction <add>, %48, %cst_20 [2] : vector<2x8x8xf32> to vector<2x8xf32>
    %50 = vector.shape_cast %49 : vector<2x8xf32> to vector<2x8x1xf32>
    %51 = vector.broadcast %50 : vector<2x8x1xf32> to vector<2x8x8xf32>
    %52 = arith.divf %48, %51 : vector<2x8x8xf32>
    %53 = vector.extract_strided_slice %12 {offsets = [0, 0, 16], sizes = [2, 8, 8], strides = [1, 1, 1]} : vector<2x8x32xf32> to vector<2x8x8xf32>
    "tpu.trace_start"() <{level = 10 : i32, message = "bqk,bkd->bqd"}> : () -> ()
    %cst_21 = arith.constant dense<0.000000e+00> : vector<2x8x8xf32>
    %54 = tpu.matmul %52, %53, %cst_21 {dimension_numbers = #tpu.dot_dimension_numbers<[2], [1], [1], [2], [0, 0, 0, 1, 1, 2], [0], [0]>} : vector<2x8x8xf32>, vector<2x8x8xf32>, vector<2x8x8xf32> -> vector<2x8x8xf32>
    "tpu.trace_stop"() : () -> ()
    %55 = vector.extract_strided_slice %10 {offsets = [0, 0, 24], sizes = [2, 8, 8], strides = [1, 1, 1]} : vector<2x8x32xf32> to vector<2x8x8xf32>
    %56 = vector.extract_strided_slice %11 {offsets = [0, 0, 24], sizes = [2, 8, 8], strides = [1, 1, 1]} : vector<2x8x32xf32> to vector<2x8x8xf32>
    "tpu.trace_start"() <{level = 10 : i32, message = "bqd,bkd->bqk"}> : () -> ()
    %cst_22 = arith.constant dense<0.000000e+00> : vector<2x8x8xf32>
    %57 = tpu.matmul %55, %56, %cst_22 {dimension_numbers = #tpu.dot_dimension_numbers<[2], [2], [1], [1], [0, 0, 0, 1, 1, 1], [0], [0]>} : vector<2x8x8xf32>, vector<2x8x8xf32>, vector<2x8x8xf32> -> vector<2x8x8xf32>
    "tpu.trace_stop"() : () -> ()
    %cst_23 = arith.constant dense<0xFF800000> : vector<2x8xf32>
    %58 = vector.multi_reduction <maximumf>, %57, %cst_23 [2] : vector<2x8x8xf32> to vector<2x8xf32>
    %59 = vector.shape_cast %58 : vector<2x8xf32> to vector<2x8x1xf32>
    %60 = vector.broadcast %59 : vector<2x8x1xf32> to vector<2x8x8xf32>
    %61 = arith.subf %57, %60 : vector<2x8x8xf32>
    %62 = math.exp %61 : vector<2x8x8xf32>
    %cst_24 = arith.constant dense<0.000000e+00> : vector<2x8xf32>
    %63 = vector.multi_reduction <add>, %62, %cst_24 [2] : vector<2x8x8xf32> to vector<2x8xf32>
    %64 = vector.shape_cast %63 : vector<2x8xf32> to vector<2x8x1xf32>
    %65 = vector.broadcast %64 : vector<2x8x1xf32> to vector<2x8x8xf32>
    %66 = arith.divf %62, %65 : vector<2x8x8xf32>
    %67 = vector.extract_strided_slice %12 {offsets = [0, 0, 24], sizes = [2, 8, 8], strides = [1, 1, 1]} : vector<2x8x32xf32> to vector<2x8x8xf32>
    "tpu.trace_start"() <{level = 10 : i32, message = "bqk,bkd->bqd"}> : () -> ()
    %cst_25 = arith.constant dense<0.000000e+00> : vector<2x8x8xf32>
    %68 = tpu.matmul %66, %67, %cst_25 {dimension_numbers = #tpu.dot_dimension_numbers<[2], [1], [1], [2], [0, 0, 0, 1, 1, 2], [0], [0]>} : vector<2x8x8xf32>, vector<2x8x8xf32>, vector<2x8x8xf32> -> vector<2x8x8xf32>
    "tpu.trace_stop"() : () -> ()
    %69 = tpu.concatenate %26, %40, %54, %68 in 2 : vector<2x8x8xf32>, vector<2x8x8xf32>, vector<2x8x8xf32>, vector<2x8x8xf32> -> vector<2x8x32xf32>
    %70 = arith.addf %10, %69 : vector<2x8x32xf32>
    %71 = vector.shape_cast %70 : vector<2x8x32xf32> to vector<16x32xf32>
    %cst_26 = arith.constant dense<0.000000e+00> : vector<16x32xf32>
    %72 = tpu.matmul %71, %3, %cst_26 {dimension_numbers = #tpu.dot_dimension_numbers<[1], [0], [0], [1], [0, 0, 1, 1], [], []>} : vector<16x32xf32>, vector<32x32xf32>, vector<16x32xf32> -> vector<16x32xf32>
    %73 = vector.broadcast %4 : vector<1x32xf32> to vector<16x32xf32>
    %74 = arith.addf %72, %73 : vector<16x32xf32>
    %cst_27 = arith.constant 0.000000e+00 : f32
    %75 = vector.broadcast %cst_27 : f32 to vector<16x32xf32>
    %76 = arith.maximumf %74, %75 : vector<16x32xf32>
    %77 = arith.addf %71, %76 : vector<16x32xf32>
    %78 = vector.shape_cast %77 : vector<16x32xf32> to vector<2x8x32xf32>
    %c0_28 = arith.constant 0 : index
    %c0_29 = arith.constant 0 : index
    %79 = vector.load %arg6[%c0_28, %c0_29] : memref<32x96xf32, #tpu.memory_space<vmem>>, vector<32x96xf32>
    %c0_30 = arith.constant 0 : index
    %c0_31 = arith.constant 0 : index
    %80 = vector.load %arg7[%c0_30, %c0_31] : memref<1x96xf32, #tpu.memory_space<vmem>>, vector<1x96xf32>
    %c0_32 = arith.constant 0 : index
    %c0_33 = arith.constant 0 : index
    %81 = vector.load %arg8[%c0_32, %c0_33] : memref<32x32xf32, #tpu.memory_space<vmem>>, vector<32x32xf32>
    %c0_34 = arith.constant 0 : index
    %c0_35 = arith.constant 0 : index
    %82 = vector.load %arg9[%c0_34, %c0_35] : memref<1x32xf32, #tpu.memory_space<vmem>>, vector<1x32xf32>
    %83 = vector.shape_cast %78 : vector<2x8x32xf32> to vector<16x32xf32>
    %cst_36 = arith.constant dense<0.000000e+00> : vector<16x96xf32>
    %84 = tpu.matmul %83, %79, %cst_36 {dimension_numbers = #tpu.dot_dimension_numbers<[1], [0], [0], [1], [0, 0, 1, 1], [], []>} : vector<16x32xf32>, vector<32x96xf32>, vector<16x96xf32> -> vector<16x96xf32>
    %85 = vector.broadcast %80 : vector<1x96xf32> to vector<16x96xf32>
    %86 = arith.addf %84, %85 : vector<16x96xf32>
    %87 = vector.shape_cast %86 : vector<16x96xf32> to vector<2x8x96xf32>
    %88 = vector.extract_strided_slice %87 {offsets = [0, 0, 0], sizes = [2, 8, 32], strides = [1, 1, 1]} : vector<2x8x96xf32> to vector<2x8x32xf32>
    %89 = vector.extract_strided_slice %87 {offsets = [0, 0, 32], sizes = [2, 8, 32], strides = [1, 1, 1]} : vector<2x8x96xf32> to vector<2x8x32xf32>
    %90 = vector.extract_strided_slice %87 {offsets = [0, 0, 64], sizes = [2, 8, 32], strides = [1, 1, 1]} : vector<2x8x96xf32> to vector<2x8x32xf32>
    %91 = vector.extract_strided_slice %88 {offsets = [0, 0, 0], sizes = [2, 8, 8], strides = [1, 1, 1]} : vector<2x8x32xf32> to vector<2x8x8xf32>
    %92 = vector.extract_strided_slice %89 {offsets = [0, 0, 0], sizes = [2, 8, 8], strides = [1, 1, 1]} : vector<2x8x32xf32> to vector<2x8x8xf32>
    "tpu.trace_start"() <{level = 10 : i32, message = "bqd,bkd->bqk"}> : () -> ()
    %cst_37 = arith.constant dense<0.000000e+00> : vector<2x8x8xf32>
    %93 = tpu.matmul %91, %92, %cst_37 {dimension_numbers = #tpu.dot_dimension_numbers<[2], [2], [1], [1], [0, 0, 0, 1, 1, 1], [0], [0]>} : vector<2x8x8xf32>, vector<2x8x8xf32>, vector<2x8x8xf32> -> vector<2x8x8xf32>
    "tpu.trace_stop"() : () -> ()
    %cst_38 = arith.constant dense<0xFF800000> : vector<2x8xf32>
    %94 = vector.multi_reduction <maximumf>, %93, %cst_38 [2] : vector<2x8x8xf32> to vector<2x8xf32>
    %95 = vector.shape_cast %94 : vector<2x8xf32> to vector<2x8x1xf32>
    %96 = vector.broadcast %95 : vector<2x8x1xf32> to vector<2x8x8xf32>
    %97 = arith.subf %93, %96 : vector<2x8x8xf32>
    %98 = math.exp %97 : vector<2x8x8xf32>
    %cst_39 = arith.constant dense<0.000000e+00> : vector<2x8xf32>
    %99 = vector.multi_reduction <add>, %98, %cst_39 [2] : vector<2x8x8xf32> to vector<2x8xf32>
    %100 = vector.shape_cast %99 : vector<2x8xf32> to vector<2x8x1xf32>
    %101 = vector.broadcast %100 : vector<2x8x1xf32> to vector<2x8x8xf32>
    %102 = arith.divf %98, %101 : vector<2x8x8xf32>
    %103 = vector.extract_strided_slice %90 {offsets = [0, 0, 0], sizes = [2, 8, 8], strides = [1, 1, 1]} : vector<2x8x32xf32> to vector<2x8x8xf32>
    "tpu.trace_start"() <{level = 10 : i32, message = "bqk,bkd->bqd"}> : () -> ()
    %cst_40 = arith.constant dense<0.000000e+00> : vector<2x8x8xf32>
    %104 = tpu.matmul %102, %103, %cst_40 {dimension_numbers = #tpu.dot_dimension_numbers<[2], [1], [1], [2], [0, 0, 0, 1, 1, 2], [0], [0]>} : vector<2x8x8xf32>, vector<2x8x8xf32>, vector<2x8x8xf32> -> vector<2x8x8xf32>
    "tpu.trace_stop"() : () -> ()
    %105 = vector.extract_strided_slice %88 {offsets = [0, 0, 8], sizes = [2, 8, 8], strides = [1, 1, 1]} : vector<2x8x32xf32> to vector<2x8x8xf32>
    %106 = vector.extract_strided_slice %89 {offsets = [0, 0, 8], sizes = [2, 8, 8], strides = [1, 1, 1]} : vector<2x8x32xf32> to vector<2x8x8xf32>
    "tpu.trace_start"() <{level = 10 : i32, message = "bqd,bkd->bqk"}> : () -> ()
    %cst_41 = arith.constant dense<0.000000e+00> : vector<2x8x8xf32>
    %107 = tpu.matmul %105, %106, %cst_41 {dimension_numbers = #tpu.dot_dimension_numbers<[2], [2], [1], [1], [0, 0, 0, 1, 1, 1], [0], [0]>} : vector<2x8x8xf32>, vector<2x8x8xf32>, vector<2x8x8xf32> -> vector<2x8x8xf32>
    "tpu.trace_stop"() : () -> ()
    %cst_42 = arith.constant dense<0xFF800000> : vector<2x8xf32>
    %108 = vector.multi_reduction <maximumf>, %107, %cst_42 [2] : vector<2x8x8xf32> to vector<2x8xf32>
    %109 = vector.shape_cast %108 : vector<2x8xf32> to vector<2x8x1xf32>
    %110 = vector.broadcast %109 : vector<2x8x1xf32> to vector<2x8x8xf32>
    %111 = arith.subf %107, %110 : vector<2x8x8xf32>
    %112 = math.exp %111 : vector<2x8x8xf32>
    %cst_43 = arith.constant dense<0.000000e+00> : vector<2x8xf32>
    %113 = vector.multi_reduction <add>, %112, %cst_43 [2] : vector<2x8x8xf32> to vector<2x8xf32>
    %114 = vector.shape_cast %113 : vector<2x8xf32> to vector<2x8x1xf32>
    %115 = vector.broadcast %114 : vector<2x8x1xf32> to vector<2x8x8xf32>
    %116 = arith.divf %112, %115 : vector<2x8x8xf32>
    %117 = vector.extract_strided_slice %90 {offsets = [0, 0, 8], sizes = [2, 8, 8], strides = [1, 1, 1]} : vector<2x8x32xf32> to vector<2x8x8xf32>
    "tpu.trace_start"() <{level = 10 : i32, message = "bqk,bkd->bqd"}> : () -> ()
    %cst_44 = arith.constant dense<0.000000e+00> : vector<2x8x8xf32>
    %118 = tpu.matmul %116, %117, %cst_44 {dimension_numbers = #tpu.dot_dimension_numbers<[2], [1], [1], [2], [0, 0, 0, 1, 1, 2], [0], [0]>} : vector<2x8x8xf32>, vector<2x8x8xf32>, vector<2x8x8xf32> -> vector<2x8x8xf32>
    "tpu.trace_stop"() : () -> ()
    %119 = vector.extract_strided_slice %88 {offsets = [0, 0, 16], sizes = [2, 8, 8], strides = [1, 1, 1]} : vector<2x8x32xf32> to vector<2x8x8xf32>
    %120 = vector.extract_strided_slice %89 {offsets = [0, 0, 16], sizes = [2, 8, 8], strides = [1, 1, 1]} : vector<2x8x32xf32> to vector<2x8x8xf32>
    "tpu.trace_start"() <{level = 10 : i32, message = "bqd,bkd->bqk"}> : () -> ()
    %cst_45 = arith.constant dense<0.000000e+00> : vector<2x8x8xf32>
    %121 = tpu.matmul %119, %120, %cst_45 {dimension_numbers = #tpu.dot_dimension_numbers<[2], [2], [1], [1], [0, 0, 0, 1, 1, 1], [0], [0]>} : vector<2x8x8xf32>, vector<2x8x8xf32>, vector<2x8x8xf32> -> vector<2x8x8xf32>
    "tpu.trace_stop"() : () -> ()
    %cst_46 = arith.constant dense<0xFF800000> : vector<2x8xf32>
    %122 = vector.multi_reduction <maximumf>, %121, %cst_46 [2] : vector<2x8x8xf32> to vector<2x8xf32>
    %123 = vector.shape_cast %122 : vector<2x8xf32> to vector<2x8x1xf32>
    %124 = vector.broadcast %123 : vector<2x8x1xf32> to vector<2x8x8xf32>
    %125 = arith.subf %121, %124 : vector<2x8x8xf32>
    %126 = math.exp %125 : vector<2x8x8xf32>
    %cst_47 = arith.constant dense<0.000000e+00> : vector<2x8xf32>
    %127 = vector.multi_reduction <add>, %126, %cst_47 [2] : vector<2x8x8xf32> to vector<2x8xf32>
    %128 = vector.shape_cast %127 : vector<2x8xf32> to vector<2x8x1xf32>
    %129 = vector.broadcast %128 : vector<2x8x1xf32> to vector<2x8x8xf32>
    %130 = arith.divf %126, %129 : vector<2x8x8xf32>
    %131 = vector.extract_strided_slice %90 {offsets = [0, 0, 16], sizes = [2, 8, 8], strides = [1, 1, 1]} : vector<2x8x32xf32> to vector<2x8x8xf32>
    "tpu.trace_start"() <{level = 10 : i32, message = "bqk,bkd->bqd"}> : () -> ()
    %cst_48 = arith.constant dense<0.000000e+00> : vector<2x8x8xf32>
    %132 = tpu.matmul %130, %131, %cst_48 {dimension_numbers = #tpu.dot_dimension_numbers<[2], [1], [1], [2], [0, 0, 0, 1, 1, 2], [0], [0]>} : vector<2x8x8xf32>, vector<2x8x8xf32>, vector<2x8x8xf32> -> vector<2x8x8xf32>
    "tpu.trace_stop"() : () -> ()
    %133 = vector.extract_strided_slice %88 {offsets = [0, 0, 24], sizes = [2, 8, 8], strides = [1, 1, 1]} : vector<2x8x32xf32> to vector<2x8x8xf32>
    %134 = vector.extract_strided_slice %89 {offsets = [0, 0, 24], sizes = [2, 8, 8], strides = [1, 1, 1]} : vector<2x8x32xf32> to vector<2x8x8xf32>
    "tpu.trace_start"() <{level = 10 : i32, message = "bqd,bkd->bqk"}> : () -> ()
    %cst_49 = arith.constant dense<0.000000e+00> : vector<2x8x8xf32>
    %135 = tpu.matmul %133, %134, %cst_49 {dimension_numbers = #tpu.dot_dimension_numbers<[2], [2], [1], [1], [0, 0, 0, 1, 1, 1], [0], [0]>} : vector<2x8x8xf32>, vector<2x8x8xf32>, vector<2x8x8xf32> -> vector<2x8x8xf32>
    "tpu.trace_stop"() : () -> ()
    %cst_50 = arith.constant dense<0xFF800000> : vector<2x8xf32>
    %136 = vector.multi_reduction <maximumf>, %135, %cst_50 [2] : vector<2x8x8xf32> to vector<2x8xf32>
    %137 = vector.shape_cast %136 : vector<2x8xf32> to vector<2x8x1xf32>
    %138 = vector.broadcast %137 : vector<2x8x1xf32> to vector<2x8x8xf32>
    %139 = arith.subf %135, %138 : vector<2x8x8xf32>
    %140 = math.exp %139 : vector<2x8x8xf32>
    %cst_51 = arith.constant dense<0.000000e+00> : vector<2x8xf32>
    %141 = vector.multi_reduction <add>, %140, %cst_51 [2] : vector<2x8x8xf32> to vector<2x8xf32>
    %142 = vector.shape_cast %141 : vector<2x8xf32> to vector<2x8x1xf32>
    %143 = vector.broadcast %142 : vector<2x8x1xf32> to vector<2x8x8xf32>
    %144 = arith.divf %140, %143 : vector<2x8x8xf32>
    %145 = vector.extract_strided_slice %90 {offsets = [0, 0, 24], sizes = [2, 8, 8], strides = [1, 1, 1]} : vector<2x8x32xf32> to vector<2x8x8xf32>
    "tpu.trace_start"() <{level = 10 : i32, message = "bqk,bkd->bqd"}> : () -> ()
    %cst_52 = arith.constant dense<0.000000e+00> : vector<2x8x8xf32>
    %146 = tpu.matmul %144, %145, %cst_52 {dimension_numbers = #tpu.dot_dimension_numbers<[2], [1], [1], [2], [0, 0, 0, 1, 1, 2], [0], [0]>} : vector<2x8x8xf32>, vector<2x8x8xf32>, vector<2x8x8xf32> -> vector<2x8x8xf32>
    "tpu.trace_stop"() : () -> ()
    %147 = tpu.concatenate %104, %118, %132, %146 in 2 : vector<2x8x8xf32>, vector<2x8x8xf32>, vector<2x8x8xf32>, vector<2x8x8xf32> -> vector<2x8x32xf32>
    %148 = arith.addf %88, %147 : vector<2x8x32xf32>
    %149 = vector.shape_cast %148 : vector<2x8x32xf32> to vector<16x32xf32>
    %cst_53 = arith.constant dense<0.000000e+00> : vector<16x32xf32>
    %150 = tpu.matmul %149, %81, %cst_53 {dimension_numbers = #tpu.dot_dimension_numbers<[1], [0], [0], [1], [0, 0, 1, 1], [], []>} : vector<16x32xf32>, vector<32x32xf32>, vector<16x32xf32> -> vector<16x32xf32>
    %151 = vector.broadcast %82 : vector<1x32xf32> to vector<16x32xf32>
    %152 = arith.addf %150, %151 : vector<16x32xf32>
    %cst_54 = arith.constant 0.000000e+00 : f32
    %153 = vector.broadcast %cst_54 : f32 to vector<16x32xf32>
    %154 = arith.maximumf %152, %153 : vector<16x32xf32>
    %155 = arith.addf %149, %154 : vector<16x32xf32>
    %156 = vector.shape_cast %155 : vector<16x32xf32> to vector<2x8x32xf32>
    %c0_55 = arith.constant 0 : index
    %c0_56 = arith.constant 0 : index
    %c0_57 = arith.constant 0 : index
    %157 = vector.load %arg10[%c0_55, %c0_56, %c0_57] : memref<1x2x32xf32, #tpu.memory_space<vmem>>, vector<1x2x32xf32>
    %c0_58 = arith.constant 0 : index
    %c0_59 = arith.constant 0 : index
    %158 = vector.load %arg11[%c0_58, %c0_59] : memref<32x64xf32, #tpu.memory_space<vmem>>, vector<32x64xf32>
    %c0_60 = arith.constant 0 : index
    %c0_61 = arith.constant 0 : index
    %159 = vector.load %arg12[%c0_60, %c0_61] : memref<1x64xf32, #tpu.memory_space<vmem>>, vector<1x64xf32>
    %c0_62 = arith.constant 0 : index
    %c0_63 = arith.constant 0 : index
    %160 = vector.load %arg13[%c0_62, %c0_63] : memref<32x32xf32, #tpu.memory_space<vmem>>, vector<32x32xf32>
    %c0_64 = arith.constant 0 : index
    %c0_65 = arith.constant 0 : index
    %161 = vector.load %arg14[%c0_64, %c0_65] : memref<1x32xf32, #tpu.memory_space<vmem>>, vector<1x32xf32>
    %162 = vector.shape_cast %156 : vector<2x8x32xf32> to vector<16x32xf32>
    %cst_66 = arith.constant dense<0.000000e+00> : vector<16x64xf32>
    %163 = tpu.matmul %162, %158, %cst_66 {dimension_numbers = #tpu.dot_dimension_numbers<[1], [0], [0], [1], [0, 0, 1, 1], [], []>} : vector<16x32xf32>, vector<32x64xf32>, vector<16x64xf32> -> vector<16x64xf32>
    %164 = vector.broadcast %159 : vector<1x64xf32> to vector<16x64xf32>
    %165 = arith.addf %163, %164 : vector<16x64xf32>
    %166 = vector.shape_cast %165 : vector<16x64xf32> to vector<2x8x64xf32>
    %167 = vector.shape_cast %157 : vector<1x2x32xf32> to vector<1x2x32xf32>
    %168 = vector.broadcast %167 : vector<1x2x32xf32> to vector<2x2x32xf32>
    %169 = vector.extract_strided_slice %166 {offsets = [0, 0, 0], sizes = [2, 8, 32], strides = [1, 1, 1]} : vector<2x8x64xf32> to vector<2x8x32xf32>
    %170 = vector.extract_strided_slice %166 {offsets = [0, 0, 32], sizes = [2, 8, 32], strides = [1, 1, 1]} : vector<2x8x64xf32> to vector<2x8x32xf32>
    %171 = vector.extract_strided_slice %168 {offsets = [0, 0, 0], sizes = [2, 2, 8], strides = [1, 1, 1]} : vector<2x2x32xf32> to vector<2x2x8xf32>
    %172 = vector.extract_strided_slice %169 {offsets = [0, 0, 0], sizes = [2, 8, 8], strides = [1, 1, 1]} : vector<2x8x32xf32> to vector<2x8x8xf32>
    "tpu.trace_start"() <{level = 10 : i32, message = "bqd,bkd->bqk"}> : () -> ()
    %cst_67 = arith.constant dense<0.000000e+00> : vector<2x2x8xf32>
    %173 = tpu.matmul %171, %172, %cst_67 {dimension_numbers = #tpu.dot_dimension_numbers<[2], [2], [1], [1], [0, 0, 0, 1, 1, 1], [0], [0]>} : vector<2x2x8xf32>, vector<2x8x8xf32>, vector<2x2x8xf32> -> vector<2x2x8xf32>
    "tpu.trace_stop"() : () -> ()
    %cst_68 = arith.constant dense<0xFF800000> : vector<2x2xf32>
    %174 = vector.multi_reduction <maximumf>, %173, %cst_68 [2] : vector<2x2x8xf32> to vector<2x2xf32>
    %175 = vector.shape_cast %174 : vector<2x2xf32> to vector<2x2x1xf32>
    %176 = vector.broadcast %175 : vector<2x2x1xf32> to vector<2x2x8xf32>
    %177 = arith.subf %173, %176 : vector<2x2x8xf32>
    %178 = math.exp %177 : vector<2x2x8xf32>
    %cst_69 = arith.constant dense<0.000000e+00> : vector<2x2xf32>
    %179 = vector.multi_reduction <add>, %178, %cst_69 [2] : vector<2x2x8xf32> to vector<2x2xf32>
    %180 = vector.shape_cast %179 : vector<2x2xf32> to vector<2x2x1xf32>
    %181 = vector.broadcast %180 : vector<2x2x1xf32> to vector<2x2x8xf32>
    %182 = arith.divf %178, %181 : vector<2x2x8xf32>
    %183 = vector.extract_strided_slice %170 {offsets = [0, 0, 0], sizes = [2, 8, 8], strides = [1, 1, 1]} : vector<2x8x32xf32> to vector<2x8x8xf32>
    "tpu.trace_start"() <{level = 10 : i32, message = "bqk,bkd->bqd"}> : () -> ()
    %cst_70 = arith.constant dense<0.000000e+00> : vector<2x2x8xf32>
    %184 = tpu.matmul %182, %183, %cst_70 {dimension_numbers = #tpu.dot_dimension_numbers<[2], [1], [1], [2], [0, 0, 0, 1, 1, 2], [0], [0]>} : vector<2x2x8xf32>, vector<2x8x8xf32>, vector<2x2x8xf32> -> vector<2x2x8xf32>
    "tpu.trace_stop"() : () -> ()
    %185 = vector.extract_strided_slice %168 {offsets = [0, 0, 8], sizes = [2, 2, 8], strides = [1, 1, 1]} : vector<2x2x32xf32> to vector<2x2x8xf32>
    %186 = vector.extract_strided_slice %169 {offsets = [0, 0, 8], sizes = [2, 8, 8], strides = [1, 1, 1]} : vector<2x8x32xf32> to vector<2x8x8xf32>
    "tpu.trace_start"() <{level = 10 : i32, message = "bqd,bkd->bqk"}> : () -> ()
    %cst_71 = arith.constant dense<0.000000e+00> : vector<2x2x8xf32>
    %187 = tpu.matmul %185, %186, %cst_71 {dimension_numbers = #tpu.dot_dimension_numbers<[2], [2], [1], [1], [0, 0, 0, 1, 1, 1], [0], [0]>} : vector<2x2x8xf32>, vector<2x8x8xf32>, vector<2x2x8xf32> -> vector<2x2x8xf32>
    "tpu.trace_stop"() : () -> ()
    %cst_72 = arith.constant dense<0xFF800000> : vector<2x2xf32>
    %188 = vector.multi_reduction <maximumf>, %187, %cst_72 [2] : vector<2x2x8xf32> to vector<2x2xf32>
    %189 = vector.shape_cast %188 : vector<2x2xf32> to vector<2x2x1xf32>
    %190 = vector.broadcast %189 : vector<2x2x1xf32> to vector<2x2x8xf32>
    %191 = arith.subf %187, %190 : vector<2x2x8xf32>
    %192 = math.exp %191 : vector<2x2x8xf32>
    %cst_73 = arith.constant dense<0.000000e+00> : vector<2x2xf32>
    %193 = vector.multi_reduction <add>, %192, %cst_73 [2] : vector<2x2x8xf32> to vector<2x2xf32>
    %194 = vector.shape_cast %193 : vector<2x2xf32> to vector<2x2x1xf32>
    %195 = vector.broadcast %194 : vector<2x2x1xf32> to vector<2x2x8xf32>
    %196 = arith.divf %192, %195 : vector<2x2x8xf32>
    %197 = vector.extract_strided_slice %170 {offsets = [0, 0, 8], sizes = [2, 8, 8], strides = [1, 1, 1]} : vector<2x8x32xf32> to vector<2x8x8xf32>
    "tpu.trace_start"() <{level = 10 : i32, message = "bqk,bkd->bqd"}> : () -> ()
    %cst_74 = arith.constant dense<0.000000e+00> : vector<2x2x8xf32>
    %198 = tpu.matmul %196, %197, %cst_74 {dimension_numbers = #tpu.dot_dimension_numbers<[2], [1], [1], [2], [0, 0, 0, 1, 1, 2], [0], [0]>} : vector<2x2x8xf32>, vector<2x8x8xf32>, vector<2x2x8xf32> -> vector<2x2x8xf32>
    "tpu.trace_stop"() : () -> ()
    %199 = vector.extract_strided_slice %168 {offsets = [0, 0, 16], sizes = [2, 2, 8], strides = [1, 1, 1]} : vector<2x2x32xf32> to vector<2x2x8xf32>
    %200 = vector.extract_strided_slice %169 {offsets = [0, 0, 16], sizes = [2, 8, 8], strides = [1, 1, 1]} : vector<2x8x32xf32> to vector<2x8x8xf32>
    "tpu.trace_start"() <{level = 10 : i32, message = "bqd,bkd->bqk"}> : () -> ()
    %cst_75 = arith.constant dense<0.000000e+00> : vector<2x2x8xf32>
    %201 = tpu.matmul %199, %200, %cst_75 {dimension_numbers = #tpu.dot_dimension_numbers<[2], [2], [1], [1], [0, 0, 0, 1, 1, 1], [0], [0]>} : vector<2x2x8xf32>, vector<2x8x8xf32>, vector<2x2x8xf32> -> vector<2x2x8xf32>
    "tpu.trace_stop"() : () -> ()
    %cst_76 = arith.constant dense<0xFF800000> : vector<2x2xf32>
    %202 = vector.multi_reduction <maximumf>, %201, %cst_76 [2] : vector<2x2x8xf32> to vector<2x2xf32>
    %203 = vector.shape_cast %202 : vector<2x2xf32> to vector<2x2x1xf32>
    %204 = vector.broadcast %203 : vector<2x2x1xf32> to vector<2x2x8xf32>
    %205 = arith.subf %201, %204 : vector<2x2x8xf32>
    %206 = math.exp %205 : vector<2x2x8xf32>
    %cst_77 = arith.constant dense<0.000000e+00> : vector<2x2xf32>
    %207 = vector.multi_reduction <add>, %206, %cst_77 [2] : vector<2x2x8xf32> to vector<2x2xf32>
    %208 = vector.shape_cast %207 : vector<2x2xf32> to vector<2x2x1xf32>
    %209 = vector.broadcast %208 : vector<2x2x1xf32> to vector<2x2x8xf32>
    %210 = arith.divf %206, %209 : vector<2x2x8xf32>
    %211 = vector.extract_strided_slice %170 {offsets = [0, 0, 16], sizes = [2, 8, 8], strides = [1, 1, 1]} : vector<2x8x32xf32> to vector<2x8x8xf32>
    "tpu.trace_start"() <{level = 10 : i32, message = "bqk,bkd->bqd"}> : () -> ()
    %cst_78 = arith.constant dense<0.000000e+00> : vector<2x2x8xf32>
    %212 = tpu.matmul %210, %211, %cst_78 {dimension_numbers = #tpu.dot_dimension_numbers<[2], [1], [1], [2], [0, 0, 0, 1, 1, 2], [0], [0]>} : vector<2x2x8xf32>, vector<2x8x8xf32>, vector<2x2x8xf32> -> vector<2x2x8xf32>
    "tpu.trace_stop"() : () -> ()
    %213 = vector.extract_strided_slice %168 {offsets = [0, 0, 24], sizes = [2, 2, 8], strides = [1, 1, 1]} : vector<2x2x32xf32> to vector<2x2x8xf32>
    %214 = vector.extract_strided_slice %169 {offsets = [0, 0, 24], sizes = [2, 8, 8], strides = [1, 1, 1]} : vector<2x8x32xf32> to vector<2x8x8xf32>
    "tpu.trace_start"() <{level = 10 : i32, message = "bqd,bkd->bqk"}> : () -> ()
    %cst_79 = arith.constant dense<0.000000e+00> : vector<2x2x8xf32>
    %215 = tpu.matmul %213, %214, %cst_79 {dimension_numbers = #tpu.dot_dimension_numbers<[2], [2], [1], [1], [0, 0, 0, 1, 1, 1], [0], [0]>} : vector<2x2x8xf32>, vector<2x8x8xf32>, vector<2x2x8xf32> -> vector<2x2x8xf32>
    "tpu.trace_stop"() : () -> ()
    %cst_80 = arith.constant dense<0xFF800000> : vector<2x2xf32>
    %216 = vector.multi_reduction <maximumf>, %215, %cst_80 [2] : vector<2x2x8xf32> to vector<2x2xf32>
    %217 = vector.shape_cast %216 : vector<2x2xf32> to vector<2x2x1xf32>
    %218 = vector.broadcast %217 : vector<2x2x1xf32> to vector<2x2x8xf32>
    %219 = arith.subf %215, %218 : vector<2x2x8xf32>
    %220 = math.exp %219 : vector<2x2x8xf32>
    %cst_81 = arith.constant dense<0.000000e+00> : vector<2x2xf32>
    %221 = vector.multi_reduction <add>, %220, %cst_81 [2] : vector<2x2x8xf32> to vector<2x2xf32>
    %222 = vector.shape_cast %221 : vector<2x2xf32> to vector<2x2x1xf32>
    %223 = vector.broadcast %222 : vector<2x2x1xf32> to vector<2x2x8xf32>
    %224 = arith.divf %220, %223 : vector<2x2x8xf32>
    %225 = vector.extract_strided_slice %170 {offsets = [0, 0, 24], sizes = [2, 8, 8], strides = [1, 1, 1]} : vector<2x8x32xf32> to vector<2x8x8xf32>
    "tpu.trace_start"() <{level = 10 : i32, message = "bqk,bkd->bqd"}> : () -> ()
    %cst_82 = arith.constant dense<0.000000e+00> : vector<2x2x8xf32>
    %226 = tpu.matmul %224, %225, %cst_82 {dimension_numbers = #tpu.dot_dimension_numbers<[2], [1], [1], [2], [0, 0, 0, 1, 1, 2], [0], [0]>} : vector<2x2x8xf32>, vector<2x8x8xf32>, vector<2x2x8xf32> -> vector<2x2x8xf32>
    "tpu.trace_stop"() : () -> ()
    %227 = tpu.concatenate %184, %198, %212, %226 in 2 : vector<2x2x8xf32>, vector<2x2x8xf32>, vector<2x2x8xf32>, vector<2x2x8xf32> -> vector<2x2x32xf32>
    %228 = arith.addf %168, %227 : vector<2x2x32xf32>
    %229 = vector.shape_cast %228 : vector<2x2x32xf32> to vector<4x32xf32>
    %cst_83 = arith.constant dense<0.000000e+00> : vector<4x32xf32>
    %230 = tpu.matmul %229, %160, %cst_83 {dimension_numbers = #tpu.dot_dimension_numbers<[1], [0], [0], [1], [0, 0, 1, 1], [], []>} : vector<4x32xf32>, vector<32x32xf32>, vector<4x32xf32> -> vector<4x32xf32>
    %231 = vector.broadcast %161 : vector<1x32xf32> to vector<4x32xf32>
    %232 = arith.addf %230, %231 : vector<4x32xf32>
    %cst_84 = arith.constant 0.000000e+00 : f32
    %233 = vector.broadcast %cst_84 : f32 to vector<4x32xf32>
    %234 = arith.maximumf %232, %233 : vector<4x32xf32>
    %235 = arith.addf %229, %234 : vector<4x32xf32>
    %236 = vector.shape_cast %235 : vector<4x32xf32> to vector<2x2x32xf32>
    %c0_85 = arith.constant 0 : index
    %c0_86 = arith.constant 0 : index
    %237 = vector.load %arg15[%c0_85, %c0_86] : memref<32x96xf32, #tpu.memory_space<vmem>>, vector<32x96xf32>
    %c0_87 = arith.constant 0 : index
    %c0_88 = arith.constant 0 : index
    %238 = vector.load %arg16[%c0_87, %c0_88] : memref<1x96xf32, #tpu.memory_space<vmem>>, vector<1x96xf32>
    %c0_89 = arith.constant 0 : index
    %c0_90 = arith.constant 0 : index
    %239 = vector.load %arg17[%c0_89, %c0_90] : memref<32x32xf32, #tpu.memory_space<vmem>>, vector<32x32xf32>
    %c0_91 = arith.constant 0 : index
    %c0_92 = arith.constant 0 : index
    %240 = vector.load %arg18[%c0_91, %c0_92] : memref<1x32xf32, #tpu.memory_space<vmem>>, vector<1x32xf32>
    %241 = vector.shape_cast %236 : vector<2x2x32xf32> to vector<4x32xf32>
    %cst_93 = arith.constant dense<0.000000e+00> : vector<4x96xf32>
    %242 = tpu.matmul %241, %237, %cst_93 {dimension_numbers = #tpu.dot_dimension_numbers<[1], [0], [0], [1], [0, 0, 1, 1], [], []>} : vector<4x32xf32>, vector<32x96xf32>, vector<4x96xf32> -> vector<4x96xf32>
    %243 = vector.broadcast %238 : vector<1x96xf32> to vector<4x96xf32>
    %244 = arith.addf %242, %243 : vector<4x96xf32>
    %245 = vector.shape_cast %244 : vector<4x96xf32> to vector<2x2x96xf32>
    %246 = vector.extract_strided_slice %245 {offsets = [0, 0, 0], sizes = [2, 2, 32], strides = [1, 1, 1]} : vector<2x2x96xf32> to vector<2x2x32xf32>
    %247 = vector.extract_strided_slice %245 {offsets = [0, 0, 32], sizes = [2, 2, 32], strides = [1, 1, 1]} : vector<2x2x96xf32> to vector<2x2x32xf32>
    %248 = vector.extract_strided_slice %245 {offsets = [0, 0, 64], sizes = [2, 2, 32], strides = [1, 1, 1]} : vector<2x2x96xf32> to vector<2x2x32xf32>
    %249 = vector.extract_strided_slice %246 {offsets = [0, 0, 0], sizes = [2, 2, 8], strides = [1, 1, 1]} : vector<2x2x32xf32> to vector<2x2x8xf32>
    %250 = vector.extract_strided_slice %247 {offsets = [0, 0, 0], sizes = [2, 2, 8], strides = [1, 1, 1]} : vector<2x2x32xf32> to vector<2x2x8xf32>
    "tpu.trace_start"() <{level = 10 : i32, message = "bqd,bkd->bqk"}> : () -> ()
    %cst_94 = arith.constant dense<0.000000e+00> : vector<2x2x2xf32>
    %251 = tpu.matmul %249, %250, %cst_94 {dimension_numbers = #tpu.dot_dimension_numbers<[2], [2], [1], [1], [0, 0, 0, 1, 1, 1], [0], [0]>} : vector<2x2x8xf32>, vector<2x2x8xf32>, vector<2x2x2xf32> -> vector<2x2x2xf32>
    "tpu.trace_stop"() : () -> ()
    %cst_95 = arith.constant dense<0xFF800000> : vector<2x2xf32>
    %252 = vector.multi_reduction <maximumf>, %251, %cst_95 [2] : vector<2x2x2xf32> to vector<2x2xf32>
    %253 = vector.shape_cast %252 : vector<2x2xf32> to vector<2x2x1xf32>
    %254 = vector.broadcast %253 : vector<2x2x1xf32> to vector<2x2x2xf32>
    %255 = arith.subf %251, %254 : vector<2x2x2xf32>
    %256 = math.exp %255 : vector<2x2x2xf32>
    %cst_96 = arith.constant dense<0.000000e+00> : vector<2x2xf32>
    %257 = vector.multi_reduction <add>, %256, %cst_96 [2] : vector<2x2x2xf32> to vector<2x2xf32>
    %258 = vector.shape_cast %257 : vector<2x2xf32> to vector<2x2x1xf32>
    %259 = vector.broadcast %258 : vector<2x2x1xf32> to vector<2x2x2xf32>
    %260 = arith.divf %256, %259 : vector<2x2x2xf32>
    %261 = vector.extract_strided_slice %248 {offsets = [0, 0, 0], sizes = [2, 2, 8], strides = [1, 1, 1]} : vector<2x2x32xf32> to vector<2x2x8xf32>
    "tpu.trace_start"() <{level = 10 : i32, message = "bqk,bkd->bqd"}> : () -> ()
    %cst_97 = arith.constant dense<0.000000e+00> : vector<2x2x8xf32>
    %262 = tpu.matmul %260, %261, %cst_97 {dimension_numbers = #tpu.dot_dimension_numbers<[2], [1], [1], [2], [0, 0, 0, 1, 1, 2], [0], [0]>} : vector<2x2x2xf32>, vector<2x2x8xf32>, vector<2x2x8xf32> -> vector<2x2x8xf32>
    "tpu.trace_stop"() : () -> ()
    %263 = vector.extract_strided_slice %246 {offsets = [0, 0, 8], sizes = [2, 2, 8], strides = [1, 1, 1]} : vector<2x2x32xf32> to vector<2x2x8xf32>
    %264 = vector.extract_strided_slice %247 {offsets = [0, 0, 8], sizes = [2, 2, 8], strides = [1, 1, 1]} : vector<2x2x32xf32> to vector<2x2x8xf32>
    "tpu.trace_start"() <{level = 10 : i32, message = "bqd,bkd->bqk"}> : () -> ()
    %cst_98 = arith.constant dense<0.000000e+00> : vector<2x2x2xf32>
    %265 = tpu.matmul %263, %264, %cst_98 {dimension_numbers = #tpu.dot_dimension_numbers<[2], [2], [1], [1], [0, 0, 0, 1, 1, 1], [0], [0]>} : vector<2x2x8xf32>, vector<2x2x8xf32>, vector<2x2x2xf32> -> vector<2x2x2xf32>
    "tpu.trace_stop"() : () -> ()
    %cst_99 = arith.constant dense<0xFF800000> : vector<2x2xf32>
    %266 = vector.multi_reduction <maximumf>, %265, %cst_99 [2] : vector<2x2x2xf32> to vector<2x2xf32>
    %267 = vector.shape_cast %266 : vector<2x2xf32> to vector<2x2x1xf32>
    %268 = vector.broadcast %267 : vector<2x2x1xf32> to vector<2x2x2xf32>
    %269 = arith.subf %265, %268 : vector<2x2x2xf32>
    %270 = math.exp %269 : vector<2x2x2xf32>
    %cst_100 = arith.constant dense<0.000000e+00> : vector<2x2xf32>
    %271 = vector.multi_reduction <add>, %270, %cst_100 [2] : vector<2x2x2xf32> to vector<2x2xf32>
    %272 = vector.shape_cast %271 : vector<2x2xf32> to vector<2x2x1xf32>
    %273 = vector.broadcast %272 : vector<2x2x1xf32> to vector<2x2x2xf32>
    %274 = arith.divf %270, %273 : vector<2x2x2xf32>
    %275 = vector.extract_strided_slice %248 {offsets = [0, 0, 8], sizes = [2, 2, 8], strides = [1, 1, 1]} : vector<2x2x32xf32> to vector<2x2x8xf32>
    "tpu.trace_start"() <{level = 10 : i32, message = "bqk,bkd->bqd"}> : () -> ()
    %cst_101 = arith.constant dense<0.000000e+00> : vector<2x2x8xf32>
    %276 = tpu.matmul %274, %275, %cst_101 {dimension_numbers = #tpu.dot_dimension_numbers<[2], [1], [1], [2], [0, 0, 0, 1, 1, 2], [0], [0]>} : vector<2x2x2xf32>, vector<2x2x8xf32>, vector<2x2x8xf32> -> vector<2x2x8xf32>
    "tpu.trace_stop"() : () -> ()
    %277 = vector.extract_strided_slice %246 {offsets = [0, 0, 16], sizes = [2, 2, 8], strides = [1, 1, 1]} : vector<2x2x32xf32> to vector<2x2x8xf32>
    %278 = vector.extract_strided_slice %247 {offsets = [0, 0, 16], sizes = [2, 2, 8], strides = [1, 1, 1]} : vector<2x2x32xf32> to vector<2x2x8xf32>
    "tpu.trace_start"() <{level = 10 : i32, message = "bqd,bkd->bqk"}> : () -> ()
    %cst_102 = arith.constant dense<0.000000e+00> : vector<2x2x2xf32>
    %279 = tpu.matmul %277, %278, %cst_102 {dimension_numbers = #tpu.dot_dimension_numbers<[2], [2], [1], [1], [0, 0, 0, 1, 1, 1], [0], [0]>} : vector<2x2x8xf32>, vector<2x2x8xf32>, vector<2x2x2xf32> -> vector<2x2x2xf32>
    "tpu.trace_stop"() : () -> ()
    %cst_103 = arith.constant dense<0xFF800000> : vector<2x2xf32>
    %280 = vector.multi_reduction <maximumf>, %279, %cst_103 [2] : vector<2x2x2xf32> to vector<2x2xf32>
    %281 = vector.shape_cast %280 : vector<2x2xf32> to vector<2x2x1xf32>
    %282 = vector.broadcast %281 : vector<2x2x1xf32> to vector<2x2x2xf32>
    %283 = arith.subf %279, %282 : vector<2x2x2xf32>
    %284 = math.exp %283 : vector<2x2x2xf32>
    %cst_104 = arith.constant dense<0.000000e+00> : vector<2x2xf32>
    %285 = vector.multi_reduction <add>, %284, %cst_104 [2] : vector<2x2x2xf32> to vector<2x2xf32>
    %286 = vector.shape_cast %285 : vector<2x2xf32> to vector<2x2x1xf32>
    %287 = vector.broadcast %286 : vector<2x2x1xf32> to vector<2x2x2xf32>
    %288 = arith.divf %284, %287 : vector<2x2x2xf32>
    %289 = vector.extract_strided_slice %248 {offsets = [0, 0, 16], sizes = [2, 2, 8], strides = [1, 1, 1]} : vector<2x2x32xf32> to vector<2x2x8xf32>
    "tpu.trace_start"() <{level = 10 : i32, message = "bqk,bkd->bqd"}> : () -> ()
    %cst_105 = arith.constant dense<0.000000e+00> : vector<2x2x8xf32>
    %290 = tpu.matmul %288, %289, %cst_105 {dimension_numbers = #tpu.dot_dimension_numbers<[2], [1], [1], [2], [0, 0, 0, 1, 1, 2], [0], [0]>} : vector<2x2x2xf32>, vector<2x2x8xf32>, vector<2x2x8xf32> -> vector<2x2x8xf32>
    "tpu.trace_stop"() : () -> ()
    %291 = vector.extract_strided_slice %246 {offsets = [0, 0, 24], sizes = [2, 2, 8], strides = [1, 1, 1]} : vector<2x2x32xf32> to vector<2x2x8xf32>
    %292 = vector.extract_strided_slice %247 {offsets = [0, 0, 24], sizes = [2, 2, 8], strides = [1, 1, 1]} : vector<2x2x32xf32> to vector<2x2x8xf32>
    "tpu.trace_start"() <{level = 10 : i32, message = "bqd,bkd->bqk"}> : () -> ()
    %cst_106 = arith.constant dense<0.000000e+00> : vector<2x2x2xf32>
    %293 = tpu.matmul %291, %292, %cst_106 {dimension_numbers = #tpu.dot_dimension_numbers<[2], [2], [1], [1], [0, 0, 0, 1, 1, 1], [0], [0]>} : vector<2x2x8xf32>, vector<2x2x8xf32>, vector<2x2x2xf32> -> vector<2x2x2xf32>
    "tpu.trace_stop"() : () -> ()
    %cst_107 = arith.constant dense<0xFF800000> : vector<2x2xf32>
    %294 = vector.multi_reduction <maximumf>, %293, %cst_107 [2] : vector<2x2x2xf32> to vector<2x2xf32>
    %295 = vector.shape_cast %294 : vector<2x2xf32> to vector<2x2x1xf32>
    %296 = vector.broadcast %295 : vector<2x2x1xf32> to vector<2x2x2xf32>
    %297 = arith.subf %293, %296 : vector<2x2x2xf32>
    %298 = math.exp %297 : vector<2x2x2xf32>
    %cst_108 = arith.constant dense<0.000000e+00> : vector<2x2xf32>
    %299 = vector.multi_reduction <add>, %298, %cst_108 [2] : vector<2x2x2xf32> to vector<2x2xf32>
    %300 = vector.shape_cast %299 : vector<2x2xf32> to vector<2x2x1xf32>
    %301 = vector.broadcast %300 : vector<2x2x1xf32> to vector<2x2x2xf32>
    %302 = arith.divf %298, %301 : vector<2x2x2xf32>
    %303 = vector.extract_strided_slice %248 {offsets = [0, 0, 24], sizes = [2, 2, 8], strides = [1, 1, 1]} : vector<2x2x32xf32> to vector<2x2x8xf32>
    "tpu.trace_start"() <{level = 10 : i32, message = "bqk,bkd->bqd"}> : () -> ()
    %cst_109 = arith.constant dense<0.000000e+00> : vector<2x2x8xf32>
    %304 = tpu.matmul %302, %303, %cst_109 {dimension_numbers = #tpu.dot_dimension_numbers<[2], [1], [1], [2], [0, 0, 0, 1, 1, 2], [0], [0]>} : vector<2x2x2xf32>, vector<2x2x8xf32>, vector<2x2x8xf32> -> vector<2x2x8xf32>
    "tpu.trace_stop"() : () -> ()
    %305 = tpu.concatenate %262, %276, %290, %304 in 2 : vector<2x2x8xf32>, vector<2x2x8xf32>, vector<2x2x8xf32>, vector<2x2x8xf32> -> vector<2x2x32xf32>
    %306 = arith.addf %246, %305 : vector<2x2x32xf32>
    %307 = vector.shape_cast %306 : vector<2x2x32xf32> to vector<4x32xf32>
    %cst_110 = arith.constant dense<0.000000e+00> : vector<4x32xf32>
    %308 = tpu.matmul %307, %239, %cst_110 {dimension_numbers = #tpu.dot_dimension_numbers<[1], [0], [0], [1], [0, 0, 1, 1], [], []>} : vector<4x32xf32>, vector<32x32xf32>, vector<4x32xf32> -> vector<4x32xf32>
    %309 = vector.broadcast %240 : vector<1x32xf32> to vector<4x32xf32>
    %310 = arith.addf %308, %309 : vector<4x32xf32>
    %cst_111 = arith.constant 0.000000e+00 : f32
    %311 = vector.broadcast %cst_111 : f32 to vector<4x32xf32>
    %312 = arith.maximumf %310, %311 : vector<4x32xf32>
    %313 = arith.addf %307, %312 : vector<4x32xf32>
    %314 = vector.shape_cast %313 : vector<4x32xf32> to vector<2x2x32xf32>
    %c0_112 = arith.constant 0 : index
    %c0_113 = arith.constant 0 : index
    %315 = vector.load %arg19[%c0_112, %c0_113] : memref<32x128xf32, #tpu.memory_space<vmem>>, vector<32x128xf32>
    %c0_114 = arith.constant 0 : index
    %c0_115 = arith.constant 0 : index
    %316 = vector.load %arg20[%c0_114, %c0_115] : memref<1x128xf32, #tpu.memory_space<vmem>>, vector<1x128xf32>
    %317 = vector.shape_cast %314 : vector<2x2x32xf32> to vector<4x32xf32>
    %cst_116 = arith.constant dense<0.000000e+00> : vector<4x128xf32>
    %318 = tpu.matmul %317, %315, %cst_116 {dimension_numbers = #tpu.dot_dimension_numbers<[1], [0], [0], [1], [0, 0, 1, 1], [], []>} : vector<4x32xf32>, vector<32x128xf32>, vector<4x128xf32> -> vector<4x128xf32>
    %319 = vector.broadcast %316 : vector<1x128xf32> to vector<4x128xf32>
    %320 = arith.addf %318, %319 : vector<4x128xf32>
    %321 = vector.shape_cast %320 : vector<4x128xf32> to vector<2x2x128xf32>
    %c0_117 = arith.constant 0 : index
    %c0_118 = arith.constant 0 : index
    %c0_119 = arith.constant 0 : index
    %322 = vector.load %arg21[%c0_117, %c0_118, %c0_119] : memref<2x2x128xf32, #tpu.memory_space<vmem>>, vector<2x2x128xf32>
    tpu.vector_store %arg21[%c0_117, %c0_118, %c0_119], %321 {strides = array<i32>} : memref<2x2x128xf32, #tpu.memory_space<vmem>>, vector<2x2x128xf32>,
    return
  }
  func.func @transform_0(%arg0: i32) -> (i32, i32, i32) {
    %c0_i32 = arith.constant 0 : i32
    %c0_i32_0 = arith.constant 0 : i32
    %c0_i32_1 = arith.constant 0 : i32
    return %arg0, %c0_i32, %c0_i32_0 : i32, i32, i32
  }
  func.func @transform_1(%arg0: i32) -> (i32, i32) {
    %c0_i32 = arith.constant 0 : i32
    %c0_i32_0 = arith.constant 0 : i32
    %c0_i32_1 = arith.constant 0 : i32
    return %c0_i32, %c0_i32_0 : i32, i32
  }
  func.func @transform_2(%arg0: i32) -> (i32, i32) {
    %c0_i32 = arith.constant 0 : i32
    %c0_i32_0 = arith.constant 0 : i32
    %c0_i32_1 = arith.constant 0 : i32
    return %c0_i32, %c0_i32_0 : i32, i32
  }
  func.func @transform_3(%arg0: i32) -> (i32, i32) {
    %c0_i32 = arith.constant 0 : i32
    %c0_i32_0 = arith.constant 0 : i32
    %c0_i32_1 = arith.constant 0 : i32
    return %c0_i32, %c0_i32_0 : i32, i32
  }
  func.func @transform_4(%arg0: i32) -> (i32, i32) {
    %c0_i32 = arith.constant 0 : i32
    %c0_i32_0 = arith.constant 0 : i32
    %c0_i32_1 = arith.constant 0 : i32
    return %c0_i32, %c0_i32_0 : i32, i32
  }
  func.func @transform_5(%arg0: i32) -> (i32, i32) {
    %c0_i32 = arith.constant 0 : i32
    %c0_i32_0 = arith.constant 0 : i32
    %c0_i32_1 = arith.constant 0 : i32
    return %c0_i32, %c0_i32_0 : i32, i32
  }
  func.func @transform_6(%arg0: i32) -> (i32, i32) {
    %c0_i32 = arith.constant 0 : i32
    %c0_i32_0 = arith.constant 0 : i32
    %c0_i32_1 = arith.constant 0 : i32
    return %c0_i32, %c0_i32_0 : i32, i32
  }
  func.func @transform_7(%arg0: i32) -> (i32, i32) {
    %c0_i32 = arith.constant 0 : i32
    %c0_i32_0 = arith.constant 0 : i32
    %c0_i32_1 = arith.constant 0 : i32
    return %c0_i32, %c0_i32_0 : i32, i32
  }
  func.func @transform_8(%arg0: i32) -> (i32, i32) {
    %c0_i32 = arith.constant 0 : i32
    %c0_i32_0 = arith.constant 0 : i32
    %c0_i32_1 = arith.constant 0 : i32
    return %c0_i32, %c0_i32_0 : i32, i32
  }
  func.func @transform_9(%arg0: i32) -> (i32, i32, i32) {
    %c0_i32 = arith.constant 0 : i32
    %c0_i32_0 = arith.constant 0 : i32
    %c0_i32_1 = arith.constant 0 : i32
    %c0_i32_2 = arith.constant 0 : i32
    return %c0_i32, %c0_i32_0, %c0_i32_1 : i32, i32, i32
  }
  func.func @transform_10(%arg0: i32) -> (i32, i32) {
    %c0_i32 = arith.constant 0 : i32
    %c0_i32_0 = arith.constant 0 : i32
    %c0_i32_1 = arith.constant 0 : i32
    return %c0_i32, %c0_i32_0 : i32, i32
  }
  func.func @transform_11(%arg0: i32) -> (i32, i32) {
    %c0_i32 = arith.constant 0 : i32
    %c0_i32_0 = arith.constant 0 : i32
    %c0_i32_1 = arith.constant 0 : i32
    return %c0_i32, %c0_i32_0 : i32, i32
  }
  func.func @transform_12(%arg0: i32) -> (i32, i32) {
    %c0_i32 = arith.constant 0 : i32
    %c0_i32_0 = arith.constant 0 : i32
    %c0_i32_1 = arith.constant 0 : i32
    return %c0_i32, %c0_i32_0 : i32, i32
  }
  func.func @transform_13(%arg0: i32) -> (i32, i32) {
    %c0_i32 = arith.constant 0 : i32
    %c0_i32_0 = arith.constant 0 : i32
    %c0_i32_1 = arith.constant 0 : i32
    return %c0_i32, %c0_i32_0 : i32, i32
  }
  func.func @transform_14(%arg0: i32) -> (i32, i32) {
    %c0_i32 = arith.constant 0 : i32
    %c0_i32_0 = arith.constant 0 : i32
    %c0_i32_1 = arith.constant 0 : i32
    return %c0_i32, %c0_i32_0 : i32, i32
  }
  func.func @transform_15(%arg0: i32) -> (i32, i32) {
    %c0_i32 = arith.constant 0 : i32
    %c0_i32_0 = arith.constant 0 : i32
    %c0_i32_1 = arith.constant 0 : i32
    return %c0_i32, %c0_i32_0 : i32, i32
  }
  func.func @transform_16(%arg0: i32) -> (i32, i32) {
    %c0_i32 = arith.constant 0 : i32
    %c0_i32_0 = arith.constant 0 : i32
    %c0_i32_1 = arith.constant 0 : i32
    return %c0_i32, %c0_i32_0 : i32, i32
  }
  func.func @transform_17(%arg0: i32) -> (i32, i32) {
    %c0_i32 = arith.constant 0 : i32
    %c0_i32_0 = arith.constant 0 : i32
    %c0_i32_1 = arith.constant 0 : i32
    return %c0_i32, %c0_i32_0 : i32, i32
  }
  func.func @transform_18(%arg0: i32) -> (i32, i32) {
    %c0_i32 = arith.constant 0 : i32
    %c0_i32_0 = arith.constant 0 : i32
    %c0_i32_1 = arith.constant 0 : i32
    return %c0_i32, %c0_i32_0 : i32, i32
  }
  func.func @transform_19(%arg0: i32) -> (i32, i32) {
    %c0_i32 = arith.constant 0 : i32
    %c0_i32_0 = arith.constant 0 : i32
    %c0_i32_1 = arith.constant 0 : i32
    return %c0_i32, %c0_i32_0 : i32, i32
  }
  func.func @transform_20(%arg0: i32) -> (i32, i32, i32) {
    %c0_i32 = arith.constant 0 : i32
    %c0_i32_0 = arith.constant 0 : i32
    %c0_i32_1 = arith.constant 0 : i32
    return %arg0, %c0_i32, %c0_i32_0 : i32, i32, i32
  }
}

</mosaic_0001>

<bundles_post_ra>
// kernel: fwd.1
= control target key start
LH: loop header
LB: loop body
LE: loop exit
PB: predicated region body
PF: predicated region fallthrough
CT: control target
= control target key end

     0   :  { %s4899_s0 = inlined_call_operand.hbm [shape: f32[2,8,16], index: 0, kind: input, shape index: {}]   ;;  %s4900_s1 = inlined_call_operand.hbm [shape: f32[16,96], index: 1, kind: input, shape index: {}]   ;;  %s4901_s2 = inlined_call_operand.hbm [shape: f32[1,96], index: 2, kind: input, shape index: {}]   ;;  %s4902_s3 = inlined_call_operand.hbm [shape: f32[32,32], index: 3, kind: input, shape index: {}]   ;;  %s4903_s4 = inlined_call_operand.hbm [shape: f32[1,32], index: 4, kind: input, shape index: {}]   ;;  %s4904_s5 = inlined_call_operand.hbm [shape: f32[32,96], index: 5, kind: input, shape index: {}]   ;;  %s4905_s6 = inlined_call_operand.hbm [shape: f32[1,96], index: 6, kind: input, shape index: {}]   ;;  %s4906_s7 = inlined_call_operand.hbm [shape: f32[32,32], index: 7, kind: input, shape index: {}]   ;;  %s4907_s8 = inlined_call_operand.hbm [shape: f32[1,32], index: 8, kind: input, shape index: {}]   ;;  %s4908_s9 = inlined_call_operand.vmem [shape: f32[1,2,32], index: 9, kind: input, shape index: {}]   ;;  %s4909_s10 = inlined_call_operand.hbm [shape: f32[32,64], index: 10, kind: input, shape index: {}]   ;;  %s4910_s11 = inlined_call_operand.vmem [shape: f32[1,64], index: 11, kind: input, shape index: {}]   ;;  %s4911_s12 = inlined_call_operand.hbm [shape: f32[32,32], index: 12, kind: input, shape index: {}]   ;;  %s4912_s13 = inlined_call_operand.vmem [shape: f32[1,32], index: 13, kind: input, shape index: {}]   ;;  %s4913_s14 = inlined_call_operand.hbm [shape: f32[32,96], index: 14, kind: input, shape index: {}]   ;;  %s4914_s15 = inlined_call_operand.vmem [shape: f32[1,96], index: 15, kind: input, shape index: {}]   ;;  %s4915_s16 = inlined_call_operand.hbm [shape: f32[32,32], index: 16, kind: input, shape index: {}]   ;;  %s4916_s17 = inlined_call_operand.vmem [shape: f32[1,32], index: 17, kind: input, shape index: {}]   ;;  %s4917_s18 = inlined_call_operand.hbm [shape: f32[32,128], index: 18, kind: input, shape index: {}]   ;;  %s4918_s19 = inlined_call_operand.vmem [shape: f32[1,128], index: 19, kind: input, shape index: {}]   ;;  %s4919_s20 = inlined_call_operand.hbm [shape: f32[2,2,128], index: 20, kind: output, shape index: {}]  }
   0x1   :  { %4920 = sst [smem:[#allocation35_spill]] %s4899_s0 }
   0x2   :  { %4921 = sst [smem:[#allocation36_spill]] %s4900_s1 }
   0x3   :  { %4922 = sst [smem:[#allocation37_spill]] %s4901_s2 }
   0x4   :  { %4923 = sst [smem:[#allocation38_spill]] %s4902_s3 }
   0x5   :  { %4924 = sst [smem:[#allocation39_spill]] %s4903_s4 }
   0x6   :  { %25 = vsyncpa [#allocation3], 0 }
   0x7   :  { %26 = vsyncpa [#allocation6], 0 }
   0x8   :  { %27 = vsyncpa [#allocation9], 0 }
   0x9   :  { %28 = vsyncpa [#allocation12], 0 }
   0xa   :  { %29 = vsyncpa [#allocation15], 0 }
   0xb   :  { %30 = vsyncpa [#allocation18], 0 }
   0xc   :  { %31 = vsyncpa [#allocation21], 0 }
   0xd   :  { %32 = vsyncpa [#allocation24], 0 }
   0xe   :  { %33 = vsyncpa [#allocation4], 0  ;;  %s4925_s23 = sld [smem:[#allocation36_spill]]  ;;  %s4002_s2 = smov [#allocation5]  }
   0xf   :  { %s53_s25 = sshll.u32 %s4002_s2, 4  ;;  %s4926_s27 = sld [smem:[#allocation38_spill]]  ;;  %s54_s25 = int_to_ptr.vmem [resolvable:$true] %s53_s25 }
  0x10   :  { %s4003_s4 = smov 128   ;;  %s4004_s29 = smov 8  }
  0x11   :  { %s4005_s30 = smov [#allocation8]   ;;  %s99_s22 = sshll.u32 %s4904_s5, 4  ;;  %s100_s22 = int_to_ptr.hbm [resolvable:$true] %s99_s22 }
  0x12   :  { %s77_s0 = sshll.u32 %s4005_s30, 4  ;;  %s123_s3 = sshll.u32 %s4906_s7, 4  ;;  %s78_s0 = int_to_ptr.vmem [resolvable:$true] %s77_s0  ;;  %s124_s3 = int_to_ptr.hbm [resolvable:$true] %s123_s3 }
  0x13   :  { %s4006_s26 = smov [#allocation11]   ;;  %s149_s21 = sshll.u32 %s4909_s10, 4  ;;  %s150_s21 = int_to_ptr.hbm [resolvable:$true] %s149_s21 }
  0x14   :  { %s51_s24 = sshll.u32 %s4925_s23, 4  ;;  %s4008_s1 = smov [#allocation17]   ;;  %s52_s24 = int_to_ptr.hbm [resolvable:$true] %s51_s24 }
  0x15   :  { %s75_s28 = sshll.u32 %s4926_s27, 4  ;;  %s101_s27 = sshll.u32 %s4006_s26, 4  ;;  %s76_s28 = int_to_ptr.hbm [resolvable:$true] %s75_s28  ;;  %s102_s27 = int_to_ptr.vmem [resolvable:$true] %s101_s27 }
  0x16   :  { %59 = dma.hbm_to_vmem [thread:$0]  %s52_s24, 256, %s54_s25, [#allocation6], %s4003_s4, %s4003_s4, %s4004_s29  }
  0x17   :  { %83 = dma.hbm_to_vmem [thread:$0]  %s76_s28, 512, %s78_s0, [#allocation9], %s4003_s4, %s4003_s4, %s4004_s29  }
  0x18   :  { %107 = dma.hbm_to_vmem [thread:$0]  %s100_s22, 512, %s102_s27, [#allocation12], %s4003_s4, %s4003_s4, %s4004_s29  }
  0x19   :  { %s4007_s24 = smov [#allocation14]   ;;  %s179_s0 = sshll.u32 %s4913_s14, 4  ;;  %s180_s0 = int_to_ptr.hbm [resolvable:$true] %s179_s0 }
  0x1a   :  { %s125_s5 = sshll.u32 %s4007_s24, 4  ;;  %s151_s23 = sshll.u32 %s4008_s1, 4  ;;  %s126_s5 = int_to_ptr.vmem [resolvable:$true] %s125_s5  ;;  %s152_s23 = int_to_ptr.vmem [resolvable:$true] %s151_s23 }
  0x1b   :  { %131 = dma.hbm_to_vmem [thread:$0]  %s124_s3, 512, %s126_s5, [#allocation15], %s4003_s4, %s4003_s4, %s4004_s29  }
  0x1c   :  { %157 = dma.hbm_to_vmem [thread:$0]  %s150_s21, 512, %s152_s23, [#allocation18], %s4003_s4, %s4003_s4, %s4004_s29  }
  0x1d   :  { %s4009_s22 = smov [#allocation20]   ;;  %s4927_s27 = sld [smem:[#allocation35_spill]] }
  0x1e   :  { %s181_s10 = sshll.u32 %s4009_s22, 4  ;;  %s4928_s5 = sld [smem:[#allocation37_spill]]  ;;  %s182_s10 = int_to_ptr.vmem [resolvable:$true] %s181_s10 }
  0x1f   :  { %187 = dma.hbm_to_vmem [thread:$0]  %s180_s0, 512, %s182_s10, [#allocation21], %s4003_s4, %s4003_s4, %s4004_s29  }
  0x20   :  { %s4010_s30 = smov [#allocation2]   ;;  %s4011_s21 = smov [#allocation7]  }
  0x21   :  { %s40_s7 = sshll.u32 %s4010_s30, 4  ;;  %s67_s28 = sshll.u32 %s4011_s21, 4  ;;  %s41_s7 = int_to_ptr.vmem [resolvable:$true] %s40_s7  ;;  %s68_s28 = int_to_ptr.vmem [resolvable:$true] %s67_s28 }
  0x22   :  { %s4929_s22 = sld [smem:[#allocation39_spill]]  ;;  %s113_s26 = sshll.u32 %s4905_s6, 4  ;;  %s114_s26 = int_to_ptr.hbm [resolvable:$true] %s113_s26 }
  0x23   :  { %s38_s24 = sshll.u32 %s4927_s27, 4  ;;  %s4012_s27 = smov [#allocation10]   ;;  %s39_s24 = int_to_ptr.hbm [resolvable:$true] %s38_s24 }
  0x24   :  { %s65_s25 = sshll.u32 %s4928_s5, 4  ;;  %s91_s14 = sshll.u32 %s4012_s27, 4  ;;  %s66_s25 = int_to_ptr.hbm [resolvable:$true] %s65_s25  ;;  %s92_s14 = int_to_ptr.vmem [resolvable:$true] %s91_s14 }
  0x25   :  { %46 = dma.hbm_to_vmem [thread:$0]  %s39_s24, 256, %s41_s7, [#allocation3], %s4003_s4, %s4003_s4, %s4004_s29  }
  0x26   :  { %70 = dma.hbm_to_vmem [thread:$0]  %s66_s25, 16, %s68_s28, [#allocation6]  }
  0x27   :  { %s4013_s3 = smov [#allocation13]   ;;  %s137_s7 = sshll.u32 %s4907_s8, 4  ;;  %s138_s7 = int_to_ptr.hbm [resolvable:$true] %s137_s7 }
  0x28   :  { %s89_s2 = sshll.u32 %s4929_s22, 4  ;;  %s115_s24 = sshll.u32 %s4013_s3, 4  ;;  %s90_s2 = int_to_ptr.hbm [resolvable:$true] %s89_s2  ;;  %s116_s24 = int_to_ptr.vmem [resolvable:$true] %s115_s24 }
  0x29   :  { %94 = dma.hbm_to_vmem [thread:$0]  %s90_s2, 16, %s92_s14, [#allocation9]  }
  0x2a   :  { %118 = dma.hbm_to_vmem [thread:$0]  %s114_s26, 16, %s116_s24, [#allocation12]  }
  0x2b   :  { %s164_s28 = sshll.u32 %s4911_s12, 4  ;;  %s4014_s1 = smov [#allocation16]   ;;  %s165_s28 = int_to_ptr.hbm [resolvable:$true] %s164_s28 }
  0x2c   :  { %s139_s6 = sshll.u32 %s4014_s1, 4  ;;  %s4015_s23 = smov [#allocation19]   ;;  %s140_s6 = int_to_ptr.vmem [resolvable:$true] %s139_s6 }
  0x2d   :  { %142 = dma.hbm_to_vmem [thread:$0]  %s138_s7, 16, %s140_s6, [#allocation15]  }
  0x2e   :  { %s166_s22 = sshll.u32 %s4015_s23, 4  ;;  %s194_s10 = sshll.u32 %s4915_s16, 4  ;;  %s167_s22 = int_to_ptr.vmem [resolvable:$true] %s166_s22  ;;  %s195_s10 = int_to_ptr.hbm [resolvable:$true] %s194_s10 }
  0x2f   :  { %172 = dma.hbm_to_vmem [thread:$0]  %s165_s28, 512, %s167_s22, [#allocation18], %s4003_s4, %s4003_s4, %s4004_s29  }
  0x30   :  { %s209_s12 = sshll.u32 %s4917_s18, 4  ;;  %s4016_s27 = smov [#allocation22]   ;;  %s210_s12 = int_to_ptr.hbm [resolvable:$true] %s209_s12 }
  0x31   :  { %s196_s14 = sshll.u32 %s4016_s27, 4  ;;  %s4017_s3 = smov [#allocation23]   ;;  %s197_s14 = int_to_ptr.vmem [resolvable:$true] %s196_s14 }
  0x32   :  { %202 = dma.hbm_to_vmem [thread:$0]  %s195_s10, 512, %s197_s14, [#allocation21], %s4003_s4, %s4003_s4, %s4004_s29  }
  0x33   :  { %s211_s16 = sshll.u32 %s4017_s3, 4  ;;  %s212_s16 = int_to_ptr.vmem [resolvable:$true] %s211_s16 }
  0x34   :  { %217 = dma.hbm_to_vmem [thread:$0]  %s210_s12, 512, %s212_s16, [#allocation24], %s4003_s4, %s4003_s4, %s4004_s29  }
  0x35   :  { %3984 = dma.done.wait [#allocation3], 256  }
  0x36   :  { %3985 = vsyncadd [#allocation3], 4294967040 }
  0x37   :  { %3986 = dma.done.wait [#allocation6], 272  }
  0x38   :  { %3987 = vsyncadd [#allocation6], 4294967024 }
  0x39   :  { %3988 = dma.done.wait [#allocation9], 528  }
  0x3a   :  { %3989 = vsyncadd [#allocation9], 4294966768 }
  0x3b   :  { %3990 = dma.done.wait [#allocation12], 528  }
  0x3c   :  { %3991 = vsyncadd [#allocation12], 4294966768 }
  0x3d   :  { %3992 = dma.done.wait [#allocation15], 528  }
  0x3e   :  { %3993 = vsyncadd [#allocation15], 4294966768 }
  0x3f   :  { %3994 = dma.done.wait [#allocation18], 1024  }
  0x40   :  { %3995 = vsyncadd [#allocation18], 4294966272 }
  0x41   :  { %3996 = dma.done.wait [#allocation21], 1024  }
  0x42   :  { %3997 = vsyncadd [#allocation21], 4294966272 }
  0x43   :  { %3998 = dma.done.wait [#allocation24], 512  }
  0x44   :  { %3999 = vsyncadd [#allocation24], 4294966784  ;;  %v279_v0 = vld [vmem:[#allocation5 + $0x8] sm:$0xff]  ;;  %v278_v1 = vld [vmem:[#allocation5] sm:$0xff]  ;;  %vm289_vm0 = vcmask 130048   ;;  %s4018_s18 = smov 80  }
  0x45   :  { %310 = vmatpush.msra.mxu0 %v279_v0  ;;  %v276_v2 = vld [vmem:[#allocation2] sm:$0xff]  ;;  %v277_v3 = vld [vmem:[#allocation2 + $0x8] sm:$0xff]  ;;  %s4019_s4 = smov 88   ;;  %s4020_s24 = smov 96   ;;  %vm322_vm1 = vcmask 64512  }
  0x46   :  { %v3487_v4 = vld [vmem:[#allocation7] ss:$0 sm:$0xff]  ;;  %s4021_s5 = smov 112   ;;  %s4022_s30 = smov 120  }
  0x47   :  { %311 = vmatpush.msra.mxu0 %v278_v1  ;;  %s4023_s7 = smov 104   ;;  %s4024_s21 = smov 72  }
  0x48   :  { %3317 = vmatmul.msk.f32.vlgmr.msra.gmra.mxu0 %vm289_vm0, %v276_v2  ;;  %s4025_s25 = smov 64   ;;  %s4026_s28 = smov 48  }
  0x49   :  { %s4027_s1 = smov 40   ;;  %s4028_s6 = smov 56  }
  0x4a   :  { %s4029_s23 = smov 16   ;;  %s4030_s22 = smov 24  }
  0x4b   :  { %s4031_s14 = smov [#allocation25]  }
  0x4c   :  { %s3295_s3 = sshll.u32 %s4031_s14, 4  ;;  %s3296_s3 = int_to_ptr.vmem [resolvable:$true] %s3295_s3 }
  0x50   :  { %3318 = vmatmul.msk.f32.gmra.mxu0 %vm289_vm0, %v277_v3 }
  0xc5   :  { %v313_v5 = vpop.f32.mrf.mxu0 }
  0xc6   :  { %v4213_v6 = vadd.f32 %v3487_v4, %v313_v5 }
  0xc8   :  { %632 = vrot.lane.b32.xlu2 %v4213_v6, %s4018_s18  ;;  %476 = vrot.lane.b32.xlu1 %v4213_v6, %s4019_s4 }
  0xc9   :  { %320 = vrot.lane.b32.xlu0 %v4213_v6, %s4020_s24 }
  0xcd   :  { %v316_v7 = vpop.f32.mrf.mxu0 }
  0xce   :  { %v4221_v8 = vadd.f32 %v3487_v4, %v316_v7 }
  0xd0   :  { %630 = vrot.lane.b32.xlu2 %v4213_v6, %s4021_s5  ;;  %474 = vrot.lane.b32.xlu1 %v4213_v6, %s4022_s30  ;;  %v3467_v37 = vpack.i.bf16 %v4221_v8, %v4213_v6 }
  0xd1   :  { %348 = vrot.lane.b32.xlu0 %v4221_v8, %s4020_s24 }
  0xd8   :  { %504 = vrot.lane.b32.xlu2 %v4221_v8, %s4019_s4  ;;  %786 = vrot.lane.b32.xlu1 %v4213_v6, %s4023_s7 }
  0xd9   :  { %788 = vrot.lane.b32.xlu0 %v4213_v6, %s4024_s21 }
  0xe0   :  { %658 = vrot.lane.b32.xlu2 %v4221_v8, %s4021_s5  ;;  %660 = vrot.lane.b32.xlu1 %v4221_v8, %s4018_s18 }
  0xe1   :  { %502 = vrot.lane.b32.xlu0 %v4221_v8, %s4022_s30 }
  0xe8   :  { %814 = vrot.lane.b32.xlu1 %v4221_v8, %s4023_s7 }
  0xe9   :  { %816 = vrot.lane.b32.xlu0 %v4221_v8, %s4024_s21 }
 0x122   :  { %v633_v9 = vpop.permute.xlu2 %632 }
 0x12a   :  { %v631_v10 = vpop.permute.xlu2 %630 }
 0x132   :  { %v505_v15 = vpop.permute.xlu2 %504 }
 0x13a   :  { %v477_v11 = vpop.permute.xlu1 %476  ;;  %v659_v20 = vpop.permute.xlu2 %658 }
 0x13b   :  { %v321_v12 = vpop.permute.xlu0 %320 }
 0x13c   :  { %3319 = vmatpush.xpose.msk.msra.mxu1 %vm322_vm1, %v321_v12 }
 0x13f   :  { %3320 = vmatmul.msk.f32.vlgmr.msra.gmra.mxu1 %vm322_vm1, %v4213_v6 }
 0x140   :  { %3325 = vmatpush.xpose.msk.msrb.mxu1 %vm322_vm1, %v477_v11 }
 0x142   :  { %v475_v13 = vpop.permute.xlu1 %474 }
 0x143   :  { %v349_v14 = vpop.permute.xlu0 %348 }
 0x144   :  { %3331 = vmatpush.xpose.msk.msra.mxu1 %vm322_vm1, %v633_v9  ;;  %3321 = vmatpush.xpose.msk.msra.mxu2 %vm322_vm1, %v349_v14 }
 0x147   :  { %3322 = vmatmul.msk.f32.vlgmr.msra.gmra.mxu2 %vm322_vm1, %v4221_v8  ;;  %3326 = vmatmul.msk.f32.vlgmr.msrb.gmra.mxu1 %vm322_vm1, %v475_v13 }
 0x148   :  { %3327 = vmatpush.xpose.msk.msrb.mxu2 %vm322_vm1, %v505_v15 }
 0x14a   :  { %v787_v16 = vpop.permute.xlu1 %786 }
 0x14b   :  { %v789_v17 = vpop.permute.xlu0 %788 }
 0x14c   :  { %3337 = vmatpush.xpose.msk.msrb.mxu1 %vm322_vm1, %v789_v17 }
 0x14f   :  { %3332 = vmatmul.msk.f32.vlgmr.msra.gmra.mxu1 %vm322_vm1, %v631_v10 }
 0x152   :  { %v661_v18 = vpop.permute.xlu1 %660 }
 0x153   :  { %v503_v19 = vpop.permute.xlu0 %502  ;;  %3333 = vmatpush.xpose.msk.msra.mxu2 %vm322_vm1, %v661_v18 }
 0x154   :  { %3328 = vmatmul.msk.f32.vlgmr.msrb.gmra.mxu2 %vm322_vm1, %v503_v19 }
 0x157   :  { %3338 = vmatmul.msk.f32.vlgmr.msrb.gmra.mxu1 %vm322_vm1, %v787_v16 }
 0x15a   :  { %v815_v22 = vpop.permute.xlu1 %814 }
 0x15b   :  { %v817_v21 = vpop.permute.xlu0 %816 }
 0x15c   :  { %3334 = vmatmul.msk.f32.vlgmr.msra.gmra.mxu2 %vm322_vm1, %v659_v20 }
 0x15d   :  { %3339 = vmatpush.xpose.msk.msrb.mxu2 %vm322_vm1, %v817_v21 }
 0x164   :  { %3340 = vmatmul.msk.f32.vlgmr.msrb.gmra.mxu2 %vm322_vm1, %v815_v22 }
 0x1bc   :  { %v344_v23 = vpop.f32.mrf.mxu1 }
 0x1bd   :  { %v374_v24 = vsel %vm322_vm1, %v344_v23, -inf }
 0x1be   :  { %375 = vmax.xlane.f32.xlu2 %v374_v24 }
 0x1c4   :  { %v499_v25 = vpop.f32.mrf.mxu1 }
 0x1c5   :  { %v530_v26 = vsel %vm322_vm1, %v499_v25, -inf }
 0x1c6   :  { %531 = vmax.xlane.f32.xlu1 %v530_v26 }
 0x1ca   :  { %v371_v27 = vpop.f32.mrf.mxu2 }
 0x1cb   :  { %v377_v28 = vsel %vm322_vm1, %v371_v27, -inf }
 0x1cc   :  { %v4266_v29 = vpop.f32.mrf.mxu1  ;;  %378 = vmax.xlane.f32.xlu0 %v377_v28 }
 0x1cd   :  { %v686_v30 = vsel %vm322_vm1, %v4266_v29, -inf }
 0x1ce   :  { %687 = vmax.xlane.f32.xlu2 %v686_v30 }
 0x1d4   :  { %v811_v31 = vpop.f32.mrf.mxu1 }
 0x1d5   :  { %v842_v32 = vsel %vm322_vm1, %v811_v31, -inf }
 0x1d6   :  { %843 = vmax.xlane.f32.xlu2 %v842_v32 }
 0x1d7   :  { %v527_v33 = vpop.f32.mrf.mxu2 }
 0x1d8   :  { %v533_v34 = vsel %vm322_vm1, %v527_v33, -inf }
 0x1d9   :  { %534 = vmax.xlane.f32.xlu0 %v533_v34 }
 0x1df   :  { %v683_v35 = vpop.f32.mrf.mxu2 }
 0x1e0   :  { %v689_v36 = vsel %vm322_vm1, %v683_v35, -inf }
 0x1e1   :  { %690 = vmax.xlane.f32.xlu1 %v689_v36 }
 0x1e7   :  { %v4276_v38 = vpop.f32.mrf.mxu2 }
 0x1e8   :  { %v845_v39 = vsel %vm322_vm1, %v4276_v38, -inf }
 0x1ed   :  { %3468 = vrot.lane.b32.xlu0 %v3467_v37, %s4025_s25 }
 0x217   :  { %846 = vmax.xlane.f32.xlu0 %v845_v39 }
 0x22b   :  { %734 = vrot.lane.b32.xlu0 %v4213_v6, %s4026_s28 }
 0x231   :  { %v376_v40 = vpop.xlane.xlu2 %375 }
 0x232   :  { %v380_v41 = vsub.f32 %v344_v23, %v376_v40 }
 0x233   :  { %890 = vrot.lane.b32.xlu0 %v4213_v6, %s4027_s1 }
 0x234   :  { %v382_v42 = vmul.f32 1.442695, %v380_v41 }
 0x236   :  { %3496 = vpow2.f32 %v382_v42 }
 0x239   :  { %v532_v43 = vpop.xlane.xlu1 %531 }
 0x23a   :  { %v536_v44 = vsub.f32 %v499_v25, %v532_v43 }
 0x23b   :  { %760 = vrot.lane.b32.xlu0 %v4221_v8, %s4026_s28 }
 0x23c   :  { %v4286_v45 = vpop.eup %3496  ;;  %v538_v46 = vmul.f32 1.442695, %v536_v44 }
 0x23d   :  { %v386_v47 = vsel %vm322_vm1, %v4286_v45, 0.0 }
 0x23e   :  { %3498 = vpow2.f32 %v538_v46  ;;  %387 = vadd.xlane.f32.xlu2 %v386_v47 }
 0x23f   :  { %v379_v48 = vpop.xlane.xlu0 %378 }
 0x240   :  { %v381_v49 = vsub.f32 %v371_v27, %v379_v48 }
 0x241   :  { %v688_v51 = vpop.xlane.xlu2 %687 }
 0x242   :  { %v384_v50 = vmul.f32 1.442695, %v381_v49  ;;  %v692_v12 = vsub.f32 %v4266_v29, %v688_v51 }
 0x244   :  { %v4290_v52 = vpop.eup %3498  ;;  %3500 = vpow2.f32 %v384_v50  ;;  %v694_v13 = vmul.f32 1.442695, %v692_v12 }
 0x245   :  { %v542_v53 = vsel %vm322_vm1, %v4290_v52, 0.0 }
 0x246   :  { %543 = vadd.xlane.f32.xlu2 %v542_v53 }
 0x249   :  { %v844_v56 = vpop.xlane.xlu2 %843 }
 0x24a   :  { %v4294_v54 = vpop.eup %3500  ;;  %v848_v59 = vsub.f32 %v811_v31, %v844_v56 }
 0x24b   :  { %v389_v55 = vsel %vm322_vm1, %v4294_v54, 0.0 }
 0x24c   :  { %390 = vadd.xlane.f32.xlu1 %v389_v55  ;;  %v535_v57 = vpop.xlane.xlu0 %534  ;;  %v850_v61 = vmul.f32 1.442695, %v848_v59 }
 0x24d   :  { %v537_v58 = vsub.f32 %v527_v33, %v535_v57 }
 0x24f   :  { %v540_v60 = vmul.f32 1.442695, %v537_v58 }
 0x251   :  { %3502 = vpow2.f32 %v540_v60 }
 0x252   :  { %3504 = vpow2.f32 %v850_v61 }
 0x254   :  { %v691_v62 = vpop.xlane.xlu1 %690 }
 0x255   :  { %v693_v0 = vsub.f32 %v683_v35, %v691_v62 }
 0x257   :  { %v4298_v63 = vpop.eup %3502  ;;  %v696_v2 = vmul.f32 1.442695, %v693_v0 }
 0x258   :  { %v545_v1 = vsel %vm322_vm1, %v4298_v63, 0.0  ;;  %v4302_v3 = vpop.eup %3504 }
 0x259   :  { %546 = vadd.xlane.f32.xlu2 %v545_v1  ;;  %3506 = vpow2.f32 %v696_v2  ;;  %v854_v5 = vsel %vm322_vm1, %v4302_v3, 0.0 }
 0x25a   :  { %3508 = vpow2.f32 %v694_v13 }
 0x25f   :  { %v3469_v4 = vpop.permute.xlu0 %3468  ;;  %v4306_v10 = vpop.eup %3506 }
 0x260   :  { %v3470_v7 = vunpack.i.l.bf16 %v3469_v4  ;;  %v3471_v9 = vunpack.i.h.bf16 %v3469_v4  ;;  %v701_v11 = vsel %vm322_vm1, %v4306_v10, 0.0  ;;  %v4313_v15 = vpop.eup %3508 }
 0x261   :  { %855 = vadd.xlane.f32.xlu2 %v854_v5  ;;  %v698_v18 = vsel %vm322_vm1, %v4313_v15, 0.0 }
 0x262   :  { %443 = vmatpush.msra.mxu3 %v3470_v7 }
 0x264   :  { %469 = vmatpush.msrb.mxu3 %v3471_v9 }
 0x265   :  { %578 = vrot.lane.b32.xlu1 %v4213_v6, %s4028_s6 }
 0x269   :  { %702 = vadd.xlane.f32.xlu2 %v701_v11 }
 0x28a   :  { %v847_v14 = vpop.xlane.xlu0 %846 }
 0x28b   :  { %v849_v16 = vsub.f32 %v4276_v38, %v847_v14 }
 0x28d   :  { %v852_v17 = vmul.f32 1.442695, %v849_v16 }
 0x28f   :  { %3510 = vpow2.f32 %v852_v17  ;;  %699 = vadd.xlane.f32.xlu1 %v698_v18 }
 0x295   :  { %v4318_v19 = vpop.eup %3510 }
 0x296   :  { %v857_v20 = vsel %vm322_vm1, %v4318_v19, 0.0 }
 0x297   :  { %858 = vadd.xlane.f32.xlu2 %v857_v20 }
 0x29d   :  { %v735_v51 = vpop.permute.xlu0 %734 }
 0x2a5   :  { %v891_v61 = vpop.permute.xlu0 %890 }
 0x2a8   :  { %604 = vrot.lane.b32.xlu1 %v4221_v8, %s4028_s6 }
 0x2af   :  { %916 = vrot.lane.b32.xlu2 %v4221_v8, %s4027_s1 }
 0x2b1   :  { %v388_v21 = vpop.xlane.xlu2 %387 }
 0x2b2   :  { %3512 = vrcp.f32 %v388_v21  ;;  %v403_v26 = vand.u32 2147483648, %v388_v21  ;;  %v401_v28 = vand.u32 2147483647, %v388_v21  ;;  %vm397_vm3 = vweird.f32 %v388_v21 }
 0x2b4   :  { %v404_v32 = vor.u32 1.1754944e-38, %v403_v26  ;;  %vm402_vm5 = vcmp.eq.f32.partialorder %v401_v28, 8.507059e+37 }
 0x2b8   :  { %v3513_v22 = vpop.eup %3512 }
 0x2b9   :  { %v393_v23 = vmul.f32 %v3513_v22, %v388_v21  ;;  %v544_v24 = vpop.xlane.xlu2 %543  ;;  %vm398_vm2 = vweird.f32 %v3513_v22 }
 0x2ba   :  { %3514 = vrcp.f32 %v544_v24  ;;  %vm399_vm4 = vmor %vm397_vm3, %vm398_vm2  ;;  %vm553_vm11 = vweird.f32 %v544_v24  ;;  %v557_v53 = vand.u32 2147483647, %v544_v24 }
 0x2bb   :  { %v394_v25 = vsub.f32 1.0, %v393_v23 }
 0x2bc   :  { %vm558_vm13 = vcmp.eq.f32.partialorder %v557_v53, 8.507059e+37 }
 0x2bd   :  { %v395_v27 = vmul.f32 %v3513_v22, %v394_v25 }
 0x2bf   :  { %v391_v29 = vpop.xlane.xlu1 %390  ;;  %v396_v30 = vadd.f32 %v3513_v22, %v395_v27 }
 0x2c0   :  { %v3515_v31 = vpop.eup %3514  ;;  %3516 = vrcp.f32 %v391_v29  ;;  %v418_v41 = vand.u32 2147483648, %v391_v29  ;;  %v416_v44 = vand.u32 2147483647, %v391_v29  ;;  %vm412_vm7 = vweird.f32 %v391_v29 }
 0x2c1   :  { %v400_v33 = vsel %vm399_vm4, %v3513_v22, %v396_v30  ;;  %v549_v35 = vmul.f32 %v3515_v31, %v544_v24  ;;  %vm554_vm9 = vweird.f32 %v3515_v31 }
 0x2c2   :  { %v405_v34 = vsel %vm402_vm5, %v404_v32, %v400_v33  ;;  %v419_v47 = vor.u32 1.1754944e-38, %v418_v41  ;;  %vm417_vm10 = vcmp.eq.f32.partialorder %v416_v44, 8.507059e+37  ;;  %vm555_vm12 = vmor %vm553_vm11, %vm554_vm9  ;;  %v1013_v33 = vld [vmem:[#allocation11 + $0x8] sm:$0xff] }
 0x2c3   :  { %v406_v36 = vmul.f32 %v4286_v45, %v405_v34  ;;  %v550_v38 = vsub.f32 1.0, %v549_v35  ;;  %v559_v45 = vand.u32 2147483648, %v544_v24 }
 0x2c5   :  { %3323 = vmatmul.msk.f32.vlgmr.msra.gmra.mxu3 %vm322_vm1, %v406_v36  ;;  %v551_v42 = vmul.f32 %v3515_v31, %v550_v38  ;;  %v560_v57 = vor.u32 1.1754944e-38, %v559_v45 }
 0x2c6   :  { %v3517_v37 = vpop.eup %3516 }
 0x2c7   :  { %v408_v39 = vmul.f32 %v3517_v37, %v391_v29  ;;  %vm413_vm6 = vweird.f32 %v3517_v37  ;;  %v552_v48 = vadd.f32 %v3515_v31, %v551_v42 }
 0x2c8   :  { %vm414_vm8 = vmor %vm412_vm7, %vm413_vm6 }
 0x2c9   :  { %v409_v40 = vsub.f32 1.0, %v408_v39  ;;  %v556_v56 = vsel %vm555_vm12, %v3515_v31, %v552_v48 }
 0x2ca   :  { %v561_v58 = vsel %vm558_vm13, %v560_v57, %v556_v56 }
 0x2cb   :  { %v410_v43 = vmul.f32 %v3517_v37, %v409_v40  ;;  %v562_v60 = vmul.f32 %v4290_v52, %v561_v58 }
 0x2cc   :  { %v547_v62 = vpop.xlane.xlu2 %546 }
 0x2cd   :  { %v411_v46 = vadd.f32 %v3517_v37, %v410_v43  ;;  %3518 = vrcp.f32 %v547_v62  ;;  %vm568_vm3 = vweird.f32 %v547_v62  ;;  %v572_v28 = vand.u32 2147483647, %v547_v62 }
 0x2ce   :  { %v574_v29 = vand.u32 2147483648, %v547_v62 }
 0x2cf   :  { %v415_v49 = vsel %vm414_vm8, %v3517_v37, %v411_v46 }
 0x2d0   :  { %v420_v50 = vsel %vm417_vm10, %v419_v47, %v415_v49  ;;  %v575_v41 = vor.u32 1.1754944e-38, %v574_v29  ;;  %vm573_vm10 = vcmp.eq.f32.partialorder %v572_v28, 8.507059e+37 }
 0x2d1   :  { %v421_v55 = vmul.f32 %v4294_v54, %v420_v50 }
 0x2d3   :  { %3324 = vmatmul.msk.f32.vlgmr.msrb.gmra.mxu3 %vm322_vm1, %v421_v55  ;;  %v3519_v1 = vpop.eup %3518 }
 0x2d4   :  { %v856_v0 = vpop.xlane.xlu2 %855  ;;  %v564_v5 = vmul.f32 %v3519_v1, %v547_v62  ;;  %vm569_vm15 = vweird.f32 %v3519_v1 }
 0x2d5   :  { %3520 = vrcp.f32 %v856_v0  ;;  %vm4345_vm7 = vmor %vm568_vm3, %vm569_vm15  ;;  %vm865_vm8 = vweird.f32 %v856_v0  ;;  %v869_v34 = vand.u32 2147483647, %v856_v0  ;;  %v871_v35 = vand.u32 2147483648, %v856_v0 }
 0x2d6   :  { %v565_v52 = vsub.f32 1.0, %v564_v5 }
 0x2d7   :  { %v579_v59 = vpop.permute.xlu1 %578  ;;  %v872_v43 = vor.u32 1.1754944e-38, %v871_v35  ;;  %vm870_vm11 = vcmp.eq.f32.partialorder %v869_v34, 8.507059e+37  ;;  %v3488_v34 = vld [vmem:[#allocation10] ss:$0 sm:$0xff] }
 0x2d8   :  { %599 = vmatpush.msra.mxu3 %v579_v59  ;;  %v566_v16 = vmul.f32 %v3519_v1, %v565_v52 }
 0x2da   :  { %755 = vmatpush.msrb.mxu3 %v735_v51  ;;  %v567_v24 = vadd.f32 %v3519_v1, %v566_v16  ;;  %v761_v51 = vpop.permute.xlu0 %760 }
 0x2db   :  { %3329 = vmatmul.msk.f32.vlgmr.msra.gmra.mxu3 %vm322_vm1, %v562_v60  ;;  %v3521_v4 = vpop.eup %3520 }
 0x2dc   :  { %911 = vmatpush.msra.mxu3 %v891_v61  ;;  %v4332_v54 = vpop.xlane.xlu2 %702  ;;  %v861_v7 = vmul.f32 %v3521_v4, %v856_v0  ;;  %vm866_vm5 = vweird.f32 %v3521_v4  ;;  %v571_v40 = vsel %vm4345_vm7, %v3519_v1, %v567_v24  ;;  %vm978_vm7 = vcmask 261120  }
 0x2dd   :  { %3522 = vrcp.f32 %v4332_v54  ;;  %vm867_vm9 = vmor %vm865_vm8, %vm866_vm5  ;;  %v576_v44 = vsel %vm573_vm10, %v575_v41, %v571_v40  ;;  %vm724_vm13 = vweird.f32 %v4332_v54  ;;  %v728_v49 = vand.u32 2147483647, %v4332_v54 }
 0x2de   :  { %v862_v12 = vsub.f32 1.0, %v861_v7  ;;  %v577_v50 = vmul.f32 %v4298_v63, %v576_v44 }
 0x2df   :  { %vm729_vm15 = vcmp.eq.f32.partialorder %v728_v49, 8.507059e+37 }
 0x2e0   :  { %v863_v21 = vmul.f32 %v3521_v4, %v862_v12  ;;  %v283_v12 = vld [vmem:[#allocation8 + $0x10] sm:$0xff] }
 0x2e2   :  { %v864_v31 = vadd.f32 %v3521_v4, %v863_v21 }
 0x2e3   :  { %v4335_v9 = vpop.eup %3522 }
 0x2e4   :  { %v720_v17 = vmul.f32 %v4335_v9, %v4332_v54  ;;  %v868_v42 = vsel %vm867_vm9, %v3521_v4, %v864_v31  ;;  %vm725_vm12 = vweird.f32 %v4335_v9  ;;  %v1015_v31 = vld [vmem:[#allocation11 + $0x18] sm:$0xff] }
 0x2e5   :  { %v873_v48 = vsel %vm870_vm11, %v872_v43, %v868_v42  ;;  %1043 = vmatpush.msra.mxu2 %v1015_v31  ;;  %v3489_v42 = vld [vmem:[#allocation13] ss:$0 sm:$0xff] }
 0x2e6   :  { %v721_v25 = vsub.f32 1.0, %v720_v17  ;;  %v874_v56 = vmul.f32 %v4302_v3, %v873_v48 }
 0x2e8   :  { %v722_v37 = vmul.f32 %v4335_v9, %v721_v25 }
 0x2ea   :  { %v723_v46 = vadd.f32 %v4335_v9, %v722_v37 }
 0x302   :  { %v700_v2 = vpop.xlane.xlu1 %699 }
 0x303   :  { %3524 = vrcp.f32 %v700_v2  ;;  %v715_v20 = vand.u32 2147483648, %v700_v2  ;;  %v713_v23 = vand.u32 2147483647, %v700_v2  ;;  %vm709_vm2 = vweird.f32 %v700_v2 }
 0x305   :  { %v716_v30 = vor.u32 1.1754944e-38, %v715_v20  ;;  %vm714_vm6 = vcmp.eq.f32.partialorder %v713_v23, 8.507059e+37 }
 0x309   :  { %v3525_v11 = vpop.eup %3524 }
 0x30a   :  { %v705_v13 = vmul.f32 %v3525_v11, %v700_v2  ;;  %v4337_v14 = vpop.xlane.xlu2 %858  ;;  %vm710_vm14 = vweird.f32 %v3525_v11 }
 0x30b   :  { %3526 = vrcp.f32 %v4337_v14  ;;  %vm711_vm4 = vmor %vm709_vm2, %vm710_vm14  ;;  %v886_v60 = vand.u32 2147483648, %v4337_v14  ;;  %vm880_vm3 = vweird.f32 %v4337_v14  ;;  %v884_v61 = vand.u32 2147483647, %v4337_v14 }
 0x30c   :  { %v706_v18 = vsub.f32 1.0, %v705_v13  ;;  %vm726_vm14 = vmor %vm724_vm13, %vm725_vm12  ;;  %v282_v13 = vld [vmem:[#allocation8 + $0x8] sm:$0xff] }
 0x30d   :  { %v727_v53 = vsel %vm726_vm14, %v4335_v9, %v723_v46  ;;  %v887_v0 = vor.u32 1.1754944e-38, %v886_v60  ;;  %vm885_vm5 = vcmp.eq.f32.partialorder %v884_v61, 8.507059e+37 }
 0x30e   :  { %v707_v22 = vmul.f32 %v3525_v11, %v706_v18 }
 0x310   :  { %v708_v26 = vadd.f32 %v3525_v11, %v707_v22 }
 0x311   :  { %v4342_v27 = vpop.eup %3526 }
 0x312   :  { %v712_v32 = vsel %vm711_vm4, %v3525_v11, %v708_v26  ;;  %v876_v38 = vmul.f32 %v4342_v27, %v4337_v14  ;;  %v917_v58 = vpop.permute.xlu2 %916  ;;  %vm881_vm2 = vweird.f32 %v4342_v27  ;;  %v284_v11 = vld [vmem:[#allocation8 + $0x18] sm:$0xff]  ;;  %v281_v14 = vld [vmem:[#allocation8] sm:$0xff] }
 0x313   :  { %v717_v36 = vsel %vm714_vm6, %v716_v30, %v712_v32  ;;  %vm882_vm4 = vmor %vm880_vm3, %vm881_vm2  ;;  %997 = vmatpush.msra.mxu1 %v284_v11  ;;  %vm970_vm6 = vcmask 195584   ;;  %v1014_v32 = vld [vmem:[#allocation11 + $0x10] sm:$0xff] }
 0x314   :  { %v718_v39 = vmul.f32 %v4313_v15, %v717_v36  ;;  %v877_v47 = vsub.f32 1.0, %v876_v38  ;;  %v730_v15 = vand.u32 2147483648, %v4332_v54  ;;  %1044 = vmatpush.msra.mxu2 %v1014_v32 }
 0x315   :  { %998 = vmatpush.msra.mxu1 %v283_v12 }
 0x316   :  { %3335 = vmatmul.msk.f32.vlgmr.msrb.gmra.mxu3 %vm322_vm1, %v718_v39  ;;  %v878_v55 = vmul.f32 %v4342_v27, %v877_v47  ;;  %v731_v57 = vor.u32 1.1754944e-38, %v730_v15  ;;  %1045 = vmatpush.msra.mxu2 %v1013_v33 }
 0x317   :  { %999 = vmatpush.msra.mxu1 %v282_v13 }
 0x318   :  { %v732_v59 = vsel %vm729_vm15, %v731_v57, %v727_v53  ;;  %v879_v63 = vadd.f32 %v4342_v27, %v878_v55 }
 0x319   :  { %v733_v3 = vmul.f32 %v4306_v10, %v732_v59  ;;  %1000 = vmatpush.msra.mxu1 %v281_v14 }
 0x31a   :  { %v605_v45 = vpop.permute.xlu1 %604  ;;  %v883_v62 = vsel %vm882_vm4, %v4342_v27, %v879_v63 }
 0x31b   :  { %625 = vmatpush.msrb.mxu0 %v605_v45  ;;  %v888_v54 = vsel %vm885_vm5, %v887_v0, %v883_v62 }
 0x31c   :  { %3330 = vmatmul.msk.f32.vlgmr.msrb.gmra.mxu0 %vm322_vm1, %v577_v50  ;;  %v889_v1 = vmul.f32 %v4318_v19, %v888_v54 }
 0x31d   :  { %781 = vmatpush.msra.mxu0 %v761_v51 }
 0x31e   :  { %3341 = vmatmul.msk.f32.vlgmr.msra.gmra.mxu3 %vm322_vm1, %v874_v56 }
 0x31f   :  { %937 = vmatpush.msrb.mxu0 %v917_v58 }
 0x324   :  { %3336 = vmatmul.msk.f32.vlgmr.msra.gmra.mxu0 %vm322_vm1, %v733_v3 }
 0x32c   :  { %3342 = vmatmul.msk.f32.vlgmr.msrb.gmra.mxu0 %vm322_vm1, %v889_v1 }
 0x348   :  { %v445_v2 = vpop.f32.mrf.mxu3 }
 0x356   :  { %v471_v4 = vpop.f32.mrf.mxu3 }
 0x35e   :  { %v601_v5 = vpop.f32.mrf.mxu3 }
 0x35f   :  { %944 = vrot.lane.b32.xlu1 %v601_v5, %s4004_s29 }
 0x399   :  { %v627_v7 = vpop.f32.mrf.mxu0  ;;  %v757_v9 = vpop.f32.mrf.mxu3 }
 0x39a   :  { %952 = vrot.lane.b32.xlu0 %v757_v9, %s4029_s23 }
 0x3a1   :  { %v783_v10 = vpop.f32.mrf.mxu0  ;;  %v913_v52 = vpop.f32.mrf.mxu3 }
 0x3a2   :  { %946 = vrot.lane.b32.xlu0 %v627_v7, %s4004_s29  ;;  %960 = vrot.lane.b32.xlu1 %v913_v52, %s4030_s22 }
 0x3a9   :  { %v939_v19 = vpop.f32.mrf.mxu0 }
 0x3aa   :  { %962 = vrot.lane.b32.xlu0 %v939_v19, %s4030_s22  ;;  %954 = vrot.lane.b32.xlu1 %v783_v10, %s4029_s23 }
 0x3d1   :  { %v945_v16 = vpop.permute.xlu1 %944 }
 0x3d2   :  { %v966_v18 = vsel %vm322_vm1, %v445_v2, %v945_v16 }
 0x40c   :  { %v953_v17 = vpop.permute.xlu0 %952 }
 0x40d   :  { %v968_v20 = vsel %vm289_vm0, %v966_v18, %v953_v17 }
 0x414   :  { %v947_v21 = vpop.permute.xlu0 %946  ;;  %v961_v22 = vpop.permute.xlu1 %960 }
 0x415   :  { %v971_v23 = vsel %vm970_vm6, %v968_v20, %v961_v22  ;;  %v967_v25 = vsel %vm322_vm1, %v471_v4, %v947_v21 }
 0x416   :  { %v973_v24 = vadd.f32 %v971_v23, %v4213_v6  ;;  %v1012_v6 = vld [vmem:[#allocation11] sm:$0xff] }
 0x417   :  { %1046 = vmatpush.msra.mxu2 %v1012_v6 }
 0x418   :  { %3343 = vmatmul.msk.f32.vlgmr.msra.gmra.mxu1 %vm978_vm7, %v973_v24 }
 0x41c   :  { %v963_v26 = vpop.permute.xlu0 %962  ;;  %v955_v27 = vpop.permute.xlu1 %954 }
 0x41d   :  { %v969_v28 = vsel %vm289_vm0, %v967_v25, %v955_v27 }
 0x41e   :  { %v972_v29 = vsel %vm970_vm6, %v969_v28, %v963_v26 }
 0x41f   :  { %v974_v30 = vadd.f32 %v972_v29, %v4221_v8 }
 0x421   :  { %3344 = vmatmul.msk.f32.gmra.mxu1 %vm978_vm7, %v974_v30 }
 0x495   :  { %v1002_v35 = vpop.f32.mrf.mxu1 }
 0x496   :  { %v1003_v36 = vadd.f32 %v3488_v34, %v1002_v35 }
 0x498   :  { %v1008_v37 = vmax.f32 %v1003_v36, 0.0 }
 0x49a   :  { %v1010_v38 = vadd.f32 %v1008_v37, %v973_v24 }
 0x49c   :  { %3345 = vmatmul.msk.f32.vlgmr.msra.gmra.mxu2 %vm978_vm7, %v1010_v38 }
 0x49e   :  { %v1005_v39 = vpop.f32.mrf.mxu1 }
 0x49f   :  { %v1006_v40 = vadd.f32 %v3488_v34, %v1005_v39 }
 0x4a1   :  { %v1009_v8 = vmax.f32 %v1006_v40, 0.0 }
 0x4a3   :  { %v1011_v41 = vadd.f32 %v1009_v8, %v974_v30 }
 0x4a5   :  { %3346 = vmatmul.msk.f32.gmra.mxu2 %vm978_vm7, %v1011_v41 }
 0x51f   :  { %v1048_v43 = vpop.f32.mrf.mxu2 }
 0x520   :  { %v4395_v44 = vadd.f32 %v3489_v42, %v1048_v43 }
 0x522   :  { %1208 = vrot.lane.b32.xlu0 %v4395_v44, %s4022_s30  ;;  %1210 = vrot.lane.b32.xlu1 %v4395_v44, %s4019_s4 }
 0x523   :  { %1055 = vrot.lane.b32.xlu2 %v4395_v44, %s4020_s24 }
 0x528   :  { %v1051_v46 = vpop.f32.mrf.mxu2 }
 0x529   :  { %v4403_v47 = vadd.f32 %v3489_v42, %v1051_v46 }
 0x52a   :  { %1366 = vrot.lane.b32.xlu0 %v4395_v44, %s4018_s18 }
 0x52b   :  { %1238 = vrot.lane.b32.xlu1 %v4403_v47, %s4019_s4  ;;  %1082 = vrot.lane.b32.xlu2 %v4403_v47, %s4020_s24  ;;  %v3472_v48 = vpack.i.bf16 %v4403_v47, %v4395_v44 }
 0x532   :  { %1394 = vrot.lane.b32.xlu0 %v4403_v47, %s4018_s18 }
 0x533   :  { %1364 = vrot.lane.b32.xlu1 %v4395_v44, %s4021_s5  ;;  %1236 = vrot.lane.b32.xlu2 %v4403_v47, %s4022_s30 }
 0x53a   :  { %1520 = vrot.lane.b32.xlu0 %v4395_v44, %s4023_s7 }
 0x53b   :  { %1392 = vrot.lane.b32.xlu1 %v4403_v47, %s4021_s5  ;;  %1522 = vrot.lane.b32.xlu2 %v4395_v44, %s4024_s21 }
 0x542   :  { %3473 = vrot.lane.b32.xlu0 %v3472_v48, %s4025_s25 }
 0x543   :  { %1548 = vrot.lane.b32.xlu1 %v4403_v47, %s4023_s7  ;;  %1550 = vrot.lane.b32.xlu2 %v4403_v47, %s4024_s21 }
 0x57d   :  { %v1056_v15 = vpop.permute.xlu2 %1055 }
 0x57e   :  { %3347 = vmatpush.xpose.msk.msrb.mxu3 %vm322_vm1, %v1056_v15 }
 0x581   :  { %3348 = vmatmul.msk.f32.vlgmr.msrb.gmra.mxu3 %vm322_vm1, %v4395_v44 }
 0x585   :  { %v1083_v49 = vpop.permute.xlu2 %1082 }
 0x586   :  { %3349 = vmatpush.xpose.msk.msra.mxu0 %vm322_vm1, %v1083_v49 }
 0x589   :  { %3350 = vmatmul.msk.f32.vlgmr.msra.gmra.mxu0 %vm322_vm1, %v4403_v47 }
 0x58d   :  { %v1237_v45 = vpop.permute.xlu2 %1236 }
 0x594   :  { %v1209_v50 = vpop.permute.xlu0 %1208  ;;  %v1211_v51 = vpop.permute.xlu1 %1210 }
 0x595   :  { %3353 = vmatpush.xpose.msk.msrb.mxu1 %vm322_vm1, %v1211_v51  ;;  %v1523_v53 = vpop.permute.xlu2 %1522 }
 0x598   :  { %3354 = vmatmul.msk.f32.vlgmr.msrb.gmra.mxu1 %vm322_vm1, %v1209_v50 }
 0x59c   :  { %v1367_v55 = vpop.permute.xlu0 %1366 }
 0x59d   :  { %3359 = vmatpush.xpose.msk.msra.mxu1 %vm322_vm1, %v1367_v55  ;;  %v1239_v56 = vpop.permute.xlu1 %1238  ;;  %v1551_v58 = vpop.permute.xlu2 %1550 }
 0x59e   :  { %3355 = vmatpush.xpose.msk.msrb.mxu2 %vm322_vm1, %v1239_v56 }
 0x5a1   :  { %3365 = vmatpush.xpose.msk.msrb.mxu1 %vm322_vm1, %v1523_v53  ;;  %3356 = vmatmul.msk.f32.vlgmr.msrb.gmra.mxu2 %vm322_vm1, %v1237_v45 }
 0x5a4   :  { %v1395_v57 = vpop.permute.xlu0 %1394 }
 0x5a5   :  { %3361 = vmatpush.xpose.msk.msra.mxu2 %vm322_vm1, %v1395_v57  ;;  %v1365_v59 = vpop.permute.xlu1 %1364 }
 0x5a6   :  { %3360 = vmatmul.msk.f32.vlgmr.msra.gmra.mxu1 %vm322_vm1, %v1365_v59 }
 0x5a9   :  { %3367 = vmatpush.xpose.msk.msrb.mxu2 %vm322_vm1, %v1551_v58 }
 0x5ac   :  { %v1521_v63 = vpop.permute.xlu0 %1520 }
 0x5ad   :  { %v1393_v60 = vpop.permute.xlu1 %1392 }
 0x5ae   :  { %3362 = vmatmul.msk.f32.vlgmr.msra.gmra.mxu2 %vm322_vm1, %v1393_v60  ;;  %3366 = vmatmul.msk.f32.vlgmr.msrb.gmra.mxu1 %vm322_vm1, %v1521_v63 }
 0x5b4   :  { %v3474_v61 = vpop.permute.xlu0 %3473 }
 0x5b5   :  { %v3476_v3 = vunpack.i.h.bf16 %v3474_v61  ;;  %v3475_v62 = vunpack.i.l.bf16 %v3474_v61  ;;  %v1549_v0 = vpop.permute.xlu1 %1548 }
 0x5b6   :  { %3368 = vmatmul.msk.f32.vlgmr.msrb.gmra.mxu2 %vm322_vm1, %v1549_v0 }
 0x5b7   :  { %1177 = vmatpush.msra.mxu3 %v3475_v62  ;;  %1203 = vmatpush.msrb.mxu0 %v3476_v3 }
 0x604   :  { %v1078_v54 = vpop.f32.mrf.mxu3 }
 0x605   :  { %v1108_v1 = vsel %vm322_vm1, %v1078_v54, -inf }
 0x606   :  { %1109 = vmax.xlane.f32.xlu0 %v1108_v1  ;;  %v1105_v2 = vpop.f32.mrf.mxu0 }
 0x607   :  { %v1111_v4 = vsel %vm322_vm1, %v1105_v2, -inf }
 0x608   :  { %1112 = vmax.xlane.f32.xlu1 %v1111_v4 }
 0x615   :  { %v1233_v5 = vpop.f32.mrf.mxu1 }
 0x616   :  { %v1264_v7 = vsel %vm322_vm1, %v1233_v5, -inf }
 0x617   :  { %1265 = vmax.xlane.f32.xlu2 %v1264_v7 }
 0x623   :  { %v1389_v9 = vpop.f32.mrf.mxu1 }
 0x624   :  { %v1261_v10 = vpop.f32.mrf.mxu2  ;;  %v1420_v52 = vsel %vm322_vm1, %v1389_v9, -inf }
 0x625   :  { %1421 = vmax.xlane.f32.xlu0 %v1420_v52  ;;  %v1267_v19 = vsel %vm322_vm1, %v1261_v10, -inf }
 0x626   :  { %1268 = vmax.xlane.f32.xlu2 %v1267_v19 }
 0x62b   :  { %v1545_v11 = vpop.f32.mrf.mxu1 }
 0x62c   :  { %v1576_v12 = vsel %vm322_vm1, %v1545_v11, -inf }
 0x62d   :  { %1577 = vmax.xlane.f32.xlu1 %v1576_v12 }
 0x631   :  { %v1417_v13 = vpop.f32.mrf.mxu2 }
 0x632   :  { %v1423_v14 = vsel %vm322_vm1, %v1417_v13, -inf }
 0x633   :  { %1424 = vmax.xlane.f32.xlu0 %v1423_v14 }
 0x639   :  { %v1573_v16 = vpop.f32.mrf.mxu2 }
 0x63a   :  { %v1579_v17 = vsel %vm322_vm1, %v1573_v16, -inf }
 0x63b   :  { %1580 = vmax.xlane.f32.xlu2 %v1579_v17 }
 0x647   :  { %1468 = vrot.lane.b32.xlu0 %v4395_v44, %s4026_s28 }
 0x653   :  { %1312 = vrot.lane.b32.xlu2 %v4395_v44, %s4028_s6 }
 0x679   :  { %v1110_v18 = vpop.xlane.xlu0 %1109 }
 0x67a   :  { %v1114_v20 = vsub.f32 %v1078_v54, %v1110_v18 }
 0x67b   :  { %v1113_v21 = vpop.xlane.xlu1 %1112 }
 0x67c   :  { %v1116_v22 = vmul.f32 1.442695, %v1114_v20  ;;  %v1115_v23 = vsub.f32 %v1105_v2, %v1113_v21 }
 0x67e   :  { %3528 = vpow2.f32 %v1116_v22  ;;  %v1118_v24 = vmul.f32 1.442695, %v1115_v23 }
 0x680   :  { %3530 = vpow2.f32 %v1118_v24 }
 0x684   :  { %v4460_v25 = vpop.eup %3528 }
 0x685   :  { %v1120_v26 = vsel %vm322_vm1, %v4460_v25, 0.0 }
 0x686   :  { %v4464_v27 = vpop.eup %3530  ;;  %1121 = vadd.xlane.f32.xlu1 %v1120_v26 }
 0x687   :  { %v1123_v28 = vsel %vm322_vm1, %v4464_v27, 0.0 }
 0x688   :  { %1124 = vadd.xlane.f32.xlu2 %v1123_v28 }
 0x68a   :  { %v1266_v29 = vpop.xlane.xlu2 %1265 }
 0x68b   :  { %v1270_v30 = vsub.f32 %v1233_v5, %v1266_v29 }
 0x68d   :  { %v1272_v31 = vmul.f32 1.442695, %v1270_v30 }
 0x68f   :  { %3532 = vpow2.f32 %v1272_v31 }
 0x695   :  { %v4468_v32 = vpop.eup %3532 }
 0x696   :  { %v1276_v33 = vsel %vm322_vm1, %v4468_v32, 0.0 }
 0x697   :  { %1277 = vadd.xlane.f32.xlu0 %v1276_v33 }
 0x698   :  { %v1422_v6 = vpop.xlane.xlu0 %1421 }
 0x699   :  { %v1426_v34 = vsub.f32 %v1389_v9, %v1422_v6  ;;  %v1269_v35 = vpop.xlane.xlu2 %1268 }
 0x69a   :  { %v1271_v36 = vsub.f32 %v1261_v10, %v1269_v35 }
 0x69b   :  { %v1428_v37 = vmul.f32 1.442695, %v1426_v34 }
 0x69c   :  { %v1274_v38 = vmul.f32 1.442695, %v1271_v36 }
 0x69d   :  { %3534 = vpow2.f32 %v1428_v37 }
 0x69e   :  { %3536 = vpow2.f32 %v1274_v38 }
 0x6a0   :  { %v1578_v39 = vpop.xlane.xlu1 %1577 }
 0x6a1   :  { %v1582_v40 = vsub.f32 %v1545_v11, %v1578_v39 }
 0x6a3   :  { %v4472_v8 = vpop.eup %3534  ;;  %v1584_v41 = vmul.f32 1.442695, %v1582_v40 }
 0x6a4   :  { %v4474_v42 = vpop.eup %3536  ;;  %v1432_v43 = vsel %vm322_vm1, %v4472_v8, 0.0 }
 0x6a5   :  { %3538 = vpow2.f32 %v1584_v41  ;;  %1433 = vadd.xlane.f32.xlu1 %v1432_v43  ;;  %v1279_v46 = vsel %vm322_vm1, %v4474_v42, 0.0 }
 0x6a6   :  { %v1425_v48 = vpop.xlane.xlu0 %1424  ;;  %1280 = vadd.xlane.f32.xlu2 %v1279_v46 }
 0x6a7   :  { %v1427_v15 = vsub.f32 %v1417_v13, %v1425_v48 }
 0x6a9   :  { %v1430_v49 = vmul.f32 1.442695, %v1427_v15 }
 0x6ab   :  { %v4480_v45 = vpop.eup %3538  ;;  %3540 = vpow2.f32 %v1430_v49  ;;  %1338 = vrot.lane.b32.xlu0 %v4403_v47, %s4028_s6 }
 0x6ac   :  { %v1588_v50 = vsel %vm322_vm1, %v4480_v45, 0.0 }
 0x6ad   :  { %1589 = vadd.xlane.f32.xlu1 %v1588_v50 }
 0x6ae   :  { %v1581_v51 = vpop.xlane.xlu2 %1580 }
 0x6af   :  { %v1583_v53 = vsub.f32 %v1573_v16, %v1581_v51 }
 0x6b1   :  { %v4486_v55 = vpop.eup %3540  ;;  %v1586_v56 = vmul.f32 1.442695, %v1583_v53 }
 0x6b2   :  { %v1435_v57 = vsel %vm322_vm1, %v4486_v55, 0.0 }
 0x6b3   :  { %3542 = vpow2.f32 %v1586_v56  ;;  %1650 = vrot.lane.b32.xlu0 %v4403_v47, %s4027_s1 }
 0x6b5   :  { %1436 = vadd.xlane.f32.xlu1 %v1435_v57 }
 0x6b6   :  { %v1313_v58 = vpop.permute.xlu2 %1312 }
 0x6b7   :  { %1333 = vmatpush.msrb.mxu3 %v1313_v58 }
 0x6b9   :  { %v4492_v59 = vpop.eup %3542  ;;  %v1469_v54 = vpop.permute.xlu0 %1468 }
 0x6ba   :  { %v1591_v63 = vsel %vm322_vm1, %v4492_v59, 0.0 }
 0x6bd   :  { %1592 = vadd.xlane.f32.xlu1 %v1591_v63 }
 0x6be   :  { %1494 = vrot.lane.b32.xlu2 %v4403_v47, %s4026_s28 }
 0x6d6   :  { %1624 = vrot.lane.b32.xlu1 %v4395_v44, %s4027_s1 }
 0x6f9   :  { %v1122_v60 = vpop.xlane.xlu1 %1121 }
 0x6fa   :  { %3544 = vrcp.f32 %v1122_v60  ;;  %v1137_v4 = vand.u32 2147483648, %v1122_v60  ;;  %v1135_v7 = vand.u32 2147483647, %v1122_v60  ;;  %vm1131_vm9 = vweird.f32 %v1122_v60 }
 0x6fb   :  { %v1125_v61 = vpop.xlane.xlu2 %1124 }
 0x6fc   :  { %3546 = vrcp.f32 %v1125_v61  ;;  %v1152_v10 = vand.u32 2147483648, %v1125_v61  ;;  %v1150_v11 = vand.u32 2147483647, %v1125_v61  ;;  %v1138_v12 = vor.u32 1.1754944e-38, %v1137_v4 }
 0x6fd   :  { %vm1136_vm12 = vcmp.eq.f32.partialorder %v1135_v7, 8.507059e+37  ;;  %vm1146_vm13 = vweird.f32 %v1125_v61 }
 0x6fe   :  { %v1153_v17 = vor.u32 1.1754944e-38, %v1152_v10  ;;  %vm1151_vm15 = vcmp.eq.f32.partialorder %v1150_v11, 8.507059e+37 }
 0x700   :  { %v3545_v3 = vpop.eup %3544 }
 0x701   :  { %v1127_v62 = vmul.f32 %v3545_v3, %v1122_v60  ;;  %vm1132_vm8 = vweird.f32 %v3545_v3 }
 0x702   :  { %v3547_v0 = vpop.eup %3546  ;;  %vm1133_vm11 = vmor %vm1131_vm9, %vm1132_vm8 }
 0x703   :  { %v1128_v1 = vsub.f32 1.0, %v1127_v62  ;;  %v1142_v2 = vmul.f32 %v3547_v0, %v1125_v61  ;;  %vm1147_vm10 = vweird.f32 %v3547_v0 }
 0x704   :  { %vm1148_vm14 = vmor %vm1146_vm13, %vm1147_vm10 }
 0x705   :  { %v1129_v5 = vmul.f32 %v3545_v3, %v1128_v1  ;;  %v1143_v9 = vsub.f32 1.0, %v1142_v2 }
 0x707   :  { %v1130_v52 = vadd.f32 %v3545_v3, %v1129_v5  ;;  %v1144_v19 = vmul.f32 %v3547_v0, %v1143_v9 }
 0x709   :  { %v1134_v13 = vsel %vm1133_vm11, %v3545_v3, %v1130_v52  ;;  %v1145_v14 = vadd.f32 %v3547_v0, %v1144_v19 }
 0x70a   :  { %v1139_v16 = vsel %vm1136_vm12, %v1138_v12, %v1134_v13  ;;  %v1278_v18 = vpop.xlane.xlu0 %1277 }
 0x70b   :  { %v1149_v20 = vsel %vm1148_vm14, %v3547_v0, %v1145_v14  ;;  %3548 = vrcp.f32 %v1278_v18  ;;  %v1140_v22 = vmul.f32 %v4460_v25, %v1139_v16  ;;  %v1293_v29 = vand.u32 2147483648, %v1278_v18 }
 0x70c   :  { %v1154_v21 = vsel %vm1151_vm15, %v1153_v17, %v1149_v20  ;;  %v1291_v31 = vand.u32 2147483647, %v1278_v18  ;;  %vm1287_vm3 = vweird.f32 %v1278_v18 }
 0x70d   :  { %v1155_v23 = vmul.f32 %v4464_v27, %v1154_v21  ;;  %3351 = vmatmul.msk.f32.vlgmr.msra.gmra.mxu3 %vm322_vm1, %v1140_v22  ;;  %v1294_v34 = vor.u32 1.1754944e-38, %v1293_v29 }
 0x70e   :  { %1489 = vmatpush.msra.mxu3 %v1469_v54  ;;  %vm1292_vm5 = vcmp.eq.f32.partialorder %v1291_v31, 8.507059e+37 }
 0x70f   :  { %3352 = vmatmul.msk.f32.vlgmr.msrb.gmra.mxu0 %vm322_vm1, %v1155_v23 }
 0x711   :  { %v3549_v24 = vpop.eup %3548 }
 0x712   :  { %v1283_v26 = vmul.f32 %v3549_v24, %v1278_v18  ;;  %vm1288_vm2 = vweird.f32 %v3549_v24 }
 0x713   :  { %vm1289_vm4 = vmor %vm1287_vm3, %vm1288_vm2 }
 0x714   :  { %v1284_v28 = vsub.f32 1.0, %v1283_v26 }
 0x716   :  { %v1285_v30 = vmul.f32 %v3549_v24, %v1284_v28 }
 0x718   :  { %v1286_v33 = vadd.f32 %v3549_v24, %v1285_v30  ;;  %v1434_v6 = vpop.xlane.xlu1 %1433 }
 0x719   :  { %3550 = vrcp.f32 %v1434_v6  ;;  %v1281_v25 = vpop.xlane.xlu2 %1280  ;;  %v1449_v15 = vand.u32 2147483648, %v1434_v6  ;;  %v1447_v51 = vand.u32 2147483647, %v1434_v6  ;;  %vm1443_vm10 = vweird.f32 %v1434_v6 }
 0x71a   :  { %v1290_v27 = vsel %vm1289_vm4, %v3549_v24, %v1286_v33  ;;  %3552 = vrcp.f32 %v1281_v25  ;;  %v1308_v53 = vand.u32 2147483648, %v1281_v25  ;;  %v1306_v56 = vand.u32 2147483647, %v1281_v25 }
 0x71b   :  { %v1295_v35 = vsel %vm1292_vm5, %v1294_v34, %v1290_v27  ;;  %v1450_v58 = vor.u32 1.1754944e-38, %v1449_v15  ;;  %vm1302_vm12 = vweird.f32 %v1281_v25  ;;  %vm1448_vm13 = vcmp.eq.f32.partialorder %v1447_v51, 8.507059e+37  ;;  %v1020_v15 = vld [vmem:[#allocation14 + $0x18] sm:$0xff]  ;;  %v1017_v51 = vld [vmem:[#allocation14] sm:$0xff] }
 0x71c   :  { %v1296_v36 = vmul.f32 %v4468_v32, %v1295_v35  ;;  %v1309_v61 = vor.u32 1.1754944e-38, %v1308_v53  ;;  %vm1307_vm15 = vcmp.eq.f32.partialorder %v1306_v56, 8.507059e+37  ;;  %1729 = vmatpush.msra.mxu1 %v1020_v15 }
 0x71d   :  { %v1339_v37 = vpop.permute.xlu0 %1338 }
 0x71e   :  { %3357 = vmatmul.msk.f32.vlgmr.msrb.gmra.mxu3 %vm322_vm1, %v1296_v36  ;;  %1359 = vmatpush.msra.mxu0 %v1339_v37 }
 0x71f   :  { %v3551_v38 = vpop.eup %3550 }
 0x720   :  { %v3553_v39 = vpop.eup %3552  ;;  %v1439_v40 = vmul.f32 %v3551_v38, %v1434_v6  ;;  %v4506_v41 = vpop.xlane.xlu1 %1589  ;;  %vm1444_vm8 = vweird.f32 %v3551_v38 }
 0x721   :  { %v1298_v43 = vmul.f32 %v3553_v39, %v1281_v25  ;;  %v1495_v46 = vpop.permute.xlu2 %1494  ;;  %vm1303_vm9 = vweird.f32 %v3553_v39  ;;  %vm1445_vm11 = vmor %vm1443_vm10, %vm1444_vm8  ;;  %3554 = vrcp.f32 %v4506_v41  ;;  %v1605_v31 = vand.u32 2147483648, %v4506_v41 }
 0x722   :  { %v1440_v48 = vsub.f32 1.0, %v1439_v40  ;;  %1515 = vmatpush.msrb.mxu0 %v1495_v46  ;;  %vm1304_vm14 = vmor %vm1302_vm12, %vm1303_vm9  ;;  %vm1599_vm12 = vweird.f32 %v4506_v41  ;;  %v1603_v6 = vand.u32 2147483647, %v4506_v41 }
 0x723   :  { %v1299_v49 = vsub.f32 1.0, %v1298_v43  ;;  %v1606_v35 = vor.u32 1.1754944e-38, %v1605_v31 }
 0x724   :  { %v1441_v50 = vmul.f32 %v3551_v38, %v1440_v48 }
 0x725   :  { %v1300_v32 = vmul.f32 %v3553_v39, %v1299_v49  ;;  %v1651_v4 = vpop.permute.xlu0 %1650  ;;  %v1019_v49 = vld [vmem:[#allocation14 + $0x10] sm:$0xff] }
 0x726   :  { %v1442_v57 = vadd.f32 %v3551_v38, %v1441_v50  ;;  %1730 = vmatpush.msra.mxu1 %v1019_v49  ;;  %v1018_v50 = vld [vmem:[#allocation14 + $0x8] sm:$0xff] }
 0x727   :  { %v1301_v63 = vadd.f32 %v3553_v39, %v1300_v32  ;;  %v3555_v5 = vpop.eup %3554 }
 0x728   :  { %v1446_v60 = vsel %vm1445_vm11, %v3551_v38, %v1442_v57  ;;  %v1437_v3 = vpop.xlane.xlu1 %1436  ;;  %v1595_v52 = vmul.f32 %v3555_v5, %v4506_v41  ;;  %vm1600_vm9 = vweird.f32 %v3555_v5  ;;  %1731 = vmatpush.msra.mxu1 %v1018_v50 }
 0x729   :  { %v1451_v62 = vsel %vm1448_vm13, %v1450_v58, %v1446_v60  ;;  %v1305_v0 = vsel %vm1304_vm14, %v3553_v39, %v1301_v63  ;;  %3556 = vrcp.f32 %v1437_v3  ;;  %v1464_v11 = vand.u32 2147483648, %v1437_v3  ;;  %vm1601_vm14 = vmor %vm1599_vm12, %vm1600_vm9 }
 0x72a   :  { %v1310_v54 = vsel %vm1307_vm15, %v1309_v61, %v1305_v0  ;;  %v1452_v1 = vmul.f32 %v4472_v8, %v1451_v62  ;;  %v1462_v8 = vand.u32 2147483647, %v1437_v3  ;;  %v1596_v13 = vsub.f32 1.0, %v1595_v52  ;;  %1732 = vmatpush.msra.mxu1 %v1017_v51 }
 0x72b   :  { %v1311_v2 = vmul.f32 %v4474_v42, %v1310_v54  ;;  %vm1458_vm3 = vweird.f32 %v1437_v3  ;;  %v1465_v16 = vor.u32 1.1754944e-38, %v1464_v11  ;;  %vm1604_vm15 = vcmp.eq.f32.partialorder %v1603_v6, 8.507059e+37 }
 0x72c   :  { %3363 = vmatmul.msk.f32.vlgmr.msra.gmra.mxu3 %vm322_vm1, %v1452_v1  ;;  %vm1463_vm5 = vcmp.eq.f32.partialorder %v1462_v8, 8.507059e+37  ;;  %v1597_v21 = vmul.f32 %v3555_v5, %v1596_v13 }
 0x72d   :  { %3358 = vmatmul.msk.f32.vlgmr.msra.gmra.mxu0 %vm322_vm1, %v1311_v2 }
 0x72e   :  { %1671 = vmatpush.msra.mxu0 %v1651_v4  ;;  %v1598_v29 = vadd.f32 %v3555_v5, %v1597_v21  ;;  %v1748_v4 = vld [vmem:[#allocation17 + $0x18] sm:$0xff] }
 0x72f   :  { %v3557_v7 = vpop.eup %3556  ;;  %1776 = vmatpush.msra.mxu2 %v1748_v4 }
 0x730   :  { %v1454_v9 = vmul.f32 %v3557_v7, %v1437_v3  ;;  %v1593_v10 = vpop.xlane.xlu1 %1592  ;;  %vm1459_vm2 = vweird.f32 %v3557_v7  ;;  %v1602_v25 = vsel %vm1601_vm14, %v3555_v5, %v1598_v29  ;;  %v1747_v5 = vld [vmem:[#allocation17 + $0x10] sm:$0xff] }
 0x731   :  { %3558 = vrcp.f32 %v1593_v10  ;;  %vm1460_vm4 = vmor %vm1458_vm3, %vm1459_vm2  ;;  %v1620_v24 = vand.u32 2147483648, %v1593_v10  ;;  %v1618_v28 = vand.u32 2147483647, %v1593_v10  ;;  %vm1614_vm10 = vweird.f32 %v1593_v10  ;;  %1777 = vmatpush.msra.mxu2 %v1747_v5 }
 0x732   :  { %v1455_v19 = vsub.f32 1.0, %v1454_v9  ;;  %v1607_v36 = vsel %vm1604_vm15, %v1606_v35, %v1602_v25  ;;  %v3490_v9 = vld [vmem:[#allocation16] ss:$0 sm:$0xff]  ;;  %vm1836_vm2 = vcmask 58368  }
 0x733   :  { %v1621_v33 = vor.u32 1.1754944e-38, %v1620_v24  ;;  %vm1619_vm13 = vcmp.eq.f32.partialorder %v1618_v28, 8.507059e+37  ;;  %v1608_v38 = vmul.f32 %v4480_v45, %v1607_v36 }
 0x734   :  { %v1456_v12 = vmul.f32 %v3557_v7, %v1455_v19 }
 0x736   :  { %v1457_v42 = vadd.f32 %v3557_v7, %v1456_v12 }
 0x737   :  { %v3559_v14 = vpop.eup %3558 }
 0x738   :  { %v1461_v17 = vsel %vm1460_vm4, %v3557_v7, %v1457_v42  ;;  %v1610_v18 = vmul.f32 %v3559_v14, %v1593_v10  ;;  %vm1615_vm8 = vweird.f32 %v3559_v14  ;;  %v1745_v7 = vld [vmem:[#allocation17] sm:$0xff]  ;;  %v4544_v42 = vld [vmem:[%s4908_s9] sm:$0x3] }
 0x739   :  { %v1466_v20 = vsel %vm1463_vm5, %v1465_v16, %v1461_v17  ;;  %vm1616_vm11 = vmor %vm1614_vm10, %vm1615_vm8 }
 0x73a   :  { %v1611_v22 = vsub.f32 1.0, %v1610_v18  ;;  %v1467_v23 = vmul.f32 %v4486_v55, %v1466_v20 }
 0x73c   :  { %v1612_v26 = vmul.f32 %v3559_v14, %v1611_v22  ;;  %3364 = vmatmul.msk.f32.vlgmr.msrb.gmra.mxu0 %vm322_vm1, %v1467_v23 }
 0x73e   :  { %v1613_v30 = vadd.f32 %v3559_v14, %v1612_v26 }
 0x740   :  { %v1617_v34 = vsel %vm1616_vm11, %v3559_v14, %v1613_v30  ;;  %v3491_v14 = vld [vmem:[%s4910_s11] ss:$0 sm:$0xff] }
 0x741   :  { %v1622_v55 = vsel %vm1619_vm13, %v1621_v33, %v1617_v34 }
 0x742   :  { %v1623_v27 = vmul.f32 %v4492_v59, %v1622_v55 }
 0x744   :  { %3370 = vmatmul.msk.f32.vlgmr.msra.gmra.mxu0 %vm322_vm1, %v1623_v27 }
 0x748   :  { %v1625_v37 = vpop.permute.xlu1 %1624 }
 0x749   :  { %1645 = vmatpush.msrb.mxu3 %v1625_v37 }
 0x74a   :  { %3369 = vmatmul.msk.f32.vlgmr.msrb.gmra.mxu3 %vm322_vm1, %v1608_v38 }
 0x78c   :  { %v1205_v41 = vpop.f32.mrf.mxu0 }
 0x790   :  { %v1179_v39 = vpop.f32.mrf.mxu3 }
 0x7a1   :  { %v1335_v40 = vpop.f32.mrf.mxu3 }
 0x7a2   :  { %1678 = vrot.lane.b32.xlu2 %v1335_v40, %s4004_s29 }
 0x7aa   :  { %v1361_v46 = vpop.f32.mrf.mxu0 }
 0x7af   :  { %v1491_v43 = vpop.f32.mrf.mxu3 }
 0x7b0   :  { %1686 = vrot.lane.b32.xlu0 %v1491_v43, %s4029_s23 }
 0x7b8   :  { %1680 = vrot.lane.b32.xlu0 %v1361_v46, %s4004_s29 }
 0x7b9   :  { %v1517_v59 = vpop.f32.mrf.mxu0 }
 0x7ba   :  { %1688 = vrot.lane.b32.xlu1 %v1517_v59, %s4029_s23 }
 0x7c1   :  { %v1673_v45 = vpop.f32.mrf.mxu0 }
 0x7cd   :  { %v1647_v48 = vpop.f32.mrf.mxu3 }
 0x7ce   :  { %1694 = vrot.lane.b32.xlu2 %v1647_v48, %s4030_s22 }
 0x7d6   :  { %1696 = vrot.lane.b32.xlu2 %v1673_v45, %s4030_s22 }
 0x7de   :  { %1937 = vrot.lane.b32.xlu2 %v4544_v42, %s4022_s30 }
 0x7e6   :  { %2089 = vrot.lane.b32.xlu2 %v4544_v42, %s4021_s5 }
 0x7ee   :  { %2241 = vrot.lane.b32.xlu2 %v4544_v42, %s4023_s7 }
 0x7fc   :  { %v1679_v53 = vpop.permute.xlu2 %1678 }
 0x7fd   :  { %v1700_v56 = vsel %vm322_vm1, %v1179_v39, %v1679_v53 }
 0x822   :  { %v1687_v32 = vpop.permute.xlu0 %1686 }
 0x823   :  { %v1702_v57 = vsel %vm289_vm0, %v1700_v56, %v1687_v32 }
 0x828   :  { %v1695_v58 = vpop.permute.xlu2 %1694 }
 0x829   :  { %v1704_v63 = vsel %vm970_vm6, %v1702_v57, %v1695_v58 }
 0x82a   :  { %v1706_v60 = vadd.f32 %v1704_v63, %v4395_v44  ;;  %v1681_v61 = vpop.permute.xlu0 %1680  ;;  %v1746_v44 = vld [vmem:[#allocation17 + $0x8] sm:$0xff] }
 0x82b   :  { %v1701_v3 = vsel %vm322_vm1, %v1205_v41, %v1681_v61  ;;  %1778 = vmatpush.msra.mxu2 %v1746_v44 }
 0x82c   :  { %3371 = vmatmul.msk.f32.vlgmr.msra.gmra.mxu1 %vm978_vm7, %v1706_v60  ;;  %v1689_v62 = vpop.permute.xlu1 %1688 }
 0x82d   :  { %v1703_v0 = vsel %vm289_vm0, %v1701_v3, %v1689_v62  ;;  %1779 = vmatpush.msra.mxu2 %v1745_v7 }
 0x830   :  { %v1697_v54 = vpop.permute.xlu2 %1696 }
 0x831   :  { %v1705_v1 = vsel %vm970_vm6, %v1703_v0, %v1697_v54 }
 0x832   :  { %v1707_v2 = vadd.f32 %v1705_v1, %v4403_v47 }
 0x834   :  { %3372 = vmatmul.msk.f32.gmra.mxu1 %vm978_vm7, %v1707_v2 }
 0x838   :  { %v1938_v21 = vpop.permute.xlu2 %1937 }
 0x840   :  { %v2090_v26 = vpop.permute.xlu2 %2089 }
 0x848   :  { %v2242_v30 = vpop.permute.xlu2 %2241 }
 0x8a9   :  { %v1734_v10 = vpop.f32.mrf.mxu1 }
 0x8aa   :  { %v1735_v52 = vadd.f32 %v3490_v9, %v1734_v10 }
 0x8ac   :  { %v1740_v19 = vmax.f32 %v1735_v52, 0.0 }
 0x8ae   :  { %v1742_v11 = vadd.f32 %v1740_v19, %v1706_v60 }
 0x8b0   :  { %3373 = vmatmul.msk.f32.vlgmr.msra.gmra.mxu2 %vm978_vm7, %v1742_v11 }
 0x8b1   :  { %v1737_v12 = vpop.f32.mrf.mxu1 }
 0x8b2   :  { %v1738_v8 = vadd.f32 %v3490_v9, %v1737_v12 }
 0x8b4   :  { %v1741_v47 = vmax.f32 %v1738_v8, 0.0 }
 0x8b6   :  { %v1743_v13 = vadd.f32 %v1741_v47, %v1707_v2 }
 0x8b8   :  { %3374 = vmatmul.msk.f32.gmra.mxu2 %vm978_vm7, %v1743_v13 }
 0x933   :  { %v1781_v16 = vpop.f32.mrf.mxu2 }
 0x934   :  { %v4555_v17 = vadd.f32 %v3491_v14, %v1781_v16 }
 0x936   :  { %1939 = vrot.lane.b32.xlu0 %v4555_v17, %s4022_s30  ;;  %3375 = vmatpush.xpose.msk.msra.mxu3 %vm322_vm1, %v4555_v17 }
 0x939   :  { %3376 = vmatmul.msk.f32.vlgmr.msra.gmra.mxu3 %vm322_vm1, %v4544_v42 }
 0x93b   :  { %v1784_v18 = vpop.f32.mrf.mxu2 }
 0x93c   :  { %v4563_v20 = vadd.f32 %v3491_v14, %v1784_v18 }
 0x93e   :  { %2091 = vrot.lane.b32.xlu0 %v4555_v17, %s4021_s5  ;;  %1965 = vrot.lane.b32.xlu1 %v4563_v20, %s4022_s30  ;;  %v3482_v58 = vpack.i.bf16 %v4563_v20, %v4555_v17 }
 0x93f   :  { %3377 = vmatpush.xpose.msk.msrb.mxu0 %vm322_vm1, %v4563_v20 }
 0x942   :  { %3378 = vmatmul.msk.f32.vlgmr.msrb.gmra.mxu0 %vm322_vm1, %v4544_v42 }
 0x946   :  { %2243 = vrot.lane.b32.xlu0 %v4555_v17, %s4023_s7  ;;  %2117 = vrot.lane.b32.xlu1 %v4563_v20, %s4021_s5 }
 0x94e   :  { %2269 = vrot.lane.b32.xlu1 %v4563_v20, %s4023_s7 }
 0x9a8   :  { %v1940_v22 = vpop.permute.xlu0 %1939 }
 0x9a9   :  { %3381 = vmatpush.xpose.msk.msrb.mxu1 %vm322_vm1, %v1940_v22 }
 0x9ac   :  { %3382 = vmatmul.msk.f32.vlgmr.msrb.gmra.mxu1 %vm322_vm1, %v1938_v21 }
 0x9b0   :  { %v2092_v23 = vpop.permute.xlu0 %2091  ;;  %v1966_v24 = vpop.permute.xlu1 %1965 }
 0x9b1   :  { %3383 = vmatpush.xpose.msk.msrb.mxu2 %vm322_vm1, %v1966_v24  ;;  %3387 = vmatpush.xpose.msk.msra.mxu1 %vm322_vm1, %v2092_v23 }
 0x9b4   :  { %3384 = vmatmul.msk.f32.vlgmr.msrb.gmra.mxu2 %vm322_vm1, %v1938_v21  ;;  %3388 = vmatmul.msk.f32.vlgmr.msra.gmra.mxu1 %vm322_vm1, %v2090_v26 }
 0x9b8   :  { %v2244_v28 = vpop.permute.xlu0 %2243  ;;  %v2118_v29 = vpop.permute.xlu1 %2117 }
 0x9b9   :  { %3389 = vmatpush.xpose.msk.msra.mxu2 %vm322_vm1, %v2118_v29  ;;  %3393 = vmatpush.xpose.msk.msrb.mxu1 %vm322_vm1, %v2244_v28 }
 0x9bc   :  { %v1810_v31 = vpop.f32.mrf.mxu3  ;;  %3390 = vmatmul.msk.f32.vlgmr.msra.gmra.mxu2 %vm322_vm1, %v2090_v26  ;;  %3394 = vmatmul.msk.f32.vlgmr.msrb.gmra.mxu1 %vm322_vm1, %v2242_v30 }
 0x9bd   :  { %v1837_v33 = vsel %vm1836_vm2, %v1810_v31, -inf }
 0x9be   :  { %1838 = vmax.xlane.f32.xlu0 %v1837_v33 }
 0x9bf   :  { %v1833_v6 = vpop.f32.mrf.mxu0 }
 0x9c0   :  { %v2270_v34 = vpop.permute.xlu1 %2269  ;;  %v1840_v55 = vsel %vm1836_vm2, %v1833_v6, -inf }
 0x9c1   :  { %3395 = vmatpush.xpose.msk.msrb.mxu2 %vm322_vm1, %v2270_v34  ;;  %1841 = vmax.xlane.f32.xlu1 %v1840_v55 }
 0x9c4   :  { %3396 = vmatmul.msk.f32.vlgmr.msrb.gmra.mxu2 %vm322_vm1, %v2242_v30 }
 0xa29   :  { %v1962_v25 = vpop.f32.mrf.mxu1 }
 0xa2a   :  { %v1989_v27 = vsel %vm1836_vm2, %v1962_v25, -inf }
 0xa2b   :  { %1990 = vmax.xlane.f32.xlu2 %v1989_v27 }
 0xa31   :  { %v1839_v35 = vpop.xlane.xlu0 %1838  ;;  %v2114_v36 = vpop.f32.mrf.mxu1 }
 0xa32   :  { %v1843_v37 = vsub.f32 %v1810_v31, %v1839_v35  ;;  %v2141_v38 = vsel %vm1836_vm2, %v2114_v36, -inf }
 0xa33   :  { %2142 = vmax.xlane.f32.xlu1 %v2141_v38 }
 0xa34   :  { %v1845_v39 = vmul.f32 1.442695, %v1843_v37  ;;  %v1842_v40 = vpop.xlane.xlu1 %1841 }
 0xa35   :  { %v1844_v41 = vsub.f32 %v1833_v6, %v1842_v40 }
 0xa36   :  { %3560 = vpow2.f32 %v1845_v39 }
 0xa37   :  { %v1986_v43 = vpop.f32.mrf.mxu2  ;;  %v1847_v59 = vmul.f32 1.442695, %v1844_v41 }
 0xa38   :  { %v1992_v46 = vsel %vm1836_vm2, %v1986_v43, -inf }
 0xa39   :  { %1993 = vmax.xlane.f32.xlu0 %v1992_v46  ;;  %v2266_v48 = vpop.f32.mrf.mxu1  ;;  %3562 = vpow2.f32 %v1847_v59 }
 0xa3a   :  { %v2293_v49 = vsel %vm1836_vm2, %v2266_v48, -inf }
 0xa3c   :  { %v4596_v45 = vpop.eup %3560 }
 0xa3d   :  { %v1849_v15 = vsel %vm1836_vm2, %v4596_v45, 0.0 }
 0xa3e   :  { %1850 = vadd.xlane.f32.xlu2 %v1849_v15 }
 0xa3f   :  { %v2138_v50 = vpop.f32.mrf.mxu2  ;;  %v4601_v51 = vpop.eup %3562 }
 0xa40   :  { %v2144_v53 = vsel %vm1836_vm2, %v2138_v50, -inf  ;;  %v1852_v57 = vsel %vm1836_vm2, %v4601_v51, 0.0 }
 0xa41   :  { %2294 = vmax.xlane.f32.xlu0 %v2293_v49 }
 0xa46   :  { %2145 = vmax.xlane.f32.xlu2 %v2144_v53 }
 0xa47   :  { %v2290_v32 = vpop.f32.mrf.mxu2 }
 0xa48   :  { %v2296_v56 = vsel %vm1836_vm2, %v2290_v32, -inf }
 0xa49   :  { %2297 = vmax.xlane.f32.xlu1 %v2296_v56  ;;  %1853 = vadd.xlane.f32.xlu0 %v1852_v57 }
 0xa5e   :  { %3483 = vrot.lane.b32.xlu2 %v3482_v58, %s4019_s4 }
 0xa62   :  { %3478 = vrot.lane.b32.xlu1 %v3482_v58, %s4020_s24 }
 0xa9e   :  { %v1991_v63 = vpop.xlane.xlu2 %1990 }
 0xa9f   :  { %v1995_v60 = vsub.f32 %v1962_v25, %v1991_v63 }
 0xaa1   :  { %v1997_v61 = vmul.f32 1.442695, %v1995_v60 }
 0xaa3   :  { %3564 = vpow2.f32 %v1997_v61 }
 0xaa6   :  { %v2143_v3 = vpop.xlane.xlu1 %2142 }
 0xaa7   :  { %v2147_v62 = vsub.f32 %v2114_v36, %v2143_v3 }
 0xaa9   :  { %v4611_v0 = vpop.eup %3564  ;;  %v2149_v54 = vmul.f32 1.442695, %v2147_v62 }
 0xaaa   :  { %v2001_v1 = vsel %vm1836_vm2, %v4611_v0, 0.0 }
 0xaab   :  { %3566 = vpow2.f32 %v2149_v54  ;;  %2002 = vadd.xlane.f32.xlu1 %v2001_v1 }
 0xaac   :  { %v1994_v2 = vpop.xlane.xlu0 %1993 }
 0xaad   :  { %v1996_v4 = vsub.f32 %v1986_v43, %v1994_v2 }
 0xaaf   :  { %v1999_v5 = vmul.f32 1.442695, %v1996_v4 }
 0xab1   :  { %v4615_v44 = vpop.eup %3566  ;;  %3568 = vpow2.f32 %v1999_v5  ;;  %v1851_v7 = vpop.xlane.xlu2 %1850 }
 0xab2   :  { %v2153_v9 = vsel %vm1836_vm2, %v4615_v44, 0.0  ;;  %3570 = vrcp.f32 %v1851_v7  ;;  %vm1860_vm5 = vweird.f32 %v1851_v7  ;;  %v1866_v37 = vand.u32 2147483648, %v1851_v7 }
 0xab3   :  { %2154 = vadd.xlane.f32.xlu0 %v2153_v9  ;;  %v1864_v39 = vand.u32 2147483647, %v1851_v7 }
 0xab4   :  { %v2295_v10 = vpop.xlane.xlu0 %2294  ;;  %v1867_v46 = vor.u32 1.1754944e-38, %v1866_v37 }
 0xab5   :  { %v2299_v52 = vsub.f32 %v2266_v48, %v2295_v10  ;;  %vm1865_vm11 = vcmp.eq.f32.partialorder %v1864_v39, 8.507059e+37 }
 0xab7   :  { %v4619_v19 = vpop.eup %3568  ;;  %v2301_v11 = vmul.f32 1.442695, %v2299_v52 }
 0xab8   :  { %v2004_v12 = vsel %vm1836_vm2, %v4619_v19, 0.0  ;;  %v3571_v18 = vpop.eup %3570 }
 0xab9   :  { %3572 = vpow2.f32 %v2301_v11  ;;  %2005 = vadd.xlane.f32.xlu2 %v2004_v12  ;;  %v2146_v8 = vpop.xlane.xlu2 %2145  ;;  %v1856_v23 = vmul.f32 %v3571_v18, %v1851_v7  ;;  %vm1861_vm3 = vweird.f32 %v3571_v18 }
 0xaba   :  { %v2148_v47 = vsub.f32 %v2138_v50, %v2146_v8  ;;  %vm1862_vm8 = vmor %vm1860_vm5, %vm1861_vm3 }
 0xabb   :  { %v1857_v30 = vsub.f32 1.0, %v1856_v23 }
 0xabc   :  { %v2151_v13 = vmul.f32 1.442695, %v2148_v47  ;;  %v1854_v14 = vpop.xlane.xlu0 %1853  ;;  %v2298_v16 = vpop.xlane.xlu1 %2297 }
 0xabd   :  { %3574 = vrcp.f32 %v1854_v14  ;;  %v2300_v21 = vsub.f32 %v2290_v32, %v2298_v16  ;;  %v1858_v55 = vmul.f32 %v3571_v18, %v1857_v30  ;;  %v1881_v38 = vand.u32 2147483648, %v1854_v14 }
 0xabe   :  { %3576 = vpow2.f32 %v2151_v13  ;;  %vm1875_vm9 = vweird.f32 %v1854_v14  ;;  %v1879_v40 = vand.u32 2147483647, %v1854_v14 }
 0xabf   :  { %v4623_v22 = vpop.eup %3572  ;;  %v2303_v24 = vmul.f32 1.442695, %v2300_v21  ;;  %v1859_v35 = vadd.f32 %v3571_v18, %v1858_v55  ;;  %v1882_v59 = vor.u32 1.1754944e-38, %v1881_v38 }
 0xac0   :  { %v2305_v26 = vsel %vm1836_vm2, %v4623_v22, 0.0  ;;  %vm1880_vm12 = vcmp.eq.f32.partialorder %v1879_v40, 8.507059e+37 }
 0xac1   :  { %2306 = vadd.xlane.f32.xlu0 %v2305_v26  ;;  %3578 = vpow2.f32 %v2303_v24  ;;  %v1863_v41 = vsel %vm1862_vm8, %v3571_v18, %v1859_v35  ;;  %v3484_v49 = vpop.permute.xlu2 %3483 }
 0xac2   :  { %v1868_v48 = vsel %vm1865_vm11, %v1867_v46, %v1863_v41  ;;  %v3486_v58 = vunpack.i.h.bf16 %v3484_v49  ;;  %v3485_v63 = vunpack.i.l.bf16 %v3484_v49 }
 0xac3   :  { %v3575_v28 = vpop.eup %3574  ;;  %v1869_v56 = vmul.f32 %v4596_v45, %v1868_v48 }
 0xac4   :  { %v4627_v29 = vpop.eup %3576  ;;  %v1871_v31 = vmul.f32 %v3575_v28, %v1854_v14  ;;  %2215 = vrot.lane.b32.xlu1 %v4563_v20, %s4018_s18  ;;  %vm1876_vm4 = vweird.f32 %v3575_v28 }
 0xac5   :  { %v2156_v33 = vsel %vm1836_vm2, %v4627_v29, 0.0  ;;  %vm1877_vm10 = vmor %vm1875_vm9, %vm1876_vm4 }
 0xac6   :  { %v1872_v6 = vsub.f32 1.0, %v1871_v31  ;;  %2157 = vadd.xlane.f32.xlu2 %v2156_v33 }
 0xac7   :  { %v4633_v34 = vpop.eup %3578 }
 0xac8   :  { %v1873_v25 = vmul.f32 %v3575_v28, %v1872_v6  ;;  %v2308_v27 = vsel %vm1836_vm2, %v4633_v34, 0.0 }
 0xac9   :  { %2309 = vadd.xlane.f32.xlu0 %v2308_v27 }
 0xaca   :  { %v1874_v36 = vadd.f32 %v3575_v28, %v1873_v25 }
 0xacc   :  { %2341 = vrot.lane.b32.xlu1 %v4555_v17, %s4024_s21  ;;  %v1878_v43 = vsel %vm1877_vm10, %v3575_v28, %v1874_v36 }
 0xacd   :  { %v1883_v15 = vsel %vm1880_vm12, %v1882_v59, %v1878_v43 }
 0xace   :  { %v1884_v57 = vmul.f32 %v4601_v51, %v1883_v15 }
 0xad4   :  { %v3479_v50 = vpop.permute.xlu1 %3478 }
 0xad5   :  { %v3481_v53 = vunpack.i.h.bf16 %v3479_v50  ;;  %v3480_v32 = vunpack.i.l.bf16 %v3479_v50  ;;  %v3493_v50 = vld [vmem:[%s4914_s15] ss:$0 sm:$0xff] }
 0xad7   :  { %1906 = vmatpush.msrb.mxu3 %v3480_v32  ;;  %1932 = vmatpush.msra.mxu0 %v3481_v53 }
 0xad8   :  { %3379 = vmatmul.msk.f32.vlgmr.msrb.gmra.mxu3 %vm322_vm1, %v1869_v56  ;;  %3380 = vmatmul.msk.f32.vlgmr.msra.gmra.mxu0 %vm322_vm1, %v1884_v57 }
 0xad9   :  { %2058 = vmatpush.msra.mxu3 %v3485_v63  ;;  %2084 = vmatpush.msrb.mxu0 %v3486_v58 }
 0xadd   :  { %2189 = vrot.lane.b32.xlu0 %v4555_v17, %s4018_s18 }
 0xade   :  { %2367 = vrot.lane.b32.xlu2 %v4563_v20, %s4024_s21 }
 0xb1e   :  { %v2003_v60 = vpop.xlane.xlu1 %2002 }
 0xb1f   :  { %3580 = vrcp.f32 %v2003_v60  ;;  %v2018_v3 = vand.u32 2147483648, %v2003_v60  ;;  %v2016_v54 = vand.u32 2147483647, %v2003_v60  ;;  %vm2012_vm14 = vweird.f32 %v2003_v60 }
 0xb21   :  { %v2019_v5 = vor.u32 1.1754944e-38, %v2018_v3  ;;  %vm2017_vm2 = vcmp.eq.f32.partialorder %v2016_v54, 8.507059e+37 }
 0xb25   :  { %v3581_v45 = vpop.eup %3580 }
 0xb26   :  { %v2008_v51 = vmul.f32 %v3581_v45, %v2003_v60  ;;  %vm2013_vm13 = vweird.f32 %v3581_v45  ;;  %v4647_v2 = vpop.xlane.xlu0 %2154 }
 0xb27   :  { %vm2014_vm15 = vmor %vm2012_vm14, %vm2013_vm13  ;;  %v2170_v37 = vand.u32 2147483648, %v4647_v2  ;;  %vm2164_vm12 = vweird.f32 %v4647_v2  ;;  %v2168_v48 = vand.u32 2147483647, %v4647_v2 }
 0xb28   :  { %v2009_v61 = vsub.f32 1.0, %v2008_v51 }
 0xb29   :  { %v2171_v15 = vor.u32 1.1754944e-38, %v2170_v37 }
 0xb2a   :  { %v2010_v62 = vmul.f32 %v3581_v45, %v2009_v61 }
 0xb2c   :  { %v2011_v1 = vadd.f32 %v3581_v45, %v2010_v62  ;;  %v2006_v4 = vpop.xlane.xlu2 %2005 }
 0xb2d   :  { %3582 = vrcp.f32 %v2006_v4  ;;  %v2033_v47 = vand.u32 2147483648, %v2006_v4  ;;  %v2031_v14 = vand.u32 2147483647, %v2006_v4  ;;  %vm2027_vm4 = vweird.f32 %v2006_v4 }
 0xb2e   :  { %v2015_v17 = vsel %vm2014_vm15, %v3581_v45, %v2011_v1  ;;  %3584 = vrcp.f32 %v4647_v2 }
 0xb2f   :  { %v2020_v20 = vsel %vm2017_vm2, %v2019_v5, %v2015_v17  ;;  %v2034_v21 = vor.u32 1.1754944e-38, %v2033_v47  ;;  %vm2032_vm8 = vcmp.eq.f32.partialorder %v2031_v14, 8.507059e+37 }
 0xb30   :  { %v2021_v7 = vmul.f32 %v4611_v0, %v2020_v20 }
 0xb32   :  { %3385 = vmatmul.msk.f32.vlgmr.msra.gmra.mxu3 %vm322_vm1, %v2021_v7 }
 0xb33   :  { %v3583_v9 = vpop.eup %3582 }
 0xb34   :  { %v2023_v10 = vmul.f32 %v3583_v9, %v2006_v4  ;;  %v4652_v52 = vpop.xlane.xlu0 %2306  ;;  %v4654_v8 = vpop.eup %3584  ;;  %vm2028_vm3 = vweird.f32 %v3583_v9 }
 0xb35   :  { %3586 = vrcp.f32 %v4652_v52  ;;  %v2160_v16 = vmul.f32 %v4654_v8, %v4647_v2  ;;  %vm2029_vm5 = vmor %vm2027_vm4, %vm2028_vm3  ;;  %vm2165_vm10 = vweird.f32 %v4654_v8  ;;  %vm2169_vm4 = vcmp.eq.f32.partialorder %v2168_v48, 8.507059e+37 }
 0xb36   :  { %v2024_v11 = vsub.f32 1.0, %v2023_v10  ;;  %v2216_v12 = vpop.permute.xlu1 %2215  ;;  %vm4671_vm14 = vmor %vm2164_vm12, %vm2165_vm10  ;;  %v2322_v1 = vand.u32 2147483648, %v4652_v52  ;;  %vm2316_vm10 = vweird.f32 %v4652_v52  ;;  %v2320_v2 = vand.u32 2147483647, %v4652_v52 }
 0xb37   :  { %2236 = vmatpush.msra.mxu0 %v2216_v12  ;;  %v2161_v28 = vsub.f32 1.0, %v2160_v16  ;;  %v1753_v16 = vld [vmem:[#allocation19 + $0x18] sm:$0xff] }
 0xb38   :  { %v2025_v13 = vmul.f32 %v3583_v9, %v2024_v11  ;;  %v2323_v7 = vor.u32 1.1754944e-38, %v2322_v1  ;;  %vm2321_vm12 = vcmp.eq.f32.partialorder %v2320_v2, 8.507059e+37  ;;  %2448 = vmatpush.msra.mxu1 %v1753_v16 }
 0xb39   :  { %v2158_v0 = vpop.xlane.xlu2 %2157  ;;  %v2162_v25 = vmul.f32 %v4654_v8, %v2161_v28 }
 0xb3a   :  { %v2026_v18 = vadd.f32 %v3583_v9, %v2025_v13  ;;  %3588 = vrcp.f32 %v2158_v0  ;;  %v2185_v38 = vand.u32 2147483648, %v2158_v0  ;;  %v2183_v40 = vand.u32 2147483647, %v2158_v0 }
 0xb3b   :  { %v4659_v30 = vpop.eup %3586  ;;  %v2163_v41 = vadd.f32 %v4654_v8, %v2162_v25  ;;  %vm2179_vm11 = vweird.f32 %v2158_v0 }
 0xb3c   :  { %v2030_v23 = vsel %vm2029_vm5, %v3583_v9, %v2026_v18  ;;  %v2310_v26 = vpop.xlane.xlu0 %2309  ;;  %v2312_v27 = vmul.f32 %v4659_v30, %v4652_v52  ;;  %v2186_v49 = vor.u32 1.1754944e-38, %v2185_v38  ;;  %vm2184_vm15 = vcmp.eq.f32.partialorder %v2183_v40, 8.507059e+37  ;;  %v1752_v18 = vld [vmem:[#allocation19 + $0x10] sm:$0xff]  ;;  %v2465_v38 = vld [vmem:[#allocation20 + $0x18] sm:$0xff]  ;;  %v2463_v40 = vld [vmem:[#allocation20 + $0x8] sm:$0xff] }
 0xb3d   :  { %v2035_v24 = vsel %vm2032_vm8, %v2034_v21, %v2030_v23  ;;  %3590 = vrcp.f32 %v2310_v26  ;;  %v2167_v56 = vsel %vm4671_vm14, %v4654_v8, %v2163_v41  ;;  %v2337_v63 = vand.u32 2147483648, %v2310_v26  ;;  %2449 = vmatpush.msra.mxu1 %v1752_v18  ;;  %v1751_v23 = vld [vmem:[#allocation19 + $0x8] sm:$0xff]  ;;  %2495 = vmatpush.msra.mxu2 %v2465_v38  ;;  %v3492_v41 = vld [vmem:[%s4912_s13] ss:$0 sm:$0xff] }
 0xb3e   :  { %v2036_v31 = vmul.f32 %v4619_v19, %v2035_v24  ;;  %v2313_v43 = vsub.f32 1.0, %v2312_v27  ;;  %vm2331_vm3 = vweird.f32 %v2310_v26  ;;  %v2335_v45 = vand.u32 2147483647, %v2310_v26  ;;  %v2342_v20 = vpop.permute.xlu1 %2341  ;;  %v1750_v24 = vld [vmem:[#allocation19] sm:$0xff] }
 0xb3f   :  { %v2172_v61 = vsel %vm2169_vm4, %v2171_v15, %v2167_v56  ;;  %vm2317_vm8 = vweird.f32 %v4659_v30  ;;  %v2338_v54 = vor.u32 1.1754944e-38, %v2337_v63  ;;  %2450 = vmatpush.msra.mxu1 %v1751_v23  ;;  %vm2619_vm4 = vcmask 1041408  }
 0xb40   :  { %v3589_v33 = vpop.eup %3588  ;;  %3386 = vmatmul.msk.f32.vlgmr.msrb.gmra.mxu0 %vm322_vm1, %v2036_v31  ;;  %v2314_v57 = vmul.f32 %v4659_v30, %v2313_v43  ;;  %v2173_v5 = vmul.f32 %v4615_v44, %v2172_v61 }
 0xb41   :  { %v2175_v6 = vmul.f32 %v3589_v33, %v2158_v0  ;;  %v2368_v55 = vpop.permute.xlu2 %2367  ;;  %vm2180_vm9 = vweird.f32 %v3589_v33  ;;  %2451 = vmatpush.msra.mxu1 %v1750_v24 }
 0xb42   :  { %2388 = vmatpush.msrb.mxu0 %v2368_v55  ;;  %vm2181_vm13 = vmor %vm2179_vm11, %vm2180_vm9  ;;  %v2315_v62 = vadd.f32 %v4659_v30, %v2314_v57  ;;  %vm2336_vm9 = vcmp.eq.f32.partialorder %v2335_v45, 8.507059e+37 }
 0xb43   :  { %v2176_v35 = vsub.f32 1.0, %v2175_v6  ;;  %v3591_v36 = vpop.eup %3590  ;;  %vm2318_vm11 = vmor %vm2316_vm10, %vm2317_vm8 }
 0xb44   :  { %v2327_v19 = vmul.f32 %v3591_v36, %v2310_v26  ;;  %vm2332_vm2 = vweird.f32 %v3591_v36  ;;  %v2319_v17 = vsel %vm2318_vm11, %v4659_v30, %v2315_v62 }
 0xb45   :  { %v2177_v39 = vmul.f32 %v3589_v33, %v2176_v35  ;;  %vm2333_vm5 = vmor %vm2331_vm3, %vm2332_vm2  ;;  %v2324_v10 = vsel %vm2321_vm12, %v2323_v7, %v2319_v17 }
 0xb46   :  { %v2328_v59 = vsub.f32 1.0, %v2327_v19  ;;  %v2325_v52 = vmul.f32 %v4623_v22, %v2324_v10  ;;  %v2462_v19 = vld [vmem:[#allocation20] sm:$0xff] }
 0xb47   :  { %v2178_v46 = vadd.f32 %v3589_v33, %v2177_v39  ;;  %v2464_v39 = vld [vmem:[#allocation20 + $0x10] sm:$0xff] }
 0xb48   :  { %v2329_v32 = vmul.f32 %v3591_v36, %v2328_v59  ;;  %2496 = vmatpush.msra.mxu2 %v2464_v39 }
 0xb49   :  { %v2182_v53 = vsel %vm2181_vm13, %v3589_v33, %v2178_v46  ;;  %vm2562_vm13 = vcmask 9216  }
 0xb4a   :  { %v2187_v58 = vsel %vm2184_vm15, %v2186_v49, %v2182_v53  ;;  %v2330_v60 = vadd.f32 %v3591_v36, %v2329_v32  ;;  %2497 = vmatpush.msra.mxu2 %v2463_v40 }
 0xb4b   :  { %v2188_v51 = vmul.f32 %v4627_v29, %v2187_v58 }
 0xb4c   :  { %v2334_v3 = vsel %vm2333_vm5, %v3591_v36, %v2330_v60  ;;  %2498 = vmatpush.msra.mxu2 %v2462_v19  ;;  %vm2615_vm5 = vcmask 15360  }
 0xb4d   :  { %3392 = vmatmul.msk.f32.vlgmr.msra.gmra.mxu0 %vm322_vm1, %v2188_v51  ;;  %v2339_v4 = vsel %vm2336_vm9, %v2338_v54, %v2334_v3 }
 0xb4e   :  { %v2340_v9 = vmul.f32 %v4633_v34, %v2339_v4 }
 0xb4f   :  { %v2190_v29 = vpop.permute.xlu0 %2189 }
 0xb50   :  { %2210 = vmatpush.msrb.mxu3 %v2190_v29 }
 0xb51   :  { %3391 = vmatmul.msk.f32.vlgmr.msrb.gmra.mxu3 %vm322_vm1, %v2173_v5 }
 0xb52   :  { %2362 = vmatpush.msra.mxu3 %v2342_v20 }
 0xb55   :  { %3398 = vmatmul.msk.f32.vlgmr.msrb.gmra.mxu0 %vm322_vm1, %v2340_v9  ;;  %v1934_v12 = vpop.f32.mrf.mxu0 }
 0xb59   :  { %3397 = vmatmul.msk.f32.vlgmr.msra.gmra.mxu3 %vm322_vm1, %v2325_v52 }
 0xb5b   :  { %v1908_v44 = vpop.f32.mrf.mxu3 }
 0xbb5   :  { %v2060_v11 = vpop.f32.mrf.mxu3 }
 0xbb6   :  { %2395 = vrot.lane.b32.xlu1 %v2060_v11, %s4004_s29 }
 0xbbd   :  { %v2086_v8 = vpop.f32.mrf.mxu0 }
 0xbbe   :  { %2397 = vrot.lane.b32.xlu0 %v2086_v8, %s4004_s29 }
 0xbca   :  { %v2238_v47 = vpop.f32.mrf.mxu0 }
 0xbcb   :  { %2405 = vrot.lane.b32.xlu1 %v2238_v47, %s4029_s23 }
 0xbd2   :  { %v2390_v13 = vpop.f32.mrf.mxu0 }
 0xbd4   :  { %v2212_v34 = vpop.f32.mrf.mxu3 }
 0xbd5   :  { %2403 = vrot.lane.b32.xlu2 %v2212_v34, %s4029_s23 }
 0xbdc   :  { %v2364_v14 = vpop.f32.mrf.mxu3 }
 0xbdd   :  { %2413 = vrot.lane.b32.xlu2 %v2390_v13, %s4030_s22  ;;  %2411 = vrot.lane.b32.xlu0 %v2364_v14, %s4030_s22 }
 0xc28   :  { %v2396_v0 = vpop.permute.xlu1 %2395 }
 0xc29   :  { %v2417_v55 = vsel %vm322_vm1, %v1908_v44, %v2396_v0 }
 0xc2f   :  { %v2404_v22 = vpop.permute.xlu2 %2403 }
 0xc30   :  { %v2398_v21 = vpop.permute.xlu0 %2397  ;;  %v2419_v25 = vsel %vm289_vm0, %v2417_v55, %v2404_v22 }
 0xc31   :  { %v2418_v26 = vsel %vm322_vm1, %v1934_v12, %v2398_v21 }
 0xc37   :  { %v2414_v30 = vpop.permute.xlu2 %2413 }
 0xc3d   :  { %v2406_v28 = vpop.permute.xlu1 %2405 }
 0xc3e   :  { %v2420_v31 = vsel %vm289_vm0, %v2418_v26, %v2406_v28 }
 0xc3f   :  { %v2422_v33 = vsel %vm970_vm6, %v2420_v31, %v2414_v30 }
 0xc40   :  { %v2424_v6 = vadd.f32 %v2422_v33, %v4544_v42 }
 0xc42   :  { %2432 = vst [vmem:[#allocation1 + $0x1] ss:$4 sm:$0xff] %v2424_v6 }
 0xc4f   :  { %v2412_v27 = vpop.permute.xlu0 %2411 }
 0xc50   :  { %v2421_v35 = vsel %vm970_vm6, %v2419_v25, %v2412_v27 }
 0xc51   :  { %v2423_v36 = vadd.f32 %v2421_v35, %v4544_v42 }
 0xc53   :  { %2430 = vst [vmem:[#allocation1] ss:$4 sm:$0xff] %v2423_v36 }
 0xc5a   :  { %v2433_v37 = vld.sshfl [vmem:[#allocation1] sm:$0xff pattern:$0x73625140] }
 0xc5b   :  { %3399 = vmatmul.msk.f32.vlgmr.msra.gmra.mxu1 %vm978_vm7, %v2433_v37 }
 0xcd8   :  { %v2453_v43 = vpop.f32.mrf.mxu1 }
 0xcd9   :  { %v2454_v46 = vadd.f32 %v3492_v41, %v2453_v43 }
 0xcdb   :  { %v2456_v59 = vmax.f32 %v2454_v46, 0.0 }
 0xcdd   :  { %v2458_v42 = vrot.slane %v2456_v59, 2  ;;  %v2460_v48 = vadd.f32 %v2456_v59, %v2423_v36 }
 0xcdf   :  { %v2461_v15 = vadd.f32 %v2458_v42, %v2424_v6  ;;  %2477 = vst [vmem:[#allocation1] ss:$4 sm:$0xff] %v2460_v48 }
 0xce1   :  { %2479 = vst [vmem:[#allocation1 + $0x1] ss:$4 sm:$0xff] %v2461_v15 }
 0xce8   :  { %v2480_v49 = vld.sshfl [vmem:[#allocation1] sm:$0xff pattern:$0x73625140] }
 0xce9   :  { %3400 = vmatmul.msk.f32.vlgmr.msra.gmra.mxu2 %vm978_vm7, %v2480_v49 }
 0xd6c   :  { %v2500_v53 = vpop.f32.mrf.mxu2 }
 0xd6d   :  { %v4715_v32 = vadd.f32 %v3493_v50, %v2500_v53 }
 0xd6f   :  { %2506 = vst [vmem:[#allocation1] ss:$4 sm:$0xff] %v4715_v32  ;;  %v4719_v56 = vrot.slane %v4715_v32, 2 }
 0xd76   :  { %v2507_v57 = vld.sshfl [vmem:[#allocation1] sm:$0xff pattern:$0x73625140] }
 0xd77   :  { %2534 = vst [vmem:[#allocation1] ss:$4 sm:$0xff] %v4719_v56  ;;  %2508 = vrot.lane.b32.xlu1 %v2507_v57, %s4020_s24 }
 0xd7e   :  { %v2535_v58 = vld.sshfl [vmem:[#allocation1] sm:$0xff pattern:$0x73625140] }
 0xd7f   :  { %2611 = vst [vmem:[#allocation1] ss:$4 sm:$0xff] %v4715_v32  ;;  %2536 = vrot.lane.b32.xlu0 %v2535_v58, %s4020_s24  ;;  %s4033_s24 = smov 2  }
 0xd86   :  { %v4725_v63 = vld.sshfl [vmem:[#allocation1] sm:$0xff pattern:$0x73625140] }
 0xd87   :  { %2642 = vst [vmem:[#allocation1] ss:$4 sm:$0xff] %v4719_v56 }
 0xd8e   :  { %v4728_v60 = vld.sshfl [vmem:[#allocation1] sm:$0xff pattern:$0x73625140] }
 0xd8f   :  { %2671 = vst [vmem:[#allocation1] ss:$4 sm:$0xff] %v4715_v32 }
 0xd96   :  { %v2672_v45 = vld.sshfl [vmem:[#allocation1] sm:$0xff pattern:$0x73625140] }
 0xd97   :  { %2675 = vst [vmem:[#allocation1] ss:$4 sm:$0xff] %v4715_v32  ;;  %2673 = vrot.lane.b32.xlu0 %v2672_v45, %s4022_s30 }
 0xd9e   :  { %v2676_v51 = vld.sshfl [vmem:[#allocation1] sm:$0xff pattern:$0x73625140] }
 0xd9f   :  { %2677 = vrot.lane.b32.xlu2 %v2676_v51, %s4019_s4  ;;  %2703 = vst [vmem:[#allocation1] ss:$4 sm:$0xff] %v4719_v56 }
 0xda6   :  { %v2704_v61 = vld.sshfl [vmem:[#allocation1] sm:$0xff pattern:$0x73625140] }
 0xda7   :  { %2705 = vrot.lane.b32.xlu2 %v2704_v61, %s4022_s30  ;;  %2707 = vst [vmem:[#allocation1] ss:$4 sm:$0xff] %v4719_v56 }
 0xdae   :  { %v2708_v3 = vld.sshfl [vmem:[#allocation1] sm:$0xff pattern:$0x73625140] }
 0xdaf   :  { %2709 = vrot.lane.b32.xlu1 %v2708_v3, %s4019_s4  ;;  %2783 = vst [vmem:[#allocation1] ss:$4 sm:$0xff] %v4715_v32  ;;  %s4032_s4 = smov 32  }
 0xdb6   :  { %v4739_v62 = vld.sshfl [vmem:[#allocation1] sm:$0xff pattern:$0x73625140] }
 0xdb7   :  { %2812 = vst [vmem:[#allocation1] ss:$4 sm:$0xff] %v4719_v56 }
 0xdbe   :  { %v4742_v54 = vld.sshfl [vmem:[#allocation1] sm:$0xff pattern:$0x73625140] }
 0xdbf   :  { %2841 = vst [vmem:[#allocation1] ss:$4 sm:$0xff] %v4715_v32 }
 0xdc6   :  { %v2842_v1 = vld.sshfl [vmem:[#allocation1] sm:$0xff pattern:$0x73625140] }
 0xdc7   :  { %2843 = vrot.lane.b32.xlu2 %v2842_v1, %s4021_s5  ;;  %2845 = vst [vmem:[#allocation1] ss:$4 sm:$0xff] %v4715_v32 }
 0xdce   :  { %v2846_v2 = vld.sshfl [vmem:[#allocation1] sm:$0xff pattern:$0x73625140] }
 0xdcf   :  { %2847 = vrot.lane.b32.xlu1 %v2846_v2, %s4018_s18  ;;  %2873 = vst [vmem:[#allocation1] ss:$4 sm:$0xff] %v4719_v56 }
 0xdd6   :  { %v2874_v4 = vld.sshfl [vmem:[#allocation1] sm:$0xff pattern:$0x73625140] }
 0xdd7   :  { %2875 = vrot.lane.b32.xlu1 %v2874_v4, %s4021_s5  ;;  %2877 = vst [vmem:[#allocation1] ss:$4 sm:$0xff] %v4719_v56 }
 0xdde   :  { %v2878_v29 = vld.sshfl [vmem:[#allocation1] sm:$0xff pattern:$0x73625140] }
 0xddf   :  { %2879 = vrot.lane.b32.xlu0 %v2878_v29, %s4018_s18  ;;  %2953 = vst [vmem:[#allocation1] ss:$4 sm:$0xff] %v4715_v32 }
 0xde6   :  { %v4753_v5 = vld.sshfl [vmem:[#allocation1] sm:$0xff pattern:$0x73625140] }
 0xde7   :  { %2982 = vst [vmem:[#allocation1] ss:$4 sm:$0xff] %v4719_v56 }
 0xde9   :  { %v2509_v17 = vpop.permute.xlu1 %2508 }
 0xdea   :  { %3401 = vmatpush.xpose.msk.msrb.mxu3 %vm322_vm1, %v2509_v17 }
 0xded   :  { %3402 = vmatmul.msk.f32.vlgmr.msrb.gmra.mxu3 %vm322_vm1, %v4715_v32 }
 0xdee   :  { %v4759_v20 = vld.sshfl [vmem:[#allocation1] sm:$0xff pattern:$0x73625140] }
 0xdef   :  { %3011 = vst [vmem:[#allocation1] ss:$4 sm:$0xff] %v4715_v32 }
 0xdf1   :  { %v2537_v7 = vpop.permute.xlu0 %2536 }
 0xdf2   :  { %3403 = vmatpush.xpose.msk.msra.mxu0 %vm322_vm1, %v2537_v7 }
 0xdf5   :  { %3404 = vmatmul.msk.f32.vlgmr.msra.gmra.mxu0 %vm322_vm1, %v4719_v56 }
 0xdf6   :  { %v3012_v9 = vld.sshfl [vmem:[#allocation1] sm:$0xff pattern:$0x73625140] }
 0xdf7   :  { %3013 = vrot.lane.b32.xlu1 %v3012_v9, %s4023_s7  ;;  %3015 = vst [vmem:[#allocation1] ss:$4 sm:$0xff] %v4715_v32 }
 0xdf9   :  { %v2678_v10 = vpop.permute.xlu2 %2677 }
 0xdfa   :  { %3409 = vmatpush.xpose.msk.msra.mxu3 %vm322_vm1, %v2678_v10 }
 0xdfe   :  { %v3016_v52 = vld.sshfl [vmem:[#allocation1] sm:$0xff pattern:$0x73625140] }
 0xdff   :  { %3017 = vrot.lane.b32.xlu0 %v3016_v52, %s4024_s21  ;;  %3043 = vst [vmem:[#allocation1] ss:$4 sm:$0xff] %v4719_v56 }
 0xe01   :  { %v2706_v34 = vpop.permute.xlu2 %2705 }
 0xe06   :  { %v3044_v44 = vld.sshfl [vmem:[#allocation1] sm:$0xff pattern:$0x73625140] }
 0xe07   :  { %3045 = vrot.lane.b32.xlu0 %v3044_v44, %s4023_s7  ;;  %3047 = vst [vmem:[#allocation1] ss:$4 sm:$0xff] %v4719_v56 }
 0xe09   :  { %v2674_v11 = vpop.permute.xlu0 %2673 }
 0xe0a   :  { %3410 = vmatmul.msk.f32.vlgmr.msra.gmra.mxu3 %vm322_vm1, %v2674_v11 }
 0xe0e   :  { %v3048_v12 = vld.sshfl [vmem:[#allocation1] sm:$0xff pattern:$0x73625140] }
 0xe0f   :  { %3049 = vrot.lane.b32.xlu2 %v3048_v12, %s4024_s21  ;;  %3123 = vst [vmem:[#allocation1] ss:$4 sm:$0xff] %v4715_v32 }
 0xe16   :  { %v4775_v8 = vld.sshfl [vmem:[#allocation1] sm:$0xff pattern:$0x73625140] }
 0xe17   :  { %3152 = vst [vmem:[#allocation1] ss:$4 sm:$0xff] %v4719_v56 }
 0xe21   :  { %v2710_v47 = vpop.permute.xlu1 %2709  ;;  %v2844_v14 = vpop.permute.xlu2 %2843 }
 0xe22   :  { %3411 = vmatpush.xpose.msk.msrb.mxu0 %vm322_vm1, %v2710_v47 }
 0xe25   :  { %3412 = vmatmul.msk.f32.vlgmr.msrb.gmra.mxu0 %vm322_vm1, %v2706_v34 }
 0xe41   :  { %v2848_v13 = vpop.permute.xlu1 %2847 }
 0xe42   :  { %3417 = vmatpush.xpose.msk.msrb.mxu3 %vm322_vm1, %v2848_v13 }
 0xe45   :  { %3418 = vmatmul.msk.f32.vlgmr.msrb.gmra.mxu3 %vm322_vm1, %v2844_v14 }
 0xe49   :  { %v2876_v0 = vpop.permute.xlu1 %2875 }
 0xe51   :  { %v2880_v22 = vpop.permute.xlu0 %2879 }
 0xe52   :  { %3419 = vmatpush.xpose.msk.msra.mxu0 %vm322_vm1, %v2880_v22 }
 0xe55   :  { %3420 = vmatmul.msk.f32.vlgmr.msra.gmra.mxu0 %vm322_vm1, %v2876_v0 }
 0xe69   :  { %v3050_v16 = vpop.permute.xlu2 %3049  ;;  %v3014_v28 = vpop.permute.xlu1 %3013 }
 0xe6a   :  { %3427 = vmatpush.xpose.msk.msrb.mxu0 %vm322_vm1, %v3050_v16 }
 0xe70   :  { %v2531_v18 = vpop.f32.mrf.mxu3 }
 0xe71   :  { %v3018_v21 = vpop.permute.xlu0 %3017  ;;  %v2563_v23 = vsel %vm2562_vm13, %v2531_v18, -inf }
 0xe72   :  { %v2559_v24 = vpop.f32.mrf.mxu0  ;;  %2564 = vmax.xlane.f32.xlu1 %v2563_v23  ;;  %3425 = vmatpush.xpose.msk.msra.mxu3 %vm322_vm1, %v3018_v21 }
 0xe73   :  { %v2566_v26 = vsel %vm2562_vm13, %v2559_v24, -inf }
 0xe74   :  { %2567 = vmax.xlane.f32.xlu2 %v2566_v26 }
 0xe75   :  { %3426 = vmatmul.msk.f32.vlgmr.msra.gmra.mxu3 %vm322_vm1, %v3014_v28 }
 0xe79   :  { %v3046_v30 = vpop.permute.xlu0 %3045 }
 0xe7a   :  { %3428 = vmatmul.msk.f32.vlgmr.msrb.gmra.mxu0 %vm322_vm1, %v3046_v30 }
 0xe8d   :  { %v2700_v31 = vpop.f32.mrf.mxu3 }
 0xe8e   :  { %v2735_v33 = vsel %vm2562_vm13, %v2700_v31, -inf }
 0xe8f   :  { %2736 = vmax.xlane.f32.xlu2 %v2735_v33 }
 0xea2   :  { %v2732_v6 = vpop.f32.mrf.mxu0 }
 0xea3   :  { %v2738_v55 = vsel %vm2562_vm13, %v2732_v6, -inf }
 0xea4   :  { %2739 = vmax.xlane.f32.xlu0 %v2738_v55 }
 0xec8   :  { %v2870_v25 = vpop.f32.mrf.mxu3 }
 0xec9   :  { %v2905_v27 = vsel %vm2562_vm13, %v2870_v25, -inf }
 0xeca   :  { %2906 = vmax.xlane.f32.xlu0 %v2905_v27 }
 0xed2   :  { %v2902_v35 = vpop.f32.mrf.mxu0 }
 0xed3   :  { %v2908_v36 = vsel %vm2562_vm13, %v2902_v35, -inf }
 0xed4   :  { %2909 = vmax.xlane.f32.xlu1 %v2908_v36 }
 0xee5   :  { %v2565_v37 = vpop.xlane.xlu1 %2564 }
 0xee6   :  { %v2569_v38 = vsub.f32 %v2531_v18, %v2565_v37 }
 0xee7   :  { %v2568_v39 = vpop.xlane.xlu2 %2567 }
 0xee8   :  { %v2571_v40 = vmul.f32 1.442695, %v2569_v38  ;;  %v2570_v19 = vsub.f32 %v2559_v24, %v2568_v39 }
 0xeea   :  { %3592 = vpow2.f32 %v2571_v40  ;;  %v2573_v41 = vmul.f32 1.442695, %v2570_v19 }
 0xeec   :  { %3594 = vpow2.f32 %v2573_v41 }
 0xef0   :  { %v4794_v43 = vpop.eup %3592 }
 0xef1   :  { %v2575_v46 = vsel %vm2562_vm13, %v4794_v43, 0.0 }
 0xef2   :  { %v4798_v59 = vpop.eup %3594  ;;  %2576 = vadd.xlane.f32.xlu2 %v2575_v46 }
 0xef3   :  { %v2578_v42 = vsel %vm2562_vm13, %v4798_v59, 0.0 }
 0xef4   :  { %2579 = vadd.xlane.f32.xlu0 %v2578_v42 }
 0xef7   :  { %v3072_v48 = vpop.f32.mrf.mxu0 }
 0xef8   :  { %v3040_v15 = vpop.f32.mrf.mxu3  ;;  %v3078_v49 = vsel %vm2562_vm13, %v3072_v48, -inf }
 0xef9   :  { %v3075_v50 = vsel %vm2562_vm13, %v3040_v15, -inf }
 0xefa   :  { %3076 = vmax.xlane.f32.xlu1 %v3075_v50  ;;  %3079 = vmax.xlane.f32.xlu2 %v3078_v49  ;;  %v3153_v50 = vld.sshfl [vmem:[#allocation1] sm:$0xff pattern:$0x73625140] }
 0xf02   :  { %v2737_v53 = vpop.xlane.xlu2 %2736 }
 0xf03   :  { %v2741_v57 = vsub.f32 %v2700_v31, %v2737_v53 }
 0xf05   :  { %v2743_v58 = vmul.f32 1.442695, %v2741_v57 }
 0xf07   :  { %3596 = vpow2.f32 %v2743_v58 }
 0xf0d   :  { %v4804_v45 = vpop.eup %3596 }
 0xf0e   :  { %v2747_v51 = vsel %vm2562_vm13, %v4804_v45, 0.0 }
 0xf0f   :  { %2748 = vadd.xlane.f32.xlu0 %v2747_v51 }
 0xf12   :  { %2814 = vrot.lane.b32.xlu2 %v4742_v54, %s4028_s6 }
 0xf17   :  { %v2740_v61 = vpop.xlane.xlu0 %2739 }
 0xf18   :  { %v2742_v3 = vsub.f32 %v2732_v6, %v2740_v61 }
 0xf1a   :  { %v2745_v1 = vmul.f32 1.442695, %v2742_v3 }
 0xf1c   :  { %3598 = vpow2.f32 %v2745_v1 }
 0xf22   :  { %v4810_v2 = vpop.eup %3598 }
 0xf23   :  { %2613 = vrot.lane.b32.xlu0 %v4725_v63, %s4025_s25  ;;  %v2750_v4 = vsel %vm2562_vm13, %v4810_v2, 0.0 }
 0xf24   :  { %2751 = vadd.xlane.f32.xlu1 %v2750_v4 }
 0xf3d   :  { %2644 = vrot.lane.b32.xlu1 %v4728_v60, %s4025_s25  ;;  %v2907_v29 = vpop.xlane.xlu0 %2906 }
 0xf3e   :  { %v2911_v17 = vsub.f32 %v2870_v25, %v2907_v29 }
 0xf40   :  { %v2913_v7 = vmul.f32 1.442695, %v2911_v17 }
 0xf42   :  { %3600 = vpow2.f32 %v2913_v7 }
 0xf47   :  { %v2910_v54 = vpop.xlane.xlu1 %2909 }
 0xf48   :  { %v2912_v9 = vsub.f32 %v2902_v35, %v2910_v54  ;;  %v4818_v10 = vpop.eup %3600 }
 0xf49   :  { %v2917_v63 = vsel %vm2562_vm13, %v4818_v10, 0.0 }
 0xf4a   :  { %v2915_v52 = vmul.f32 1.442695, %v2912_v9 }
 0xf4c   :  { %3602 = vpow2.f32 %v2915_v52 }
 0xf4d   :  { %2918 = vadd.xlane.f32.xlu0 %v2917_v63 }
 0xf52   :  { %v4822_v44 = vpop.eup %3602 }
 0xf53   :  { %v2920_v11 = vsel %vm2562_vm13, %v4822_v44, 0.0 }
 0xf54   :  { %2921 = vadd.xlane.f32.xlu2 %v2920_v11 }
 0xf61   :  { %2785 = vrot.lane.b32.xlu0 %v4739_v62, %s4028_s6 }
 0xf65   :  { %v2577_v34 = vpop.xlane.xlu2 %2576 }
 0xf66   :  { %vm2586_vm15 = vweird.f32 %v2577_v34  ;;  %v2590_v24 = vand.u32 2147483647, %v2577_v34 }
 0xf67   :  { %v2580_v16 = vpop.xlane.xlu0 %2579 }
 0xf68   :  { %vm2591_vm3 = vcmp.eq.f32.partialorder %v2590_v24, 8.507059e+37  ;;  %v2607_v46 = vand.u32 2147483648, %v2580_v16  ;;  %vm2601_vm9 = vweird.f32 %v2580_v16  ;;  %v2605_v42 = vand.u32 2147483647, %v2580_v16 }
 0xf69   :  { %2955 = vrot.lane.b32.xlu0 %v4753_v5, %s4026_s28 }
 0xf6a   :  { %vm2606_vm11 = vcmp.eq.f32.partialorder %v2605_v42, 8.507059e+37 }
 0xf6c   :  { %2984 = vrot.lane.b32.xlu2 %v4759_v20, %s4026_s28 }
 0xf6d   :  { %v3077_v60 = vpop.xlane.xlu1 %3076  ;;  %v3080_v22 = vpop.xlane.xlu2 %3079 }
 0xf6e   :  { %v3081_v12 = vsub.f32 %v3040_v15, %v3077_v60  ;;  %v3082_v20 = vsub.f32 %v3072_v48, %v3080_v22  ;;  %v2608_v15 = vor.u32 1.1754944e-38, %v2607_v46 }
 0xf70   :  { %v3083_v47 = vmul.f32 1.442695, %v3081_v12  ;;  %v3085_v21 = vmul.f32 1.442695, %v3082_v20 }
 0xf71   :  { %3125 = vrot.lane.b32.xlu0 %v4775_v8, %s4027_s1  ;;  %v2592_v8 = vand.u32 2147483648, %v2577_v34 }
 0xf72   :  { %3604 = vpow2.f32 %v3083_v47 }
 0xf73   :  { %3606 = vrcp.f32 %v2577_v34  ;;  %v2593_v30 = vor.u32 1.1754944e-38, %v2592_v8 }
 0xf74   :  { %3608 = vpow2.f32 %v3085_v21 }
 0xf75   :  { %3610 = vrcp.f32 %v2580_v16  ;;  %v2815_v3 = vpop.permute.xlu2 %2814 }
 0xf78   :  { %v4834_v13 = vpop.eup %3604 }
 0xf79   :  { %v3087_v62 = vsel %vm2562_vm13, %v4834_v13, 0.0  ;;  %v3607_v14 = vpop.eup %3606 }
 0xf7a   :  { %3088 = vadd.xlane.f32.xlu1 %v3087_v62  ;;  %v2582_v5 = vmul.f32 %v3607_v14, %v2577_v34  ;;  %vm2587_vm14 = vweird.f32 %v3607_v14  ;;  %v4840_v31 = vpop.eup %3608 }
 0xf7b   :  { %vm2588_vm2 = vmor %vm2586_vm15, %vm2587_vm14  ;;  %v3090_v6 = vsel %vm2562_vm13, %v4840_v31, 0.0  ;;  %v3611_v27 = vpop.eup %3610 }
 0xf7c   :  { %v2583_v0 = vsub.f32 1.0, %v2582_v5  ;;  %v2597_v36 = vmul.f32 %v3611_v27, %v2580_v16  ;;  %vm2602_vm8 = vweird.f32 %v3611_v27 }
 0xf7d   :  { %vm2603_vm10 = vmor %vm2601_vm9, %vm2602_vm8 }
 0xf7e   :  { %v2584_v18 = vmul.f32 %v3607_v14, %v2583_v0  ;;  %v2598_v37 = vsub.f32 1.0, %v2597_v36 }
 0xf80   :  { %v2585_v23 = vadd.f32 %v3607_v14, %v2584_v18  ;;  %v2599_v39 = vmul.f32 %v3611_v27, %v2598_v37 }
 0xf82   :  { %v4838_v26 = vpop.xlane.xlu0 %2748  ;;  %v2589_v28 = vsel %vm2588_vm2, %v3607_v14, %v2585_v23  ;;  %v2600_v19 = vadd.f32 %v3611_v27, %v2599_v39 }
 0xf83   :  { %v2594_v33 = vsel %vm2591_vm3, %v2593_v30, %v2589_v28  ;;  %v2764_v47 = vand.u32 2147483648, %v4838_v26  ;;  %vm2758_vm3 = vweird.f32 %v4838_v26 }
 0xf84   :  { %v2595_v25 = vmul.f32 %v4794_v43, %v2594_v33  ;;  %v2604_v43 = vsel %vm2603_vm10, %v3611_v27, %v2600_v19 }
 0xf85   :  { %v2609_v49 = vsel %vm2606_vm11, %v2608_v15, %v2604_v43  ;;  %v2765_v14 = vor.u32 1.1754944e-38, %v2764_v47 }
 0xf86   :  { %v2610_v61 = vmul.f32 %v4798_v59, %v2609_v49 }
 0xf95   :  { %v2614_v55 = vpop.permute.xlu0 %2613  ;;  %3091 = vadd.xlane.f32.xlu2 %v3090_v6 }
 0xf96   :  { %3405 = vmatpush.msk.msrb.mxu1 %vm2619_vm4, %v2614_v55 }
 0xf97   :  { %v2752_v35 = vpop.xlane.xlu1 %2751  ;;  %3406 = vmatmul.msk.f32.vlgmr.msrb.gmra.mxu1 %vm2615_vm5, %v2595_v25 }
 0xf98   :  { %3612 = vrcp.f32 %v2752_v35  ;;  %v2779_v57 = vand.u32 2147483648, %v2752_v35  ;;  %vm2773_vm13 = vweird.f32 %v2752_v35  ;;  %v2777_v58 = vand.u32 2147483647, %v2752_v35 }
 0xf99   :  { %3614 = vrcp.f32 %v4838_v26 }
 0xf9a   :  { %v2780_v4 = vor.u32 1.1754944e-38, %v2779_v57  ;;  %vm2778_vm15 = vcmp.eq.f32.partialorder %v2777_v58, 8.507059e+37 }
 0xf9e   :  { %v3613_v38 = vpop.eup %3612 }
 0xf9f   :  { %v2769_v40 = vmul.f32 %v3613_v38, %v2752_v35  ;;  %vm2774_vm12 = vweird.f32 %v3613_v38  ;;  %v3615_v7 = vpop.eup %3614 }
 0xfa0   :  { %vm2775_vm14 = vmor %vm2773_vm13, %vm2774_vm12  ;;  %v2754_v59 = vmul.f32 %v3615_v7, %v4838_v26  ;;  %vm2759_vm2 = vweird.f32 %v3615_v7 }
 0xfa1   :  { %v2770_v41 = vsub.f32 1.0, %v2769_v40  ;;  %vm2760_vm8 = vmor %vm2758_vm3, %vm2759_vm2 }
 0xfa2   :  { %v2755_v54 = vsub.f32 1.0, %v2754_v59 }
 0xfa3   :  { %v2771_v48 = vmul.f32 %v3613_v38, %v2770_v41 }
 0xfa4   :  { %v2756_v52 = vmul.f32 %v3615_v7, %v2755_v54 }
 0xfa5   :  { %v2772_v53 = vadd.f32 %v3613_v38, %v2771_v48 }
 0xfa6   :  { %v2757_v60 = vadd.f32 %v3615_v7, %v2756_v52 }
 0xfa7   :  { %v2776_v1 = vsel %vm2775_vm14, %v3613_v38, %v2772_v53 }
 0xfa8   :  { %v2781_v29 = vsel %vm2778_vm15, %v2780_v4, %v2776_v1  ;;  %v2761_v62 = vsel %vm2760_vm8, %v3615_v7, %v2757_v60 }
 0xfa9   :  { %v2782_v17 = vmul.f32 %v4810_v2, %v2781_v29  ;;  %v2762_v2 = vand.u32 2147483647, %v4838_v26 }
 0xfab   :  { %vm2763_vm9 = vcmp.eq.f32.partialorder %v2762_v2, 8.507059e+37 }
 0xfac   :  { %v2766_v0 = vsel %vm2763_vm9, %v2765_v14, %v2761_v62 }
 0xfad   :  { %3154 = vrot.lane.b32.xlu2 %v3153_v50, %s4027_s1  ;;  %v2767_v24 = vmul.f32 %v4804_v45, %v2766_v0 }
 0xfaf   :  { %v2645_v51 = vpop.permute.xlu1 %2644 }
 0xfb0   :  { %3407 = vmatpush.msk.msrb.mxu2 %vm2619_vm4, %v2645_v51 }
 0xfb1   :  { %3408 = vmatmul.msk.f32.vlgmr.msrb.gmra.mxu2 %vm2615_vm5, %v2610_v61 }
 0xfb2   :  { %3415 = vmatpush.msk.msra.mxu2 %vm2619_vm4, %v2815_v3 }
 0xfb9   :  { %3416 = vmatmul.msk.f32.vlgmr.msra.gmra.mxu2 %vm2615_vm5, %v2782_v17 }
 0xfc0   :  { %v2919_v9 = vpop.xlane.xlu0 %2918 }
 0xfc1   :  { %3616 = vrcp.f32 %v2919_v9  ;;  %vm2928_vm11 = vweird.f32 %v2919_v9  ;;  %v2934_v23 = vand.u32 2147483648, %v2919_v9  ;;  %v2932_v26 = vand.u32 2147483647, %v2919_v9 }
 0xfc3   :  { %v2935_v25 = vor.u32 1.1754944e-38, %v2934_v23  ;;  %vm2933_vm2 = vcmp.eq.f32.partialorder %v2932_v26, 8.507059e+37 }
 0xfc7   :  { %v3617_v63 = vpop.eup %3616  ;;  %v2922_v11 = vpop.xlane.xlu2 %2921 }
 0xfc8   :  { %v2924_v12 = vmul.f32 %v3617_v63, %v2919_v9  ;;  %3618 = vrcp.f32 %v2922_v11  ;;  %vm2929_vm10 = vweird.f32 %v3617_v63  ;;  %v2949_v8 = vand.u32 2147483648, %v2922_v11 }
 0xfc9   :  { %v2947_v30 = vand.u32 2147483647, %v2922_v11  ;;  %vm2930_vm13 = vmor %vm2928_vm11, %vm2929_vm10  ;;  %vm2943_vm14 = vweird.f32 %v2922_v11 }
 0xfca   :  { %v2925_v34 = vsub.f32 1.0, %v2924_v12  ;;  %v2950_v27 = vor.u32 1.1754944e-38, %v2949_v8 }
 0xfcb   :  { %vm2948_vm3 = vcmp.eq.f32.partialorder %v2947_v30, 8.507059e+37 }
 0xfcc   :  { %v2926_v5 = vmul.f32 %v3617_v63, %v2925_v34 }
 0xfce   :  { %v3619_v22 = vpop.eup %3618  ;;  %v2927_v18 = vadd.f32 %v3617_v63, %v2926_v5 }
 0xfcf   :  { %v2939_v20 = vmul.f32 %v3619_v22, %v2922_v11  ;;  %v2985_v16 = vpop.permute.xlu2 %2984  ;;  %vm2944_vm12 = vweird.f32 %v3619_v22 }
 0xfd0   :  { %3423 = vmatpush.msk.msrb.mxu2 %vm2619_vm4, %v2985_v16  ;;  %v2931_v6 = vsel %vm2930_vm13, %v3617_v63, %v2927_v18  ;;  %vm2945_vm15 = vmor %vm2943_vm14, %vm2944_vm12  ;;  %v2469_v16 = vld [vmem:[#allocation22 + $0x10] sm:$0xff]  ;;  %v2468_v18 = vld [vmem:[#allocation22 + $0x8] sm:$0xff] }
 0xfd1   :  { %v2940_v21 = vsub.f32 1.0, %v2939_v20  ;;  %v2936_v45 = vsel %vm2933_vm2, %v2935_v25, %v2931_v6  ;;  %v2470_v20 = vld [vmem:[#allocation22 + $0x18] sm:$0xff]  ;;  %v3251_v25 = vld [vmem:[#allocation23 + $0x8] sm:$0xff] }
 0xfd2   :  { %v2937_v39 = vmul.f32 %v4818_v10, %v2936_v45  ;;  %3236 = vmatpush.msrb.mxu3 %v2470_v20  ;;  %v3253_v6 = vld [vmem:[#allocation23 + $0x18] sm:$0xff] }
 0xfd3   :  { %v2941_v28 = vmul.f32 %v3619_v22, %v2940_v21  ;;  %v2786_v33 = vpop.permute.xlu0 %2785  ;;  %v2467_v21 = vld [vmem:[#allocation22] sm:$0xff]  ;;  %3278 = vmatpush.msra.mxu0 %v3253_v6 }
 0xfd4   :  { %3413 = vmatpush.msk.msra.mxu1 %vm2619_vm4, %v2786_v33  ;;  %3237 = vmatpush.msrb.mxu3 %v2469_v16 }
 0xfd5   :  { %v2942_v55 = vadd.f32 %v3619_v22, %v2941_v28  ;;  %3414 = vmatmul.msk.f32.vlgmr.msra.gmra.mxu1 %vm2615_vm5, %v2767_v24 }
 0xfd6   :  { %3238 = vmatpush.msrb.mxu3 %v2468_v18 }
 0xfd7   :  { %v2946_v35 = vsel %vm2945_vm15, %v3619_v22, %v2942_v55  ;;  %v3252_v55 = vld [vmem:[#allocation23 + $0x10] sm:$0xff] }
 0xfd8   :  { %v2951_v36 = vsel %vm2948_vm3, %v2950_v27, %v2946_v35  ;;  %3239 = vmatpush.msrb.mxu3 %v2467_v21  ;;  %3279 = vmatpush.msra.mxu0 %v3252_v55  ;;  %v3250_v27 = vld [vmem:[#allocation23] sm:$0xff]  ;;  %v3494_v35 = vld [vmem:[%s4916_s17] ss:$0 sm:$0xff]  ;;  %s3297_s17 = sshll.u32 %s4919_s20, 4  ;;  %s3298_s17 = int_to_ptr.hbm [resolvable:$true] %s3297_s17 }
 0xfd9   :  { %v2952_v37 = vmul.f32 %v4822_v44, %v2951_v36 }
 0xfda   :  { %3280 = vmatpush.msra.mxu0 %v3251_v25 }
 0xfdb   :  { %v2956_v38 = vpop.permute.xlu0 %2955  ;;  %3424 = vmatmul.msk.f32.vlgmr.msrb.gmra.mxu2 %vm2615_vm5, %v2952_v37 }
 0xfdc   :  { %3421 = vmatpush.msk.msrb.mxu1 %vm2619_vm4, %v2956_v38  ;;  %3281 = vmatpush.msra.mxu0 %v3250_v27 }
 0xfdd   :  { %3422 = vmatmul.msk.f32.vlgmr.msrb.gmra.mxu1 %vm2615_vm5, %v2937_v39 }
 0xfe3   :  { %v3126_v40 = vpop.permute.xlu0 %3125 }
 0xfe4   :  { %3429 = vmatpush.msk.msra.mxu1 %vm2619_vm4, %v3126_v40 }
 0xfed   :  { %v3089_v19 = vpop.xlane.xlu1 %3088 }
 0xfee   :  { %3620 = vrcp.f32 %v3089_v19  ;;  %v3104_v43 = vand.u32 2147483648, %v3089_v19  ;;  %v3102_v44 = vand.u32 2147483647, %v3089_v19  ;;  %vm3098_vm9 = vweird.f32 %v3089_v19 }
 0xff0   :  { %v3105_v10 = vor.u32 1.1754944e-38, %v3104_v43  ;;  %vm3103_vm11 = vcmp.eq.f32.partialorder %v3102_v44, 8.507059e+37 }
 0xff4   :  { %v3621_v41 = vpop.eup %3620 }
 0xff5   :  { %v3094_v46 = vmul.f32 %v3621_v41, %v3089_v19  ;;  %vm3099_vm8 = vweird.f32 %v3621_v41  ;;  %v3495_v19 = vld [vmem:[%s4918_s19] ss:$0 sm:$0xff] }
 0xff6   :  { %vm3100_vm10 = vmor %vm3098_vm9, %vm3099_vm8 }
 0xff7   :  { %v3095_v42 = vsub.f32 1.0, %v3094_v46 }
 0xff9   :  { %v3096_v48 = vmul.f32 %v3621_v41, %v3095_v42 }
 0xffb   :  { %v3097_v15 = vadd.f32 %v3621_v41, %v3096_v48 }
 0xffd   :  { %v3101_v49 = vsel %vm3100_vm10, %v3621_v41, %v3097_v15 }
 0xffe   :  { %v3106_v50 = vsel %vm3103_vm11, %v3105_v10, %v3101_v49 }
 0xfff   :  { %v3107_v53 = vmul.f32 %v4834_v13, %v3106_v50 }
0x1001   :  { %3430 = vmatmul.msk.f32.vlgmr.msra.gmra.mxu1 %vm2615_vm5, %v3107_v53 }
0x1008   :  { %v3092_v57 = vpop.xlane.xlu2 %3091 }
0x1009   :  { %3622 = vrcp.f32 %v3092_v57  ;;  %v3119_v1 = vand.u32 2147483648, %v3092_v57  ;;  %v3117_v29 = vand.u32 2147483647, %v3092_v57  ;;  %vm3113_vm13 = vweird.f32 %v3092_v57 }
0x100b   :  { %v3120_v7 = vor.u32 1.1754944e-38, %v3119_v1  ;;  %vm3118_vm15 = vcmp.eq.f32.partialorder %v3117_v29, 8.507059e+37 }
0x100f   :  { %v3623_v58 = vpop.eup %3622 }
0x1010   :  { %v3109_v51 = vmul.f32 %v3623_v58, %v3092_v57  ;;  %v3155_v61 = vpop.permute.xlu2 %3154  ;;  %vm3114_vm12 = vweird.f32 %v3623_v58 }
0x1011   :  { %3431 = vmatpush.msk.msra.mxu2 %vm2619_vm4, %v3155_v61  ;;  %vm3115_vm14 = vmor %vm3113_vm13, %vm3114_vm12 }
0x1012   :  { %v3110_v3 = vsub.f32 1.0, %v3109_v51 }
0x1014   :  { %v3111_v4 = vmul.f32 %v3623_v58, %v3110_v3  ;;  %v2639_v63 = vpop.f32.mrf.mxu1 }
0x1016   :  { %v3112_v17 = vadd.f32 %v3623_v58, %v3111_v4 }
0x1018   :  { %v3116_v59 = vsel %vm3115_vm14, %v3623_v58, %v3112_v17 }
0x1019   :  { %v3121_v13 = vsel %vm3118_vm15, %v3120_v7, %v3116_v59 }
0x101a   :  { %v3122_v54 = vmul.f32 %v4840_v31, %v3121_v13 }
0x101c   :  { %3432 = vmatmul.msk.f32.vlgmr.msra.gmra.mxu2 %vm2615_vm5, %v3122_v54 }
0x1034   :  { %v2668_v9 = vpop.f32.mrf.mxu2 }
0x103c   :  { %v2838_v52 = vpop.f32.mrf.mxu2 }
0x103d   :  { %3185 = vrot.lane.b32.xlu0 %v2838_v52, %s4004_s29 }
0x1052   :  { %v2809_v11 = vpop.f32.mrf.mxu1 }
0x1053   :  { %3183 = vrot.lane.b32.xlu2 %v2809_v11, %s4004_s29 }
0x105a   :  { %v2979_v60 = vpop.f32.mrf.mxu1 }
0x105b   :  { %3191 = vrot.lane.b32.xlu2 %v2979_v60, %s4029_s23 }
0x105e   :  { %v3008_v12 = vpop.f32.mrf.mxu2 }
0x105f   :  { %3193 = vrot.lane.b32.xlu0 %v3008_v12, %s4029_s23 }
0x107e   :  { %v3149_v47 = vpop.f32.mrf.mxu1 }
0x107f   :  { %3199 = vrot.lane.b32.xlu2 %v3149_v47, %s4030_s22 }
0x109f   :  { %v3178_v31 = vpop.f32.mrf.mxu2 }
0x10a0   :  { %3201 = vrot.lane.b32.xlu1 %v3178_v31, %s4030_s22 }
0x10ad   :  { %v3184_v2 = vpop.permute.xlu2 %3183 }
0x10ae   :  { %v3205_v62 = vsel %vm322_vm1, %v2639_v63, %v3184_v2 }
0x10af   :  { %v3186_v23 = vpop.permute.xlu0 %3185 }
0x10b0   :  { %v3206_v24 = vsel %vm322_vm1, %v2668_v9, %v3186_v23 }
0x10b5   :  { %v3192_v34 = vpop.permute.xlu2 %3191 }
0x10b6   :  { %v3207_v14 = vsel %vm289_vm0, %v3205_v62, %v3192_v34 }
0x10d1   :  { %v3194_v8 = vpop.permute.xlu0 %3193 }
0x10d2   :  { %v3208_v26 = vsel %vm289_vm0, %v3206_v24, %v3194_v8 }
0x10d9   :  { %v3200_v5 = vpop.permute.xlu2 %3199 }
0x10da   :  { %v3209_v22 = vsel %vm970_vm6, %v3207_v14, %v3200_v5 }
0x10db   :  { %v3211_v0 = vadd.f32 %v3209_v22, %v4715_v32 }
0x10dd   :  { %3218 = vst [vmem:[#allocation1] ss:$4 sm:$0xff] %v3211_v0 }
0x1112   :  { %v3202_v28 = vpop.permute.xlu1 %3201 }
0x1113   :  { %v3210_v30 = vsel %vm970_vm6, %v3208_v26, %v3202_v28 }
0x1114   :  { %v3212_v32 = vadd.f32 %v3210_v30, %v4719_v56 }
0x1116   :  { %3220 = vst [vmem:[#allocation1 + $0x1] ss:$4 sm:$0xff] %v3212_v32 }
0x111d   :  { %v3221_v33 = vld.sshfl [vmem:[#allocation1] sm:$0xff pattern:$0x73625140] }
0x111e   :  { %3433 = vmatmul.msk.f32.vlgmr.msrb.gmra.mxu3 %vm978_vm7, %v3221_v33 }
0x11a1   :  { %v3241_v45 = vpop.f32.mrf.mxu3 }
0x11a2   :  { %v3242_v36 = vadd.f32 %v3494_v35, %v3241_v45 }
0x11a4   :  { %v3244_v37 = vmax.f32 %v3242_v36, 0.0 }
0x11a6   :  { %v3246_v56 = vrot.slane %v3244_v37, 2  ;;  %v3248_v38 = vadd.f32 %v3244_v37, %v3211_v0 }
0x11a8   :  { %v3249_v39 = vadd.f32 %v3246_v56, %v3212_v32  ;;  %3260 = vst [vmem:[#allocation1] ss:$4 sm:$0xff] %v3248_v38 }
0x11aa   :  { %3262 = vst [vmem:[#allocation1 + $0x1] ss:$4 sm:$0xff] %v3249_v39 }
0x11b1   :  { %v3263_v40 = vld.sshfl [vmem:[#allocation1] sm:$0xff pattern:$0x73625140] }
0x11b2   :  { %3434 = vmatmul.msk.f32.vlgmr.msra.gmra.mxu0 %vm978_vm7, %v3263_v40 }
0x122f   :  { %v3283_v41 = vpop.f32.mrf.mxu0 }
0x1230   :  { %v3284_v46 = vadd.f32 %v3495_v19, %v3283_v41 }
0x1232   :  { %v3287_v42 = vrot.slane %v3284_v46, 2  ;;  %3289 = vst [vmem:[#allocation25] sm:$0x3] %v3284_v46 }
0x1234   :  { %3290 = vst [vmem:[#allocation25 + $0x2] sm:$0x3] %v3287_v42 }
0x1235   :  { %3303 = dma.vmem_to_hbm [thread:$0]  %s3296_s3, 64, %s3298_s17, [#allocation4], %s4032_s4, %s4032_s4, %s4033_s24  }
0x1236   :  { %4000 = dma.done.wait [#allocation4], 64  }
0x1237   :  { %4001 = vsyncadd [#allocation4], 4294967232 }
0x1238   :  { %3308 = vsyncpa [#allocation3], 1 }
0x1239   :  { %3309 = vsyncpa [#allocation6], 1 }
0x123a   :  { %3310 = vsyncpa [#allocation9], 1 }
0x123b   :  { %3311 = vsyncpa [#allocation12], 1 }
0x123c   :  { %3312 = vsyncpa [#allocation15], 1 }
0x123d   :  { %3313 = vsyncpa [#allocation18], 1 }
0x123e   :  { %3314 = vsyncpa [#allocation21], 1 }
0x123f   :  { %3315 = vsyncpa [#allocation24], 1 }
0x1240   :  { %3316 = vsyncpa [#allocation4], 1 }

</bundles_post_ra>
